<compile_context>
chip_gen: v6e
topology: v6e:2x2x1
jax: 0.10.0
libtpu: 0.0.40
codegen_flags: <defaults>
</compile_context>

<pallas_src>
import math
from functools import partial

import jax
import jax.numpy as jnp
from jax import lax
from jax.experimental import pallas as pl
from jax.experimental.pallas import tpu as pltpu

_VMEM_LIMIT = 32 * 1024 * 1024    # explicit scoped-VMEM limit (safe on v5e/v6e/v7x)
_VMEM_BUDGET = 20 * 1024 * 1024   # what the tile pickers are allowed to plan for


# ----------------------------------------------------------------------------
# small helpers
# ----------------------------------------------------------------------------

def _ln(x, g, b, eps):
    mu = jnp.mean(x, axis=-1, keepdims=True)
    xc = x - mu
    var = jnp.mean(xc * xc, axis=-1, keepdims=True)
    return xc * lax.rsqrt(var + eps) * g + b


def _mha(q, k, v, n_heads):
    """Multi-head attention core, batched over the batch block.

    q: (Bt, Lq, D), k/v: (Bt, S, D); the 1/sqrt(E) scale is already folded into
    q via the Q-projection weights.  Per head: one batched dot_general for the
    scores (contracting the head dim -> no k.T) and one for P@V; per-head
    outputs are concatenated once along lanes so the caller can do a single
    (M, D) x (D, D) output projection.
    """
    Bt, Lq, D = q.shape
    E = D // n_heads
    outs = []
    for h in range(n_heads):          # static loop; lane slices stay contiguous
        sl = slice(h * E, (h + 1) * E)
        qh, kh, vh = q[..., sl], k[..., sl], v[..., sl]
        s = jnp.einsum("bqe,bke->bqk", qh, kh, preferred_element_type=jnp.float32)
        m = jnp.max(s, axis=-1, keepdims=True)
        p = jnp.exp(s - m)
        p = p * pl.reciprocal(jnp.sum(p, axis=-1, keepdims=True), approx=True)
        outs.append(jnp.einsum("bqk,bke->bqe", p, vh,
                               preferred_element_type=jnp.float32))
    return jnp.concatenate(outs, axis=-1)           # (Bt, Lq, D)


# packed row layout of the per-layer (10, D) vector bundle
_BO_S, _LN1G, _LN1B, _BQ_C, _BO_C, _LN2G, _LN2B, _B2, _LN3G, _LN3B = range(10)


# ----------------------------------------------------------------------------
# Fused per-layer kernel: self-attn + LN1 + cross-attn + LN2 + splice + FFN + LN3
# ----------------------------------------------------------------------------

def _layer_kernel(x_ref, cross_ref,
                  wqkv_ref, wo_s_ref, wq_c_ref, wkv_c_ref, wo_c_ref,
                  w1_ref, w2_ref, bqkv_ref, bkv_c_ref, b1_ref, vecd_ref,
                  o_ref, xs_ref, *, n_heads, eps):
    x = x_ref[...].astype(jnp.float32)          # (Bt, Lx, D)
    cr = cross_ref[...].astype(jnp.float32)     # (Bt, S,  D)
    Bt, Lx, D = x.shape
    S = cr.shape[1]

    vec = vecd_ref[...].astype(jnp.float32)     # (10, D) packed bias / LN vectors

    def row(i):
        return vec[i:i + 1, :]                  # (1, D)

    # ---- self attention: fused QKV projection (single matmul, N = 3D) ----
    xf = x.reshape(Bt * Lx, D)
    qkv = jnp.dot(xf, wqkv_ref[...], preferred_element_type=jnp.float32) + bqkv_ref[...]
    q = qkv[:, :D].reshape(Bt, Lx, D)
    k = qkv[:, D:2 * D].reshape(Bt, Lx, D)
    v = qkv[:, 2 * D:].reshape(Bt, Lx, D)
    attn = _mha(q, k, v, n_heads).reshape(Bt * Lx, D)
    attn = jnp.dot(attn, wo_s_ref[...], preferred_element_type=jnp.float32) + row(_BO_S)

    # residual + LayerNorm1 (fused)
    x1 = _ln(xf + attn, row(_LN1G), row(_LN1B), eps)          # (Bt*Lx, D)
    x1_3 = x1.reshape(Bt, Lx, D)

    # ---- cross attention on the global (last) token, fused KV projection ----
    glb = x1_3[:, Lx - 1:Lx, :].reshape(Bt, D)
    qg = jnp.dot(glb, wq_c_ref[...], preferred_element_type=jnp.float32) + row(_BQ_C)
    kv = jnp.dot(cr.reshape(Bt * S, D), wkv_c_ref[...],
                 preferred_element_type=jnp.float32) + bkv_c_ref[...]
    kc = kv[:, :D].reshape(Bt, S, D)
    vc = kv[:, D:].reshape(Bt, S, D)
    ac = _mha(qg.reshape(Bt, 1, D), kc, vc, n_heads).reshape(Bt, D)
    ac = jnp.dot(ac, wo_c_ref[...], preferred_element_type=jnp.float32) + row(_BO_C)
    glb2 = _ln(glb + ac, row(_LN2G), row(_LN2B), eps)          # (Bt, D)

    # splice refreshed global token: two plain stores into VMEM scratch
    # (no iota / compare / select, no HBM round trip)
    xs_ref[...] = x1_3
    xs_ref[:, Lx - 1:Lx, :] = glb2.reshape(Bt, 1, D)
    xsp = xs_ref[...].reshape(Bt * Lx, D)

    # ---- position-wise FFN + residual + LayerNorm3 (d_ff stays in VMEM) ----
    h = jnp.dot(xsp, w1_ref[...], preferred_element_type=jnp.float32) + b1_ref[...]
    h = jnp.maximum(h, 0.0)
    y = jnp.dot(h, w2_ref[...], preferred_element_type=jnp.float32) + row(_B2)
    out = _ln(xsp + y, row(_LN3G), row(_LN3B), eps)
    o_ref[...] = out.reshape(Bt, Lx, D).astype(o_ref.dtype)


def _pick_batch_tile(B, Lx, S, D, F, n_heads, budget=_VMEM_BUDGET):
    """Largest batch block fitting a VMEM budget (f32 planning, v7x-safe)."""
    fixed = 4 * (8 * D * D + 2 * D * F + 8 * D + 2 * F)                # weights
    per = 4 * (12 * Lx * D + 8 * S * D + 2 * Lx * F                    # acts + bufs
               + n_heads * Lx * max(Lx, S))                            # scores
    bt = max(1, (budget - fixed) // max(per, 1))
    bt = int(min(bt, B))
    while bt > 1 and B % bt != 0:     # prefer a divisor of B (no padded tail work)
        bt -= 1
    return bt


def layer_block_pallas(x, cross, lp, n_heads, eps=1e-5):
    B, Lx, D = x.shape
    S = cross.shape[1]
    F = lp["w1"].shape[1]
    Bt = _pick_batch_tile(B, Lx, S, D, F, n_heads)

    weights = [lp["wqkv"], lp["wo_s"], lp["wq_c"], lp["wkv_c"], lp["wo_c"],
               lp["w1"], lp["w2"], lp["bqkv"], lp["bkv_c"], lp["b1"], lp["vecd"]]

    def full(a):
        return pl.BlockSpec(a.shape, lambda b, z=(0,) * a.ndim: z)

    return pl.pallas_call(
        partial(_layer_kernel, n_heads=n_heads, eps=eps),
        out_shape=jax.ShapeDtypeStruct((B, Lx, D), x.dtype),
        grid=(pl.cdiv(B, Bt),),
        in_specs=[pl.BlockSpec((Bt, Lx, D), lambda b: (b, 0, 0)),
                  pl.BlockSpec((Bt, S, D), lambda b: (b, 0, 0))]
                 + [full(w) for w in weights],
        out_specs=pl.BlockSpec((Bt, Lx, D), lambda b: (b, 0, 0)),
        scratch_shapes=[pltpu.VMEM((Bt, Lx, D), jnp.float32)],
        compiler_params=pltpu.CompilerParams(
            dimension_semantics=("parallel",),
            vmem_limit_bytes=_VMEM_LIMIT),
    )(x, cross, *weights)


# ----------------------------------------------------------------------------
# Fused tail kernel: final LayerNorm + projection (either optional), row-tiled
# ----------------------------------------------------------------------------

def _pick_tile_m(M, d_in, d_out, budget=_VMEM_BUDGET):
    for t in (1024, 512, 256, 128, 64, 32, 16, 8):   # multiples of 8 (sublane rule)
        if t > M:
            continue
        need = 4 * (2 * t * d_in + 2 * t * d_out + d_in * d_out
                    + t * max(d_in, d_out) + 2 * (d_in + d_out))
        if need <= budget:
            return t
    return M   # tiny M: single full block


def tail_pallas(xf, norm, proj, eps=1e-5):
    if norm is None and proj is None:
        return xf
    M, D = xf.shape
    N = proj["w"].shape[1] if proj is not None else D
    tm = _pick_tile_m(M, D, N)

    inputs = [xf]
    in_specs = [pl.BlockSpec((tm, D), lambda i: (i, 0))]
    if norm is not None:
        inputs += [norm["g"].reshape(1, D), norm["b"].reshape(1, D)]
        in_specs += [pl.BlockSpec((1, D), lambda i: (0, 0)),
                     pl.BlockSpec((1, D), lambda i: (0, 0))]
    if proj is not None:
        inputs += [proj["w"], proj["b"].reshape(1, N)]
        in_specs += [pl.BlockSpec((D, N), lambda i: (0, 0)),
                     pl.BlockSpec((1, N), lambda i: (0, 0))]

    def kern(*refs):
        x = refs[0][...].astype(jnp.float32)
        o_ref = refs[-1]
        i = 1
        if norm is not None:
            x = _ln(x, refs[i][...], refs[i + 1][...], eps)
            i += 2
        if proj is not None:
            x = jnp.dot(x, refs[i][...], preferred_element_type=jnp.float32) + refs[i + 1][...]
        o_ref[...] = x.astype(o_ref.dtype)

    return pl.pallas_call(
        kern,
        out_shape=jax.ShapeDtypeStruct((M, N), xf.dtype),
        grid=(pl.cdiv(M, tm),),
        in_specs=in_specs,
        out_specs=pl.BlockSpec((tm, N), lambda i: (i, 0)),
        compiler_params=pltpu.CompilerParams(
            dimension_semantics=("parallel",),
            vmem_limit_bytes=_VMEM_LIMIT),
    )(*inputs)


# ----------------------------------------------------------------------------
# Parameter prep (fold softmax scale into Q weights, pack tiny vectors)
# ----------------------------------------------------------------------------

def prepare_params(params, n_heads):
    layers = []
    for p in params["layers"]:
        D = p["wo_s"].shape[0]
        E = D // n_heads
        scale = 1.0 / math.sqrt(E)
        wqkv = p["wqkv"].at[:, :D].multiply(scale)    # fold 1/sqrt(E) into Q columns
        bqkv = p["bqkv"].at[:D].multiply(scale)
        vecd = jnp.stack([p["bo_s"], p["ln1_g"], p["ln1_b"],
                          p["bq_c"] * scale, p["bo_c"], p["ln2_g"], p["ln2_b"],
                          p["b2"], p["ln3_g"], p["ln3_b"]], axis=0)   # (10, D)
        layers.append({
            "wqkv": wqkv, "wo_s": p["wo_s"], "wq_c": p["wq_c"] * scale,
            "wkv_c": p["wkv_c"], "wo_c": p["wo_c"], "w1": p["w1"], "w2": p["w2"],
            "bqkv": bqkv.reshape(1, -1), "bkv_c": p["bkv_c"].reshape(1, -1),
            "b1": p["b1"].reshape(1, -1), "vecd": vecd,
        })
    return {"layers": layers, "norm": params.get("norm"), "proj": params.get("proj")}


# ----------------------------------------------------------------------------
# Encoder forward
# ----------------------------------------------------------------------------

def encoder_forward(prepped, x, cross, n_heads):
    # TODO(synk): x_mask / cross_mask / tau / delta (None in TimeXer's default
    # FullAttention configuration) are not supported.
    for lp in prepped["layers"]:
        x = layer_block_pallas(x, cross, lp, n_heads)
    B, L, D = x.shape
    y = tail_pallas(x.reshape(B * L, D), prepped.get("norm"), prepped.get("proj"))
    return y.reshape(B, L, -1)


# ----------------------------------------------------------------------------
# Pure-JAX reference (same math as the PyTorch module) for a sanity check
# ----------------------------------------------------------------------------

def _ln_ref(x, g, b, eps=1e-5):
    mu = jnp.mean(x, axis=-1, keepdims=True)
    var = jnp.mean((x - mu) ** 2, axis=-1, keepdims=True)
    return (x - mu) * lax.rsqrt(var + eps) * g + b


def _mha_ref(q_in, k_in, v_in, wq, bq, wk, bk, wv, bv, wo, bo, n_heads):
    Bq, Lq, D = q_in.shape
    _, S, _ = k_in.shape
    E = D // n_heads
    q = (q_in @ wq + bq).reshape(Bq, Lq, n_heads, E)
    k = (k_in @ wk + bk).reshape(Bq, S, n_heads, E)
    v = (v_in @ wv + bv).reshape(Bq, S, n_heads, E)
    s = jnp.einsum("blhe,bshe->bhls", q, k) / math.sqrt(E)
    a = jax.nn.softmax(s, axis=-1)
    o = jnp.einsum("bhls,bshe->blhe", a, v).reshape(Bq, Lq, D)
    return o @ wo + bo


def _encoder_layer_ref(p, x, cross, n_heads):
    D = x.shape[-1]
    wq, wk, wv = p["wqkv"][:, :D], p["wqkv"][:, D:2 * D], p["wqkv"][:, 2 * D:]
    bq, bk, bv = p["bqkv"][:D], p["bqkv"][D:2 * D], p["bqkv"][2 * D:]
    x = x + _mha_ref(x, x, x, wq, bq, wk, bk, wv, bv, p["wo_s"], p["bo_s"], n_heads)
    x = _ln_ref(x, p["ln1_g"], p["ln1_b"])
    glb = x[:, -1:, :]
    wkc, wvc = p["wkv_c"][:, :D], p["wkv_c"][:, D:]
    bkc, bvc = p["bkv_c"][:D], p["bkv_c"][D:]
    ga = _mha_ref(glb, cross, cross, p["wq_c"], p["bq_c"], wkc, bkc, wvc, bvc,
                  p["wo_c"], p["bo_c"], n_heads)
    glb = _ln_ref(glb + ga, p["ln2_g"], p["ln2_b"])
    x = jnp.concatenate([x[:, :-1, :], glb], axis=1)
    y = jnp.maximum(x @ p["w1"] + p["b1"], 0.0) @ p["w2"] + p["b2"]
    return _ln_ref(x + y, p["ln3_g"], p["ln3_b"])


def encoder_ref(params, x, cross, n_heads):
    for lp in params["layers"]:
        x = _encoder_layer_ref(lp, x, cross, n_heads)
    if params.get("norm") is not None:
        x = _ln_ref(x, params["norm"]["g"], params["norm"]["b"])
    if params.get("proj") is not None:
        x = x @ params["proj"]["w"] + params["proj"]["b"]
    return x


# ----------------------------------------------------------------------------
# Parameter construction (deterministic, synthetic)
# ----------------------------------------------------------------------------

def make_layer_params(key, d_model, d_ff, dtype=jnp.float32):
    ks = jax.random.split(key, 12)
    w = lambda k, s: jax.random.normal(k, s, dtype) * 0.02
    return {
        "wqkv": w(ks[0], (d_model, 3 * d_model)), "bqkv": w(ks[1], (3 * d_model,)),
        "wo_s": w(ks[2], (d_model, d_model)),     "bo_s": w(ks[3], (d_model,)),
        "ln1_g": jnp.ones((d_model,), dtype),     "ln1_b": jnp.zeros((d_model,), dtype),
        "wq_c": w(ks[4], (d_model, d_model)),     "bq_c": w(ks[5], (d_model,)),
        "wkv_c": w(ks[6], (d_model, 2 * d_model)),"bkv_c": w(ks[7], (2 * d_model,)),
        "wo_c": w(ks[8], (d_model, d_model)),     "bo_c": w(ks[9], (d_model,)),
        "ln2_g": jnp.ones((d_model,), dtype),     "ln2_b": jnp.zeros((d_model,), dtype),
        "w1": w(ks[10], (d_model, d_ff)),         "b1": jnp.zeros((d_ff,), dtype),
        "w2": w(ks[11], (d_ff, d_model)),         "b2": jnp.zeros((d_model,), dtype),
        "ln3_g": jnp.ones((d_model,), dtype),     "ln3_b": jnp.zeros((d_model,), dtype),
    }


def make_params(key, d_model, d_ff, d_out, n_layers, dtype=jnp.float32):
    keys = jax.random.split(key, n_layers + 2)
    layers = [make_layer_params(keys[i], d_model, d_ff, dtype) for i in range(n_layers)]
    return {
        "layers": layers,
        "norm": {"g": jnp.ones((d_model,), dtype), "b": jnp.zeros((d_model,), dtype)},
        "proj": {"w": jax.random.normal(keys[-2], (d_model, d_out), dtype) * 0.02,
                 "b": jax.random.normal(keys[-1], (d_out,), dtype) * 0.02},
    }


# ----------------------------------------------------------------------------
# Main
# ----------------------------------------------------------------------------

if __name__ == "__main__":
    B, Lx, S, D, H, D_FF, D_OUT, N_LAYERS = 2, 8, 8, 32, 4, 64, 16, 2

    key = jax.random.PRNGKey(0)
    kx, kc, kp = jax.random.split(key, 3)
    x = jax.random.normal(kx, (B, Lx, D), jnp.float32)
    cross = jax.random.normal(kc, (B, S, D), jnp.float32)
    params = make_params(kp, D, D_FF, D_OUT, N_LAYERS)
    prepped = prepare_params(params, H)

    fwd = jax.jit(partial(encoder_forward, n_heads=H))
    out = jax.block_until_ready(fwd(prepped, x, cross))

    ref = encoder_ref(params, x, cross, H)
    assert out.shape == (B, Lx, D_OUT)
    err = float(jnp.max(jnp.abs(out - ref)))
    # slack for the EUP approximate reciprocal in the softmax denominator
    assert err < 5e-3, f"Pallas result mismatch vs reference (max |err| = {err})"

    print("KERNEL_OK")
</pallas_src>

<mosaic_0001>
module attributes {stable_mosaic.version = 11 : i64} {
  func.func @_layer_kernel(%arg0: i32, %arg1: memref<2x8x32xf32, #tpu.memory_space<vmem>>, %arg2: memref<2x8x32xf32, #tpu.memory_space<vmem>>, %arg3: memref<32x96xf32, #tpu.memory_space<vmem>>, %arg4: memref<32x32xf32, #tpu.memory_space<vmem>>, %arg5: memref<32x32xf32, #tpu.memory_space<vmem>>, %arg6: memref<32x64xf32, #tpu.memory_space<vmem>>, %arg7: memref<32x32xf32, #tpu.memory_space<vmem>>, %arg8: memref<32x64xf32, #tpu.memory_space<vmem>>, %arg9: memref<64x32xf32, #tpu.memory_space<vmem>>, %arg10: memref<1x96xf32, #tpu.memory_space<vmem>>, %arg11: memref<1x64xf32, #tpu.memory_space<vmem>>, %arg12: memref<1x64xf32, #tpu.memory_space<vmem>>, %arg13: memref<10x32xf32, #tpu.memory_space<vmem>>, %arg14: memref<2x8x32xf32, #tpu.memory_space<vmem>>, %arg15: memref<2x8x32xf32, #tpu.memory_space<vmem>>) attributes {dimension_semantics = [#tpu.dimension_semantics<parallel>], iteration_bounds = array<i64: 1>, scalar_prefetch = 0 : i64, scratch_operands = 1 : i64, tpu.core_type = #tpu.core_type<tc>, window_params = [{transform_indices = @transform_0, window_bounds = array<i64: 2, 8, 32>}, {transform_indices = @transform_1, window_bounds = array<i64: 2, 8, 32>}, {pipeline_mode = #tpu.pipeline_mode<synchronous>, transform_indices = @transform_2, window_bounds = array<i64: 32, 96>}, {pipeline_mode = #tpu.pipeline_mode<synchronous>, transform_indices = @transform_3, window_bounds = array<i64: 32, 32>}, {pipeline_mode = #tpu.pipeline_mode<synchronous>, transform_indices = @transform_4, window_bounds = array<i64: 32, 32>}, {pipeline_mode = #tpu.pipeline_mode<synchronous>, transform_indices = @transform_5, window_bounds = array<i64: 32, 64>}, {pipeline_mode = #tpu.pipeline_mode<synchronous>, transform_indices = @transform_6, window_bounds = array<i64: 32, 32>}, {pipeline_mode = #tpu.pipeline_mode<synchronous>, transform_indices = @transform_7, window_bounds = array<i64: 32, 64>}, {pipeline_mode = #tpu.pipeline_mode<synchronous>, transform_indices = @transform_8, window_bounds = array<i64: 64, 32>}, {pipeline_mode = #tpu.pipeline_mode<synchronous>, transform_indices = @transform_9, window_bounds = array<i64: 1, 96>}, {pipeline_mode = #tpu.pipeline_mode<synchronous>, transform_indices = @transform_10, window_bounds = array<i64: 1, 64>}, {pipeline_mode = #tpu.pipeline_mode<synchronous>, transform_indices = @transform_11, window_bounds = array<i64: 1, 64>}, {pipeline_mode = #tpu.pipeline_mode<synchronous>, transform_indices = @transform_12, window_bounds = array<i64: 10, 32>}, {transform_indices = @transform_13, window_bounds = array<i64: 2, 8, 32>}]} {
    %c0 = arith.constant 0 : index
    %c0_0 = arith.constant 0 : index
    %c0_1 = arith.constant 0 : index
    %0 = vector.load %arg1[%c0, %c0_0, %c0_1] : memref<2x8x32xf32, #tpu.memory_space<vmem>>, vector<2x8x32xf32>
    %c0_2 = arith.constant 0 : index
    %c0_3 = arith.constant 0 : index
    %c0_4 = arith.constant 0 : index
    %1 = vector.load %arg2[%c0_2, %c0_3, %c0_4] : memref<2x8x32xf32, #tpu.memory_space<vmem>>, vector<2x8x32xf32>
    %c0_5 = arith.constant 0 : index
    %c0_6 = arith.constant 0 : index
    %2 = vector.load %arg13[%c0_5, %c0_6] : memref<10x32xf32, #tpu.memory_space<vmem>>, vector<10x32xf32>
    %3 = vector.shape_cast %0 : vector<2x8x32xf32> to vector<16x32xf32>
    %c0_7 = arith.constant 0 : index
    %c0_8 = arith.constant 0 : index
    %4 = vector.load %arg3[%c0_7, %c0_8] : memref<32x96xf32, #tpu.memory_space<vmem>>, vector<32x96xf32>
    %cst = arith.constant dense<0.000000e+00> : vector<16x96xf32>
    %5 = tpu.matmul %3, %4, %cst {dimension_numbers = #tpu.dot_dimension_numbers<[1], [0], [0], [1], [0, 0, 1, 1], [], []>} : vector<16x32xf32>, vector<32x96xf32>, vector<16x96xf32> -> vector<16x96xf32>
    %c0_9 = arith.constant 0 : index
    %c0_10 = arith.constant 0 : index
    %6 = vector.load %arg10[%c0_9, %c0_10] : memref<1x96xf32, #tpu.memory_space<vmem>>, vector<1x96xf32>
    %7 = vector.broadcast %6 : vector<1x96xf32> to vector<16x96xf32>
    %8 = arith.addf %5, %7 : vector<16x96xf32>
    %9 = vector.extract_strided_slice %8 {offsets = [0, 0], sizes = [16, 32], strides = [1, 1]} : vector<16x96xf32> to vector<16x32xf32>
    %10 = vector.shape_cast %9 : vector<16x32xf32> to vector<2x8x32xf32>
    %11 = vector.extract_strided_slice %8 {offsets = [0, 32], sizes = [16, 32], strides = [1, 1]} : vector<16x96xf32> to vector<16x32xf32>
    %12 = vector.shape_cast %11 : vector<16x32xf32> to vector<2x8x32xf32>
    %13 = vector.extract_strided_slice %8 {offsets = [0, 64], sizes = [16, 32], strides = [1, 1]} : vector<16x96xf32> to vector<16x32xf32>
    %14 = vector.shape_cast %13 : vector<16x32xf32> to vector<2x8x32xf32>
    %15 = vector.extract_strided_slice %10 {offsets = [0, 0, 0], sizes = [2, 8, 8], strides = [1, 1, 1]} : vector<2x8x32xf32> to vector<2x8x8xf32>
    %16 = vector.extract_strided_slice %12 {offsets = [0, 0, 0], sizes = [2, 8, 8], strides = [1, 1, 1]} : vector<2x8x32xf32> to vector<2x8x8xf32>
    %17 = vector.extract_strided_slice %14 {offsets = [0, 0, 0], sizes = [2, 8, 8], strides = [1, 1, 1]} : vector<2x8x32xf32> to vector<2x8x8xf32>
    "tpu.trace_start"() <{level = 10 : i32, message = "bqe,bke->bqk"}> : () -> ()
    %cst_11 = arith.constant dense<0.000000e+00> : vector<2x8x8xf32>
    %18 = tpu.matmul %15, %16, %cst_11 {dimension_numbers = #tpu.dot_dimension_numbers<[2], [2], [1], [1], [0, 0, 0, 1, 1, 1], [0], [0]>} : vector<2x8x8xf32>, vector<2x8x8xf32>, vector<2x8x8xf32> -> vector<2x8x8xf32>
    "tpu.trace_stop"() : () -> ()
    %cst_12 = arith.constant dense<0xFF800000> : vector<2x8xf32>
    %19 = vector.multi_reduction <maximumf>, %18, %cst_12 [2] : vector<2x8x8xf32> to vector<2x8xf32>
    %20 = vector.shape_cast %19 : vector<2x8xf32> to vector<2x8x1xf32>
    %21 = vector.broadcast %20 : vector<2x8x1xf32> to vector<2x8x8xf32>
    %22 = arith.subf %18, %21 : vector<2x8x8xf32>
    %23 = math.exp %22 : vector<2x8x8xf32>
    %cst_13 = arith.constant dense<0.000000e+00> : vector<2x8xf32>
    %24 = vector.multi_reduction <add>, %23, %cst_13 [2] : vector<2x8x8xf32> to vector<2x8xf32>
    %25 = vector.shape_cast %24 : vector<2x8xf32> to vector<2x8x1xf32>
    %26 = tpu.reciprocal %25 {approx = true} : vector<2x8x1xf32> -> vector<2x8x1xf32>
    %27 = vector.broadcast %26 : vector<2x8x1xf32> to vector<2x8x8xf32>
    %28 = arith.mulf %23, %27 : vector<2x8x8xf32>
    "tpu.trace_start"() <{level = 10 : i32, message = "bqk,bke->bqe"}> : () -> ()
    %cst_14 = arith.constant dense<0.000000e+00> : vector<2x8x8xf32>
    %29 = tpu.matmul %28, %17, %cst_14 {dimension_numbers = #tpu.dot_dimension_numbers<[2], [1], [1], [2], [0, 0, 0, 1, 1, 2], [0], [0]>} : vector<2x8x8xf32>, vector<2x8x8xf32>, vector<2x8x8xf32> -> vector<2x8x8xf32>
    "tpu.trace_stop"() : () -> ()
    %30 = vector.extract_strided_slice %10 {offsets = [0, 0, 8], sizes = [2, 8, 8], strides = [1, 1, 1]} : vector<2x8x32xf32> to vector<2x8x8xf32>
    %31 = vector.extract_strided_slice %12 {offsets = [0, 0, 8], sizes = [2, 8, 8], strides = [1, 1, 1]} : vector<2x8x32xf32> to vector<2x8x8xf32>
    %32 = vector.extract_strided_slice %14 {offsets = [0, 0, 8], sizes = [2, 8, 8], strides = [1, 1, 1]} : vector<2x8x32xf32> to vector<2x8x8xf32>
    "tpu.trace_start"() <{level = 10 : i32, message = "bqe,bke->bqk"}> : () -> ()
    %cst_15 = arith.constant dense<0.000000e+00> : vector<2x8x8xf32>
    %33 = tpu.matmul %30, %31, %cst_15 {dimension_numbers = #tpu.dot_dimension_numbers<[2], [2], [1], [1], [0, 0, 0, 1, 1, 1], [0], [0]>} : vector<2x8x8xf32>, vector<2x8x8xf32>, vector<2x8x8xf32> -> vector<2x8x8xf32>
    "tpu.trace_stop"() : () -> ()
    %cst_16 = arith.constant dense<0xFF800000> : vector<2x8xf32>
    %34 = vector.multi_reduction <maximumf>, %33, %cst_16 [2] : vector<2x8x8xf32> to vector<2x8xf32>
    %35 = vector.shape_cast %34 : vector<2x8xf32> to vector<2x8x1xf32>
    %36 = vector.broadcast %35 : vector<2x8x1xf32> to vector<2x8x8xf32>
    %37 = arith.subf %33, %36 : vector<2x8x8xf32>
    %38 = math.exp %37 : vector<2x8x8xf32>
    %cst_17 = arith.constant dense<0.000000e+00> : vector<2x8xf32>
    %39 = vector.multi_reduction <add>, %38, %cst_17 [2] : vector<2x8x8xf32> to vector<2x8xf32>
    %40 = vector.shape_cast %39 : vector<2x8xf32> to vector<2x8x1xf32>
    %41 = tpu.reciprocal %40 {approx = true} : vector<2x8x1xf32> -> vector<2x8x1xf32>
    %42 = vector.broadcast %41 : vector<2x8x1xf32> to vector<2x8x8xf32>
    %43 = arith.mulf %38, %42 : vector<2x8x8xf32>
    "tpu.trace_start"() <{level = 10 : i32, message = "bqk,bke->bqe"}> : () -> ()
    %cst_18 = arith.constant dense<0.000000e+00> : vector<2x8x8xf32>
    %44 = tpu.matmul %43, %32, %cst_18 {dimension_numbers = #tpu.dot_dimension_numbers<[2], [1], [1], [2], [0, 0, 0, 1, 1, 2], [0], [0]>} : vector<2x8x8xf32>, vector<2x8x8xf32>, vector<2x8x8xf32> -> vector<2x8x8xf32>
    "tpu.trace_stop"() : () -> ()
    %45 = vector.extract_strided_slice %10 {offsets = [0, 0, 16], sizes = [2, 8, 8], strides = [1, 1, 1]} : vector<2x8x32xf32> to vector<2x8x8xf32>
    %46 = vector.extract_strided_slice %12 {offsets = [0, 0, 16], sizes = [2, 8, 8], strides = [1, 1, 1]} : vector<2x8x32xf32> to vector<2x8x8xf32>
    %47 = vector.extract_strided_slice %14 {offsets = [0, 0, 16], sizes = [2, 8, 8], strides = [1, 1, 1]} : vector<2x8x32xf32> to vector<2x8x8xf32>
    "tpu.trace_start"() <{level = 10 : i32, message = "bqe,bke->bqk"}> : () -> ()
    %cst_19 = arith.constant dense<0.000000e+00> : vector<2x8x8xf32>
    %48 = tpu.matmul %45, %46, %cst_19 {dimension_numbers = #tpu.dot_dimension_numbers<[2], [2], [1], [1], [0, 0, 0, 1, 1, 1], [0], [0]>} : vector<2x8x8xf32>, vector<2x8x8xf32>, vector<2x8x8xf32> -> vector<2x8x8xf32>
    "tpu.trace_stop"() : () -> ()
    %cst_20 = arith.constant dense<0xFF800000> : vector<2x8xf32>
    %49 = vector.multi_reduction <maximumf>, %48, %cst_20 [2] : vector<2x8x8xf32> to vector<2x8xf32>
    %50 = vector.shape_cast %49 : vector<2x8xf32> to vector<2x8x1xf32>
    %51 = vector.broadcast %50 : vector<2x8x1xf32> to vector<2x8x8xf32>
    %52 = arith.subf %48, %51 : vector<2x8x8xf32>
    %53 = math.exp %52 : vector<2x8x8xf32>
    %cst_21 = arith.constant dense<0.000000e+00> : vector<2x8xf32>
    %54 = vector.multi_reduction <add>, %53, %cst_21 [2] : vector<2x8x8xf32> to vector<2x8xf32>
    %55 = vector.shape_cast %54 : vector<2x8xf32> to vector<2x8x1xf32>
    %56 = tpu.reciprocal %55 {approx = true} : vector<2x8x1xf32> -> vector<2x8x1xf32>
    %57 = vector.broadcast %56 : vector<2x8x1xf32> to vector<2x8x8xf32>
    %58 = arith.mulf %53, %57 : vector<2x8x8xf32>
    "tpu.trace_start"() <{level = 10 : i32, message = "bqk,bke->bqe"}> : () -> ()
    %cst_22 = arith.constant dense<0.000000e+00> : vector<2x8x8xf32>
    %59 = tpu.matmul %58, %47, %cst_22 {dimension_numbers = #tpu.dot_dimension_numbers<[2], [1], [1], [2], [0, 0, 0, 1, 1, 2], [0], [0]>} : vector<2x8x8xf32>, vector<2x8x8xf32>, vector<2x8x8xf32> -> vector<2x8x8xf32>
    "tpu.trace_stop"() : () -> ()
    %60 = vector.extract_strided_slice %10 {offsets = [0, 0, 24], sizes = [2, 8, 8], strides = [1, 1, 1]} : vector<2x8x32xf32> to vector<2x8x8xf32>
    %61 = vector.extract_strided_slice %12 {offsets = [0, 0, 24], sizes = [2, 8, 8], strides = [1, 1, 1]} : vector<2x8x32xf32> to vector<2x8x8xf32>
    %62 = vector.extract_strided_slice %14 {offsets = [0, 0, 24], sizes = [2, 8, 8], strides = [1, 1, 1]} : vector<2x8x32xf32> to vector<2x8x8xf32>
    "tpu.trace_start"() <{level = 10 : i32, message = "bqe,bke->bqk"}> : () -> ()
    %cst_23 = arith.constant dense<0.000000e+00> : vector<2x8x8xf32>
    %63 = tpu.matmul %60, %61, %cst_23 {dimension_numbers = #tpu.dot_dimension_numbers<[2], [2], [1], [1], [0, 0, 0, 1, 1, 1], [0], [0]>} : vector<2x8x8xf32>, vector<2x8x8xf32>, vector<2x8x8xf32> -> vector<2x8x8xf32>
    "tpu.trace_stop"() : () -> ()
    %cst_24 = arith.constant dense<0xFF800000> : vector<2x8xf32>
    %64 = vector.multi_reduction <maximumf>, %63, %cst_24 [2] : vector<2x8x8xf32> to vector<2x8xf32>
    %65 = vector.shape_cast %64 : vector<2x8xf32> to vector<2x8x1xf32>
    %66 = vector.broadcast %65 : vector<2x8x1xf32> to vector<2x8x8xf32>
    %67 = arith.subf %63, %66 : vector<2x8x8xf32>
    %68 = math.exp %67 : vector<2x8x8xf32>
    %cst_25 = arith.constant dense<0.000000e+00> : vector<2x8xf32>
    %69 = vector.multi_reduction <add>, %68, %cst_25 [2] : vector<2x8x8xf32> to vector<2x8xf32>
    %70 = vector.shape_cast %69 : vector<2x8xf32> to vector<2x8x1xf32>
    %71 = tpu.reciprocal %70 {approx = true} : vector<2x8x1xf32> -> vector<2x8x1xf32>
    %72 = vector.broadcast %71 : vector<2x8x1xf32> to vector<2x8x8xf32>
    %73 = arith.mulf %68, %72 : vector<2x8x8xf32>
    "tpu.trace_start"() <{level = 10 : i32, message = "bqk,bke->bqe"}> : () -> ()
    %cst_26 = arith.constant dense<0.000000e+00> : vector<2x8x8xf32>
    %74 = tpu.matmul %73, %62, %cst_26 {dimension_numbers = #tpu.dot_dimension_numbers<[2], [1], [1], [2], [0, 0, 0, 1, 1, 2], [0], [0]>} : vector<2x8x8xf32>, vector<2x8x8xf32>, vector<2x8x8xf32> -> vector<2x8x8xf32>
    "tpu.trace_stop"() : () -> ()
    %75 = tpu.concatenate %29, %44, %59, %74 in 2 : vector<2x8x8xf32>, vector<2x8x8xf32>, vector<2x8x8xf32>, vector<2x8x8xf32> -> vector<2x8x32xf32>
    %76 = vector.shape_cast %75 : vector<2x8x32xf32> to vector<16x32xf32>
    %c0_27 = arith.constant 0 : index
    %c0_28 = arith.constant 0 : index
    %77 = vector.load %arg4[%c0_27, %c0_28] : memref<32x32xf32, #tpu.memory_space<vmem>>, vector<32x32xf32>
    %cst_29 = arith.constant dense<0.000000e+00> : vector<16x32xf32>
    %78 = tpu.matmul %76, %77, %cst_29 {dimension_numbers = #tpu.dot_dimension_numbers<[1], [0], [0], [1], [0, 0, 1, 1], [], []>} : vector<16x32xf32>, vector<32x32xf32>, vector<16x32xf32> -> vector<16x32xf32>
    %79 = vector.extract_strided_slice %2 {offsets = [0, 0], sizes = [1, 32], strides = [1, 1]} : vector<10x32xf32> to vector<1x32xf32>
    %80 = vector.broadcast %79 : vector<1x32xf32> to vector<16x32xf32>
    %81 = arith.addf %78, %80 : vector<16x32xf32>
    %82 = arith.addf %3, %81 : vector<16x32xf32>
    %83 = vector.extract_strided_slice %2 {offsets = [1, 0], sizes = [1, 32], strides = [1, 1]} : vector<10x32xf32> to vector<1x32xf32>
    %84 = vector.extract_strided_slice %2 {offsets = [2, 0], sizes = [1, 32], strides = [1, 1]} : vector<10x32xf32> to vector<1x32xf32>
    %cst_30 = arith.constant dense<0.000000e+00> : vector<16xf32>
    %85 = vector.multi_reduction <add>, %82, %cst_30 [1] : vector<16x32xf32> to vector<16xf32>
    %86 = vector.shape_cast %85 : vector<16xf32> to vector<16x1xf32>
    %cst_31 = arith.constant 3.200000e+01 : f32
    %87 = vector.broadcast %cst_31 : f32 to vector<16x1xf32>
    %88 = arith.divf %86, %87 : vector<16x1xf32>
    %89 = vector.broadcast %88 : vector<16x1xf32> to vector<16x32xf32>
    %90 = arith.subf %82, %89 : vector<16x32xf32>
    %91 = arith.mulf %90, %90 : vector<16x32xf32>
    %cst_32 = arith.constant dense<0.000000e+00> : vector<16xf32>
    %92 = vector.multi_reduction <add>, %91, %cst_32 [1] : vector<16x32xf32> to vector<16xf32>
    %93 = vector.shape_cast %92 : vector<16xf32> to vector<16x1xf32>
    %cst_33 = arith.constant 3.200000e+01 : f32
    %94 = vector.broadcast %cst_33 : f32 to vector<16x1xf32>
    %95 = arith.divf %93, %94 : vector<16x1xf32>
    %cst_34 = arith.constant 9.99999974E-6 : f32
    %96 = vector.broadcast %cst_34 : f32 to vector<16x1xf32>
    %97 = arith.addf %95, %96 : vector<16x1xf32>
    %98 = math.rsqrt %97 : vector<16x1xf32>
    %99 = vector.broadcast %98 : vector<16x1xf32> to vector<16x32xf32>
    %100 = arith.mulf %90, %99 : vector<16x32xf32>
    %101 = vector.broadcast %83 : vector<1x32xf32> to vector<16x32xf32>
    %102 = arith.mulf %100, %101 : vector<16x32xf32>
    %103 = vector.broadcast %84 : vector<1x32xf32> to vector<16x32xf32>
    %104 = arith.addf %102, %103 : vector<16x32xf32>
    %105 = vector.shape_cast %104 : vector<16x32xf32> to vector<2x8x32xf32>
    %106 = vector.extract_strided_slice %105 {offsets = [0, 7, 0], sizes = [2, 1, 32], strides = [1, 1, 1]} : vector<2x8x32xf32> to vector<2x1x32xf32>
    %107 = vector.shape_cast %106 : vector<2x1x32xf32> to vector<2x32xf32>
    %c0_35 = arith.constant 0 : index
    %c0_36 = arith.constant 0 : index
    %108 = vector.load %arg5[%c0_35, %c0_36] : memref<32x32xf32, #tpu.memory_space<vmem>>, vector<32x32xf32>
    %cst_37 = arith.constant dense<0.000000e+00> : vector<2x32xf32>
    %109 = tpu.matmul %107, %108, %cst_37 {dimension_numbers = #tpu.dot_dimension_numbers<[1], [0], [0], [1], [0, 0, 1, 1], [], []>} : vector<2x32xf32>, vector<32x32xf32>, vector<2x32xf32> -> vector<2x32xf32>
    %110 = vector.extract_strided_slice %2 {offsets = [3, 0], sizes = [1, 32], strides = [1, 1]} : vector<10x32xf32> to vector<1x32xf32>
    %111 = vector.broadcast %110 : vector<1x32xf32> to vector<2x32xf32>
    %112 = arith.addf %109, %111 : vector<2x32xf32>
    %113 = vector.shape_cast %1 : vector<2x8x32xf32> to vector<16x32xf32>
    %c0_38 = arith.constant 0 : index
    %c0_39 = arith.constant 0 : index
    %114 = vector.load %arg6[%c0_38, %c0_39] : memref<32x64xf32, #tpu.memory_space<vmem>>, vector<32x64xf32>
    %cst_40 = arith.constant dense<0.000000e+00> : vector<16x64xf32>
    %115 = tpu.matmul %113, %114, %cst_40 {dimension_numbers = #tpu.dot_dimension_numbers<[1], [0], [0], [1], [0, 0, 1, 1], [], []>} : vector<16x32xf32>, vector<32x64xf32>, vector<16x64xf32> -> vector<16x64xf32>
    %c0_41 = arith.constant 0 : index
    %c0_42 = arith.constant 0 : index
    %116 = vector.load %arg11[%c0_41, %c0_42] : memref<1x64xf32, #tpu.memory_space<vmem>>, vector<1x64xf32>
    %117 = vector.broadcast %116 : vector<1x64xf32> to vector<16x64xf32>
    %118 = arith.addf %115, %117 : vector<16x64xf32>
    %119 = vector.extract_strided_slice %118 {offsets = [0, 0], sizes = [16, 32], strides = [1, 1]} : vector<16x64xf32> to vector<16x32xf32>
    %120 = vector.shape_cast %119 : vector<16x32xf32> to vector<2x8x32xf32>
    %121 = vector.extract_strided_slice %118 {offsets = [0, 32], sizes = [16, 32], strides = [1, 1]} : vector<16x64xf32> to vector<16x32xf32>
    %122 = vector.shape_cast %121 : vector<16x32xf32> to vector<2x8x32xf32>
    %123 = vector.shape_cast %112 : vector<2x32xf32> to vector<2x1x32xf32>
    %124 = vector.extract_strided_slice %123 {offsets = [0, 0, 0], sizes = [2, 1, 8], strides = [1, 1, 1]} : vector<2x1x32xf32> to vector<2x1x8xf32>
    %125 = vector.extract_strided_slice %120 {offsets = [0, 0, 0], sizes = [2, 8, 8], strides = [1, 1, 1]} : vector<2x8x32xf32> to vector<2x8x8xf32>
    %126 = vector.extract_strided_slice %122 {offsets = [0, 0, 0], sizes = [2, 8, 8], strides = [1, 1, 1]} : vector<2x8x32xf32> to vector<2x8x8xf32>
    "tpu.trace_start"() <{level = 10 : i32, message = "bqe,bke->bqk"}> : () -> ()
    %cst_43 = arith.constant dense<0.000000e+00> : vector<2x1x8xf32>
    %127 = tpu.matmul %124, %125, %cst_43 {dimension_numbers = #tpu.dot_dimension_numbers<[2], [2], [1], [1], [0, 0, 0, 1, 1, 1], [0], [0]>} : vector<2x1x8xf32>, vector<2x8x8xf32>, vector<2x1x8xf32> -> vector<2x1x8xf32>
    "tpu.trace_stop"() : () -> ()
    %cst_44 = arith.constant dense<0xFF800000> : vector<2x1xf32>
    %128 = vector.multi_reduction <maximumf>, %127, %cst_44 [2] : vector<2x1x8xf32> to vector<2x1xf32>
    %129 = vector.shape_cast %128 : vector<2x1xf32> to vector<2x1x1xf32>
    %130 = vector.broadcast %129 : vector<2x1x1xf32> to vector<2x1x8xf32>
    %131 = arith.subf %127, %130 : vector<2x1x8xf32>
    %132 = math.exp %131 : vector<2x1x8xf32>
    %cst_45 = arith.constant dense<0.000000e+00> : vector<2x1xf32>
    %133 = vector.multi_reduction <add>, %132, %cst_45 [2] : vector<2x1x8xf32> to vector<2x1xf32>
    %134 = vector.shape_cast %133 : vector<2x1xf32> to vector<2x1x1xf32>
    %135 = tpu.reciprocal %134 {approx = true} : vector<2x1x1xf32> -> vector<2x1x1xf32>
    %136 = vector.broadcast %135 : vector<2x1x1xf32> to vector<2x1x8xf32>
    %137 = arith.mulf %132, %136 : vector<2x1x8xf32>
    "tpu.trace_start"() <{level = 10 : i32, message = "bqk,bke->bqe"}> : () -> ()
    %cst_46 = arith.constant dense<0.000000e+00> : vector<2x1x8xf32>
    %138 = tpu.matmul %137, %126, %cst_46 {dimension_numbers = #tpu.dot_dimension_numbers<[2], [1], [1], [2], [0, 0, 0, 1, 1, 2], [0], [0]>} : vector<2x1x8xf32>, vector<2x8x8xf32>, vector<2x1x8xf32> -> vector<2x1x8xf32>
    "tpu.trace_stop"() : () -> ()
    %139 = vector.extract_strided_slice %123 {offsets = [0, 0, 8], sizes = [2, 1, 8], strides = [1, 1, 1]} : vector<2x1x32xf32> to vector<2x1x8xf32>
    %140 = vector.extract_strided_slice %120 {offsets = [0, 0, 8], sizes = [2, 8, 8], strides = [1, 1, 1]} : vector<2x8x32xf32> to vector<2x8x8xf32>
    %141 = vector.extract_strided_slice %122 {offsets = [0, 0, 8], sizes = [2, 8, 8], strides = [1, 1, 1]} : vector<2x8x32xf32> to vector<2x8x8xf32>
    "tpu.trace_start"() <{level = 10 : i32, message = "bqe,bke->bqk"}> : () -> ()
    %cst_47 = arith.constant dense<0.000000e+00> : vector<2x1x8xf32>
    %142 = tpu.matmul %139, %140, %cst_47 {dimension_numbers = #tpu.dot_dimension_numbers<[2], [2], [1], [1], [0, 0, 0, 1, 1, 1], [0], [0]>} : vector<2x1x8xf32>, vector<2x8x8xf32>, vector<2x1x8xf32> -> vector<2x1x8xf32>
    "tpu.trace_stop"() : () -> ()
    %cst_48 = arith.constant dense<0xFF800000> : vector<2x1xf32>
    %143 = vector.multi_reduction <maximumf>, %142, %cst_48 [2] : vector<2x1x8xf32> to vector<2x1xf32>
    %144 = vector.shape_cast %143 : vector<2x1xf32> to vector<2x1x1xf32>
    %145 = vector.broadcast %144 : vector<2x1x1xf32> to vector<2x1x8xf32>
    %146 = arith.subf %142, %145 : vector<2x1x8xf32>
    %147 = math.exp %146 : vector<2x1x8xf32>
    %cst_49 = arith.constant dense<0.000000e+00> : vector<2x1xf32>
    %148 = vector.multi_reduction <add>, %147, %cst_49 [2] : vector<2x1x8xf32> to vector<2x1xf32>
    %149 = vector.shape_cast %148 : vector<2x1xf32> to vector<2x1x1xf32>
    %150 = tpu.reciprocal %149 {approx = true} : vector<2x1x1xf32> -> vector<2x1x1xf32>
    %151 = vector.broadcast %150 : vector<2x1x1xf32> to vector<2x1x8xf32>
    %152 = arith.mulf %147, %151 : vector<2x1x8xf32>
    "tpu.trace_start"() <{level = 10 : i32, message = "bqk,bke->bqe"}> : () -> ()
    %cst_50 = arith.constant dense<0.000000e+00> : vector<2x1x8xf32>
    %153 = tpu.matmul %152, %141, %cst_50 {dimension_numbers = #tpu.dot_dimension_numbers<[2], [1], [1], [2], [0, 0, 0, 1, 1, 2], [0], [0]>} : vector<2x1x8xf32>, vector<2x8x8xf32>, vector<2x1x8xf32> -> vector<2x1x8xf32>
    "tpu.trace_stop"() : () -> ()
    %154 = vector.extract_strided_slice %123 {offsets = [0, 0, 16], sizes = [2, 1, 8], strides = [1, 1, 1]} : vector<2x1x32xf32> to vector<2x1x8xf32>
    %155 = vector.extract_strided_slice %120 {offsets = [0, 0, 16], sizes = [2, 8, 8], strides = [1, 1, 1]} : vector<2x8x32xf32> to vector<2x8x8xf32>
    %156 = vector.extract_strided_slice %122 {offsets = [0, 0, 16], sizes = [2, 8, 8], strides = [1, 1, 1]} : vector<2x8x32xf32> to vector<2x8x8xf32>
    "tpu.trace_start"() <{level = 10 : i32, message = "bqe,bke->bqk"}> : () -> ()
    %cst_51 = arith.constant dense<0.000000e+00> : vector<2x1x8xf32>
    %157 = tpu.matmul %154, %155, %cst_51 {dimension_numbers = #tpu.dot_dimension_numbers<[2], [2], [1], [1], [0, 0, 0, 1, 1, 1], [0], [0]>} : vector<2x1x8xf32>, vector<2x8x8xf32>, vector<2x1x8xf32> -> vector<2x1x8xf32>
    "tpu.trace_stop"() : () -> ()
    %cst_52 = arith.constant dense<0xFF800000> : vector<2x1xf32>
    %158 = vector.multi_reduction <maximumf>, %157, %cst_52 [2] : vector<2x1x8xf32> to vector<2x1xf32>
    %159 = vector.shape_cast %158 : vector<2x1xf32> to vector<2x1x1xf32>
    %160 = vector.broadcast %159 : vector<2x1x1xf32> to vector<2x1x8xf32>
    %161 = arith.subf %157, %160 : vector<2x1x8xf32>
    %162 = math.exp %161 : vector<2x1x8xf32>
    %cst_53 = arith.constant dense<0.000000e+00> : vector<2x1xf32>
    %163 = vector.multi_reduction <add>, %162, %cst_53 [2] : vector<2x1x8xf32> to vector<2x1xf32>
    %164 = vector.shape_cast %163 : vector<2x1xf32> to vector<2x1x1xf32>
    %165 = tpu.reciprocal %164 {approx = true} : vector<2x1x1xf32> -> vector<2x1x1xf32>
    %166 = vector.broadcast %165 : vector<2x1x1xf32> to vector<2x1x8xf32>
    %167 = arith.mulf %162, %166 : vector<2x1x8xf32>
    "tpu.trace_start"() <{level = 10 : i32, message = "bqk,bke->bqe"}> : () -> ()
    %cst_54 = arith.constant dense<0.000000e+00> : vector<2x1x8xf32>
    %168 = tpu.matmul %167, %156, %cst_54 {dimension_numbers = #tpu.dot_dimension_numbers<[2], [1], [1], [2], [0, 0, 0, 1, 1, 2], [0], [0]>} : vector<2x1x8xf32>, vector<2x8x8xf32>, vector<2x1x8xf32> -> vector<2x1x8xf32>
    "tpu.trace_stop"() : () -> ()
    %169 = vector.extract_strided_slice %123 {offsets = [0, 0, 24], sizes = [2, 1, 8], strides = [1, 1, 1]} : vector<2x1x32xf32> to vector<2x1x8xf32>
    %170 = vector.extract_strided_slice %120 {offsets = [0, 0, 24], sizes = [2, 8, 8], strides = [1, 1, 1]} : vector<2x8x32xf32> to vector<2x8x8xf32>
    %171 = vector.extract_strided_slice %122 {offsets = [0, 0, 24], sizes = [2, 8, 8], strides = [1, 1, 1]} : vector<2x8x32xf32> to vector<2x8x8xf32>
    "tpu.trace_start"() <{level = 10 : i32, message = "bqe,bke->bqk"}> : () -> ()
    %cst_55 = arith.constant dense<0.000000e+00> : vector<2x1x8xf32>
    %172 = tpu.matmul %169, %170, %cst_55 {dimension_numbers = #tpu.dot_dimension_numbers<[2], [2], [1], [1], [0, 0, 0, 1, 1, 1], [0], [0]>} : vector<2x1x8xf32>, vector<2x8x8xf32>, vector<2x1x8xf32> -> vector<2x1x8xf32>
    "tpu.trace_stop"() : () -> ()
    %cst_56 = arith.constant dense<0xFF800000> : vector<2x1xf32>
    %173 = vector.multi_reduction <maximumf>, %172, %cst_56 [2] : vector<2x1x8xf32> to vector<2x1xf32>
    %174 = vector.shape_cast %173 : vector<2x1xf32> to vector<2x1x1xf32>
    %175 = vector.broadcast %174 : vector<2x1x1xf32> to vector<2x1x8xf32>
    %176 = arith.subf %172, %175 : vector<2x1x8xf32>
    %177 = math.exp %176 : vector<2x1x8xf32>
    %cst_57 = arith.constant dense<0.000000e+00> : vector<2x1xf32>
    %178 = vector.multi_reduction <add>, %177, %cst_57 [2] : vector<2x1x8xf32> to vector<2x1xf32>
    %179 = vector.shape_cast %178 : vector<2x1xf32> to vector<2x1x1xf32>
    %180 = tpu.reciprocal %179 {approx = true} : vector<2x1x1xf32> -> vector<2x1x1xf32>
    %181 = vector.broadcast %180 : vector<2x1x1xf32> to vector<2x1x8xf32>
    %182 = arith.mulf %177, %181 : vector<2x1x8xf32>
    "tpu.trace_start"() <{level = 10 : i32, message = "bqk,bke->bqe"}> : () -> ()
    %cst_58 = arith.constant dense<0.000000e+00> : vector<2x1x8xf32>
    %183 = tpu.matmul %182, %171, %cst_58 {dimension_numbers = #tpu.dot_dimension_numbers<[2], [1], [1], [2], [0, 0, 0, 1, 1, 2], [0], [0]>} : vector<2x1x8xf32>, vector<2x8x8xf32>, vector<2x1x8xf32> -> vector<2x1x8xf32>
    "tpu.trace_stop"() : () -> ()
    %184 = tpu.concatenate %138, %153, %168, %183 in 2 : vector<2x1x8xf32>, vector<2x1x8xf32>, vector<2x1x8xf32>, vector<2x1x8xf32> -> vector<2x1x32xf32>
    %185 = vector.shape_cast %184 : vector<2x1x32xf32> to vector<2x32xf32>
    %c0_59 = arith.constant 0 : index
    %c0_60 = arith.constant 0 : index
    %186 = vector.load %arg7[%c0_59, %c0_60] : memref<32x32xf32, #tpu.memory_space<vmem>>, vector<32x32xf32>
    %cst_61 = arith.constant dense<0.000000e+00> : vector<2x32xf32>
    %187 = tpu.matmul %185, %186, %cst_61 {dimension_numbers = #tpu.dot_dimension_numbers<[1], [0], [0], [1], [0, 0, 1, 1], [], []>} : vector<2x32xf32>, vector<32x32xf32>, vector<2x32xf32> -> vector<2x32xf32>
    %188 = vector.extract_strided_slice %2 {offsets = [4, 0], sizes = [1, 32], strides = [1, 1]} : vector<10x32xf32> to vector<1x32xf32>
    %189 = vector.broadcast %188 : vector<1x32xf32> to vector<2x32xf32>
    %190 = arith.addf %187, %189 : vector<2x32xf32>
    %191 = arith.addf %107, %190 : vector<2x32xf32>
    %192 = vector.extract_strided_slice %2 {offsets = [5, 0], sizes = [1, 32], strides = [1, 1]} : vector<10x32xf32> to vector<1x32xf32>
    %193 = vector.extract_strided_slice %2 {offsets = [6, 0], sizes = [1, 32], strides = [1, 1]} : vector<10x32xf32> to vector<1x32xf32>
    %cst_62 = arith.constant dense<0.000000e+00> : vector<2xf32>
    %194 = vector.multi_reduction <add>, %191, %cst_62 [1] : vector<2x32xf32> to vector<2xf32>
    %195 = vector.shape_cast %194 : vector<2xf32> to vector<2x1xf32>
    %cst_63 = arith.constant 3.200000e+01 : f32
    %196 = vector.broadcast %cst_63 : f32 to vector<2x1xf32>
    %197 = arith.divf %195, %196 : vector<2x1xf32>
    %198 = vector.broadcast %197 : vector<2x1xf32> to vector<2x32xf32>
    %199 = arith.subf %191, %198 : vector<2x32xf32>
    %200 = arith.mulf %199, %199 : vector<2x32xf32>
    %cst_64 = arith.constant dense<0.000000e+00> : vector<2xf32>
    %201 = vector.multi_reduction <add>, %200, %cst_64 [1] : vector<2x32xf32> to vector<2xf32>
    %202 = vector.shape_cast %201 : vector<2xf32> to vector<2x1xf32>
    %cst_65 = arith.constant 3.200000e+01 : f32
    %203 = vector.broadcast %cst_65 : f32 to vector<2x1xf32>
    %204 = arith.divf %202, %203 : vector<2x1xf32>
    %cst_66 = arith.constant 9.99999974E-6 : f32
    %205 = vector.broadcast %cst_66 : f32 to vector<2x1xf32>
    %206 = arith.addf %204, %205 : vector<2x1xf32>
    %207 = math.rsqrt %206 : vector<2x1xf32>
    %208 = vector.broadcast %207 : vector<2x1xf32> to vector<2x32xf32>
    %209 = arith.mulf %199, %208 : vector<2x32xf32>
    %210 = vector.broadcast %192 : vector<1x32xf32> to vector<2x32xf32>
    %211 = arith.mulf %209, %210 : vector<2x32xf32>
    %212 = vector.broadcast %193 : vector<1x32xf32> to vector<2x32xf32>
    %213 = arith.addf %211, %212 : vector<2x32xf32>
    %c0_67 = arith.constant 0 : index
    %c0_68 = arith.constant 0 : index
    %c0_69 = arith.constant 0 : index
    %214 = vector.load %arg15[%c0_67, %c0_68, %c0_69] : memref<2x8x32xf32, #tpu.memory_space<vmem>>, vector<2x8x32xf32>
    tpu.vector_store %arg15[%c0_67, %c0_68, %c0_69], %105 {strides = array<i32>} : memref<2x8x32xf32, #tpu.memory_space<vmem>>, vector<2x8x32xf32>,
    %215 = vector.shape_cast %213 : vector<2x32xf32> to vector<2x1x32xf32>
    %c0_70 = arith.constant 0 : index
    %c7 = arith.constant 7 : index
    %c0_71 = arith.constant 0 : index
    %216 = vector.load %arg15[%c0_70, %c7, %c0_71] : memref<2x8x32xf32, #tpu.memory_space<vmem>>, vector<2x1x32xf32>
    tpu.vector_store %arg15[%c0_70, %c7, %c0_71], %215 {strides = array<i32>} : memref<2x8x32xf32, #tpu.memory_space<vmem>>, vector<2x1x32xf32>,
    %c0_72 = arith.constant 0 : index
    %c0_73 = arith.constant 0 : index
    %c0_74 = arith.constant 0 : index
    %217 = vector.load %arg15[%c0_72, %c0_73, %c0_74] : memref<2x8x32xf32, #tpu.memory_space<vmem>>, vector<2x8x32xf32>
    %218 = vector.shape_cast %217 : vector<2x8x32xf32> to vector<16x32xf32>
    %c0_75 = arith.constant 0 : index
    %c0_76 = arith.constant 0 : index
    %219 = vector.load %arg8[%c0_75, %c0_76] : memref<32x64xf32, #tpu.memory_space<vmem>>, vector<32x64xf32>
    %cst_77 = arith.constant dense<0.000000e+00> : vector<16x64xf32>
    %220 = tpu.matmul %218, %219, %cst_77 {dimension_numbers = #tpu.dot_dimension_numbers<[1], [0], [0], [1], [0, 0, 1, 1], [], []>} : vector<16x32xf32>, vector<32x64xf32>, vector<16x64xf32> -> vector<16x64xf32>
    %c0_78 = arith.constant 0 : index
    %c0_79 = arith.constant 0 : index
    %221 = vector.load %arg12[%c0_78, %c0_79] : memref<1x64xf32, #tpu.memory_space<vmem>>, vector<1x64xf32>
    %222 = vector.broadcast %221 : vector<1x64xf32> to vector<16x64xf32>
    %223 = arith.addf %220, %222 : vector<16x64xf32>
    %cst_80 = arith.constant 0.000000e+00 : f32
    %224 = vector.broadcast %cst_80 : f32 to vector<16x64xf32>
    %225 = arith.maximumf %223, %224 : vector<16x64xf32>
    %c0_81 = arith.constant 0 : index
    %c0_82 = arith.constant 0 : index
    %226 = vector.load %arg9[%c0_81, %c0_82] : memref<64x32xf32, #tpu.memory_space<vmem>>, vector<64x32xf32>
    %cst_83 = arith.constant dense<0.000000e+00> : vector<16x32xf32>
    %227 = tpu.matmul %225, %226, %cst_83 {dimension_numbers = #tpu.dot_dimension_numbers<[1], [0], [0], [1], [0, 0, 1, 1], [], []>} : vector<16x64xf32>, vector<64x32xf32>, vector<16x32xf32> -> vector<16x32xf32>
    %228 = vector.extract_strided_slice %2 {offsets = [7, 0], sizes = [1, 32], strides = [1, 1]} : vector<10x32xf32> to vector<1x32xf32>
    %229 = vector.broadcast %228 : vector<1x32xf32> to vector<16x32xf32>
    %230 = arith.addf %227, %229 : vector<16x32xf32>
    %231 = arith.addf %218, %230 : vector<16x32xf32>
    %232 = vector.extract_strided_slice %2 {offsets = [8, 0], sizes = [1, 32], strides = [1, 1]} : vector<10x32xf32> to vector<1x32xf32>
    %233 = vector.extract_strided_slice %2 {offsets = [9, 0], sizes = [1, 32], strides = [1, 1]} : vector<10x32xf32> to vector<1x32xf32>
    %cst_84 = arith.constant dense<0.000000e+00> : vector<16xf32>
    %234 = vector.multi_reduction <add>, %231, %cst_84 [1] : vector<16x32xf32> to vector<16xf32>
    %235 = vector.shape_cast %234 : vector<16xf32> to vector<16x1xf32>
    %cst_85 = arith.constant 3.200000e+01 : f32
    %236 = vector.broadcast %cst_85 : f32 to vector<16x1xf32>
    %237 = arith.divf %235, %236 : vector<16x1xf32>
    %238 = vector.broadcast %237 : vector<16x1xf32> to vector<16x32xf32>
    %239 = arith.subf %231, %238 : vector<16x32xf32>
    %240 = arith.mulf %239, %239 : vector<16x32xf32>
    %cst_86 = arith.constant dense<0.000000e+00> : vector<16xf32>
    %241 = vector.multi_reduction <add>, %240, %cst_86 [1] : vector<16x32xf32> to vector<16xf32>
    %242 = vector.shape_cast %241 : vector<16xf32> to vector<16x1xf32>
    %cst_87 = arith.constant 3.200000e+01 : f32
    %243 = vector.broadcast %cst_87 : f32 to vector<16x1xf32>
    %244 = arith.divf %242, %243 : vector<16x1xf32>
    %cst_88 = arith.constant 9.99999974E-6 : f32
    %245 = vector.broadcast %cst_88 : f32 to vector<16x1xf32>
    %246 = arith.addf %244, %245 : vector<16x1xf32>
    %247 = math.rsqrt %246 : vector<16x1xf32>
    %248 = vector.broadcast %247 : vector<16x1xf32> to vector<16x32xf32>
    %249 = arith.mulf %239, %248 : vector<16x32xf32>
    %250 = vector.broadcast %232 : vector<1x32xf32> to vector<16x32xf32>
    %251 = arith.mulf %249, %250 : vector<16x32xf32>
    %252 = vector.broadcast %233 : vector<1x32xf32> to vector<16x32xf32>
    %253 = arith.addf %251, %252 : vector<16x32xf32>
    %254 = vector.shape_cast %253 : vector<16x32xf32> to vector<2x8x32xf32>
    %c0_89 = arith.constant 0 : index
    %c0_90 = arith.constant 0 : index
    %c0_91 = arith.constant 0 : index
    %255 = vector.load %arg14[%c0_89, %c0_90, %c0_91] : memref<2x8x32xf32, #tpu.memory_space<vmem>>, vector<2x8x32xf32>
    tpu.vector_store %arg14[%c0_89, %c0_90, %c0_91], %254 {strides = array<i32>} : memref<2x8x32xf32, #tpu.memory_space<vmem>>, vector<2x8x32xf32>,
    return
  }
  func.func @transform_0(%arg0: i32) -> (i32, i32, i32) {
    %c0_i32 = arith.constant 0 : i32
    %c0_i32_0 = arith.constant 0 : i32
    %c0_i32_1 = arith.constant 0 : i32
    return %arg0, %c0_i32, %c0_i32_0 : i32, i32, i32
  }
  func.func @transform_1(%arg0: i32) -> (i32, i32, i32) {
    %c0_i32 = arith.constant 0 : i32
    %c0_i32_0 = arith.constant 0 : i32
    %c0_i32_1 = arith.constant 0 : i32
    return %arg0, %c0_i32, %c0_i32_0 : i32, i32, i32
  }
  func.func @transform_2(%arg0: i32) -> (i32, i32) {
    %c0_i32 = arith.constant 0 : i32
    %c0_i32_0 = arith.constant 0 : i32
    %c0_i32_1 = arith.constant 0 : i32
    return %c0_i32, %c0_i32_0 : i32, i32
  }
  func.func @transform_3(%arg0: i32) -> (i32, i32) {
    %c0_i32 = arith.constant 0 : i32
    %c0_i32_0 = arith.constant 0 : i32
    %c0_i32_1 = arith.constant 0 : i32
    return %c0_i32, %c0_i32_0 : i32, i32
  }
  func.func @transform_4(%arg0: i32) -> (i32, i32) {
    %c0_i32 = arith.constant 0 : i32
    %c0_i32_0 = arith.constant 0 : i32
    %c0_i32_1 = arith.constant 0 : i32
    return %c0_i32, %c0_i32_0 : i32, i32
  }
  func.func @transform_5(%arg0: i32) -> (i32, i32) {
    %c0_i32 = arith.constant 0 : i32
    %c0_i32_0 = arith.constant 0 : i32
    %c0_i32_1 = arith.constant 0 : i32
    return %c0_i32, %c0_i32_0 : i32, i32
  }
  func.func @transform_6(%arg0: i32) -> (i32, i32) {
    %c0_i32 = arith.constant 0 : i32
    %c0_i32_0 = arith.constant 0 : i32
    %c0_i32_1 = arith.constant 0 : i32
    return %c0_i32, %c0_i32_0 : i32, i32
  }
  func.func @transform_7(%arg0: i32) -> (i32, i32) {
    %c0_i32 = arith.constant 0 : i32
    %c0_i32_0 = arith.constant 0 : i32
    %c0_i32_1 = arith.constant 0 : i32
    return %c0_i32, %c0_i32_0 : i32, i32
  }
  func.func @transform_8(%arg0: i32) -> (i32, i32) {
    %c0_i32 = arith.constant 0 : i32
    %c0_i32_0 = arith.constant 0 : i32
    %c0_i32_1 = arith.constant 0 : i32
    return %c0_i32, %c0_i32_0 : i32, i32
  }
  func.func @transform_9(%arg0: i32) -> (i32, i32) {
    %c0_i32 = arith.constant 0 : i32
    %c0_i32_0 = arith.constant 0 : i32
    %c0_i32_1 = arith.constant 0 : i32
    return %c0_i32, %c0_i32_0 : i32, i32
  }
  func.func @transform_10(%arg0: i32) -> (i32, i32) {
    %c0_i32 = arith.constant 0 : i32
    %c0_i32_0 = arith.constant 0 : i32
    %c0_i32_1 = arith.constant 0 : i32
    return %c0_i32, %c0_i32_0 : i32, i32
  }
  func.func @transform_11(%arg0: i32) -> (i32, i32) {
    %c0_i32 = arith.constant 0 : i32
    %c0_i32_0 = arith.constant 0 : i32
    %c0_i32_1 = arith.constant 0 : i32
    return %c0_i32, %c0_i32_0 : i32, i32
  }
  func.func @transform_12(%arg0: i32) -> (i32, i32) {
    %c0_i32 = arith.constant 0 : i32
    %c0_i32_0 = arith.constant 0 : i32
    %c0_i32_1 = arith.constant 0 : i32
    return %c0_i32, %c0_i32_0 : i32, i32
  }
  func.func @transform_13(%arg0: i32) -> (i32, i32, i32) {
    %c0_i32 = arith.constant 0 : i32
    %c0_i32_0 = arith.constant 0 : i32
    %c0_i32_1 = arith.constant 0 : i32
    return %arg0, %c0_i32, %c0_i32_0 : i32, i32, i32
  }
}

module attributes {stable_mosaic.version = 11 : i64} {
  func.func @_layer_kernel(%arg0: i32, %arg1: memref<2x8x32xf32, #tpu.memory_space<vmem>>, %arg2: memref<2x8x32xf32, #tpu.memory_space<vmem>>, %arg3: memref<32x96xf32, #tpu.memory_space<vmem>>, %arg4: memref<32x32xf32, #tpu.memory_space<vmem>>, %arg5: memref<32x32xf32, #tpu.memory_space<vmem>>, %arg6: memref<32x64xf32, #tpu.memory_space<vmem>>, %arg7: memref<32x32xf32, #tpu.memory_space<vmem>>, %arg8: memref<32x64xf32, #tpu.memory_space<vmem>>, %arg9: memref<64x32xf32, #tpu.memory_space<vmem>>, %arg10: memref<1x96xf32, #tpu.memory_space<vmem>>, %arg11: memref<1x64xf32, #tpu.memory_space<vmem>>, %arg12: memref<1x64xf32, #tpu.memory_space<vmem>>, %arg13: memref<10x32xf32, #tpu.memory_space<vmem>>, %arg14: memref<2x8x32xf32, #tpu.memory_space<vmem>>, %arg15: memref<2x8x32xf32, #tpu.memory_space<vmem>>) attributes {dimension_semantics = [#tpu.dimension_semantics<parallel>], iteration_bounds = array<i64: 1>, scalar_prefetch = 0 : i64, scratch_operands = 1 : i64, tpu.core_type = #tpu.core_type<tc>, window_params = [{transform_indices = @transform_0, window_bounds = array<i64: 2, 8, 32>}, {transform_indices = @transform_1, window_bounds = array<i64: 2, 8, 32>}, {pipeline_mode = #tpu.pipeline_mode<synchronous>, transform_indices = @transform_2, window_bounds = array<i64: 32, 96>}, {pipeline_mode = #tpu.pipeline_mode<synchronous>, transform_indices = @transform_3, window_bounds = array<i64: 32, 32>}, {pipeline_mode = #tpu.pipeline_mode<synchronous>, transform_indices = @transform_4, window_bounds = array<i64: 32, 32>}, {pipeline_mode = #tpu.pipeline_mode<synchronous>, transform_indices = @transform_5, window_bounds = array<i64: 32, 64>}, {pipeline_mode = #tpu.pipeline_mode<synchronous>, transform_indices = @transform_6, window_bounds = array<i64: 32, 32>}, {pipeline_mode = #tpu.pipeline_mode<synchronous>, transform_indices = @transform_7, window_bounds = array<i64: 32, 64>}, {pipeline_mode = #tpu.pipeline_mode<synchronous>, transform_indices = @transform_8, window_bounds = array<i64: 64, 32>}, {pipeline_mode = #tpu.pipeline_mode<synchronous>, transform_indices = @transform_9, window_bounds = array<i64: 1, 96>}, {pipeline_mode = #tpu.pipeline_mode<synchronous>, transform_indices = @transform_10, window_bounds = array<i64: 1, 64>}, {pipeline_mode = #tpu.pipeline_mode<synchronous>, transform_indices = @transform_11, window_bounds = array<i64: 1, 64>}, {pipeline_mode = #tpu.pipeline_mode<synchronous>, transform_indices = @transform_12, window_bounds = array<i64: 10, 32>}, {transform_indices = @transform_13, window_bounds = array<i64: 2, 8, 32>}]} {
    %c0 = arith.constant 0 : index
    %c0_0 = arith.constant 0 : index
    %c0_1 = arith.constant 0 : index
    %0 = vector.load %arg1[%c0, %c0_0, %c0_1] : memref<2x8x32xf32, #tpu.memory_space<vmem>>, vector<2x8x32xf32>
    %c0_2 = arith.constant 0 : index
    %c0_3 = arith.constant 0 : index
    %c0_4 = arith.constant 0 : index
    %1 = vector.load %arg2[%c0_2, %c0_3, %c0_4] : memref<2x8x32xf32, #tpu.memory_space<vmem>>, vector<2x8x32xf32>
    %c0_5 = arith.constant 0 : index
    %c0_6 = arith.constant 0 : index
    %2 = vector.load %arg13[%c0_5, %c0_6] : memref<10x32xf32, #tpu.memory_space<vmem>>, vector<10x32xf32>
    %3 = vector.shape_cast %0 : vector<2x8x32xf32> to vector<16x32xf32>
    %c0_7 = arith.constant 0 : index
    %c0_8 = arith.constant 0 : index
    %4 = vector.load %arg3[%c0_7, %c0_8] : memref<32x96xf32, #tpu.memory_space<vmem>>, vector<32x96xf32>
    %cst = arith.constant dense<0.000000e+00> : vector<16x96xf32>
    %5 = tpu.matmul %3, %4, %cst {dimension_numbers = #tpu.dot_dimension_numbers<[1], [0], [0], [1], [0, 0, 1, 1], [], []>} : vector<16x32xf32>, vector<32x96xf32>, vector<16x96xf32> -> vector<16x96xf32>
    %c0_9 = arith.constant 0 : index
    %c0_10 = arith.constant 0 : index
    %6 = vector.load %arg10[%c0_9, %c0_10] : memref<1x96xf32, #tpu.memory_space<vmem>>, vector<1x96xf32>
    %7 = vector.broadcast %6 : vector<1x96xf32> to vector<16x96xf32>
    %8 = arith.addf %5, %7 : vector<16x96xf32>
    %9 = vector.extract_strided_slice %8 {offsets = [0, 0], sizes = [16, 32], strides = [1, 1]} : vector<16x96xf32> to vector<16x32xf32>
    %10 = vector.shape_cast %9 : vector<16x32xf32> to vector<2x8x32xf32>
    %11 = vector.extract_strided_slice %8 {offsets = [0, 32], sizes = [16, 32], strides = [1, 1]} : vector<16x96xf32> to vector<16x32xf32>
    %12 = vector.shape_cast %11 : vector<16x32xf32> to vector<2x8x32xf32>
    %13 = vector.extract_strided_slice %8 {offsets = [0, 64], sizes = [16, 32], strides = [1, 1]} : vector<16x96xf32> to vector<16x32xf32>
    %14 = vector.shape_cast %13 : vector<16x32xf32> to vector<2x8x32xf32>
    %15 = vector.extract_strided_slice %10 {offsets = [0, 0, 0], sizes = [2, 8, 8], strides = [1, 1, 1]} : vector<2x8x32xf32> to vector<2x8x8xf32>
    %16 = vector.extract_strided_slice %12 {offsets = [0, 0, 0], sizes = [2, 8, 8], strides = [1, 1, 1]} : vector<2x8x32xf32> to vector<2x8x8xf32>
    %17 = vector.extract_strided_slice %14 {offsets = [0, 0, 0], sizes = [2, 8, 8], strides = [1, 1, 1]} : vector<2x8x32xf32> to vector<2x8x8xf32>
    "tpu.trace_start"() <{level = 10 : i32, message = "bqe,bke->bqk"}> : () -> ()
    %cst_11 = arith.constant dense<0.000000e+00> : vector<2x8x8xf32>
    %18 = tpu.matmul %15, %16, %cst_11 {dimension_numbers = #tpu.dot_dimension_numbers<[2], [2], [1], [1], [0, 0, 0, 1, 1, 1], [0], [0]>} : vector<2x8x8xf32>, vector<2x8x8xf32>, vector<2x8x8xf32> -> vector<2x8x8xf32>
    "tpu.trace_stop"() : () -> ()
    %cst_12 = arith.constant dense<0xFF800000> : vector<2x8xf32>
    %19 = vector.multi_reduction <maximumf>, %18, %cst_12 [2] : vector<2x8x8xf32> to vector<2x8xf32>
    %20 = vector.shape_cast %19 : vector<2x8xf32> to vector<2x8x1xf32>
    %21 = vector.broadcast %20 : vector<2x8x1xf32> to vector<2x8x8xf32>
    %22 = arith.subf %18, %21 : vector<2x8x8xf32>
    %23 = math.exp %22 : vector<2x8x8xf32>
    %cst_13 = arith.constant dense<0.000000e+00> : vector<2x8xf32>
    %24 = vector.multi_reduction <add>, %23, %cst_13 [2] : vector<2x8x8xf32> to vector<2x8xf32>
    %25 = vector.shape_cast %24 : vector<2x8xf32> to vector<2x8x1xf32>
    %26 = tpu.reciprocal %25 {approx = true} : vector<2x8x1xf32> -> vector<2x8x1xf32>
    %27 = vector.broadcast %26 : vector<2x8x1xf32> to vector<2x8x8xf32>
    %28 = arith.mulf %23, %27 : vector<2x8x8xf32>
    "tpu.trace_start"() <{level = 10 : i32, message = "bqk,bke->bqe"}> : () -> ()
    %cst_14 = arith.constant dense<0.000000e+00> : vector<2x8x8xf32>
    %29 = tpu.matmul %28, %17, %cst_14 {dimension_numbers = #tpu.dot_dimension_numbers<[2], [1], [1], [2], [0, 0, 0, 1, 1, 2], [0], [0]>} : vector<2x8x8xf32>, vector<2x8x8xf32>, vector<2x8x8xf32> -> vector<2x8x8xf32>
    "tpu.trace_stop"() : () -> ()
    %30 = vector.extract_strided_slice %10 {offsets = [0, 0, 8], sizes = [2, 8, 8], strides = [1, 1, 1]} : vector<2x8x32xf32> to vector<2x8x8xf32>
    %31 = vector.extract_strided_slice %12 {offsets = [0, 0, 8], sizes = [2, 8, 8], strides = [1, 1, 1]} : vector<2x8x32xf32> to vector<2x8x8xf32>
    %32 = vector.extract_strided_slice %14 {offsets = [0, 0, 8], sizes = [2, 8, 8], strides = [1, 1, 1]} : vector<2x8x32xf32> to vector<2x8x8xf32>
    "tpu.trace_start"() <{level = 10 : i32, message = "bqe,bke->bqk"}> : () -> ()
    %cst_15 = arith.constant dense<0.000000e+00> : vector<2x8x8xf32>
    %33 = tpu.matmul %30, %31, %cst_15 {dimension_numbers = #tpu.dot_dimension_numbers<[2], [2], [1], [1], [0, 0, 0, 1, 1, 1], [0], [0]>} : vector<2x8x8xf32>, vector<2x8x8xf32>, vector<2x8x8xf32> -> vector<2x8x8xf32>
    "tpu.trace_stop"() : () -> ()
    %cst_16 = arith.constant dense<0xFF800000> : vector<2x8xf32>
    %34 = vector.multi_reduction <maximumf>, %33, %cst_16 [2] : vector<2x8x8xf32> to vector<2x8xf32>
    %35 = vector.shape_cast %34 : vector<2x8xf32> to vector<2x8x1xf32>
    %36 = vector.broadcast %35 : vector<2x8x1xf32> to vector<2x8x8xf32>
    %37 = arith.subf %33, %36 : vector<2x8x8xf32>
    %38 = math.exp %37 : vector<2x8x8xf32>
    %cst_17 = arith.constant dense<0.000000e+00> : vector<2x8xf32>
    %39 = vector.multi_reduction <add>, %38, %cst_17 [2] : vector<2x8x8xf32> to vector<2x8xf32>
    %40 = vector.shape_cast %39 : vector<2x8xf32> to vector<2x8x1xf32>
    %41 = tpu.reciprocal %40 {approx = true} : vector<2x8x1xf32> -> vector<2x8x1xf32>
    %42 = vector.broadcast %41 : vector<2x8x1xf32> to vector<2x8x8xf32>
    %43 = arith.mulf %38, %42 : vector<2x8x8xf32>
    "tpu.trace_start"() <{level = 10 : i32, message = "bqk,bke->bqe"}> : () -> ()
    %cst_18 = arith.constant dense<0.000000e+00> : vector<2x8x8xf32>
    %44 = tpu.matmul %43, %32, %cst_18 {dimension_numbers = #tpu.dot_dimension_numbers<[2], [1], [1], [2], [0, 0, 0, 1, 1, 2], [0], [0]>} : vector<2x8x8xf32>, vector<2x8x8xf32>, vector<2x8x8xf32> -> vector<2x8x8xf32>
    "tpu.trace_stop"() : () -> ()
    %45 = vector.extract_strided_slice %10 {offsets = [0, 0, 16], sizes = [2, 8, 8], strides = [1, 1, 1]} : vector<2x8x32xf32> to vector<2x8x8xf32>
    %46 = vector.extract_strided_slice %12 {offsets = [0, 0, 16], sizes = [2, 8, 8], strides = [1, 1, 1]} : vector<2x8x32xf32> to vector<2x8x8xf32>
    %47 = vector.extract_strided_slice %14 {offsets = [0, 0, 16], sizes = [2, 8, 8], strides = [1, 1, 1]} : vector<2x8x32xf32> to vector<2x8x8xf32>
    "tpu.trace_start"() <{level = 10 : i32, message = "bqe,bke->bqk"}> : () -> ()
    %cst_19 = arith.constant dense<0.000000e+00> : vector<2x8x8xf32>
    %48 = tpu.matmul %45, %46, %cst_19 {dimension_numbers = #tpu.dot_dimension_numbers<[2], [2], [1], [1], [0, 0, 0, 1, 1, 1], [0], [0]>} : vector<2x8x8xf32>, vector<2x8x8xf32>, vector<2x8x8xf32> -> vector<2x8x8xf32>
    "tpu.trace_stop"() : () -> ()
    %cst_20 = arith.constant dense<0xFF800000> : vector<2x8xf32>
    %49 = vector.multi_reduction <maximumf>, %48, %cst_20 [2] : vector<2x8x8xf32> to vector<2x8xf32>
    %50 = vector.shape_cast %49 : vector<2x8xf32> to vector<2x8x1xf32>
    %51 = vector.broadcast %50 : vector<2x8x1xf32> to vector<2x8x8xf32>
    %52 = arith.subf %48, %51 : vector<2x8x8xf32>
    %53 = math.exp %52 : vector<2x8x8xf32>
    %cst_21 = arith.constant dense<0.000000e+00> : vector<2x8xf32>
    %54 = vector.multi_reduction <add>, %53, %cst_21 [2] : vector<2x8x8xf32> to vector<2x8xf32>
    %55 = vector.shape_cast %54 : vector<2x8xf32> to vector<2x8x1xf32>
    %56 = tpu.reciprocal %55 {approx = true} : vector<2x8x1xf32> -> vector<2x8x1xf32>
    %57 = vector.broadcast %56 : vector<2x8x1xf32> to vector<2x8x8xf32>
    %58 = arith.mulf %53, %57 : vector<2x8x8xf32>
    "tpu.trace_start"() <{level = 10 : i32, message = "bqk,bke->bqe"}> : () -> ()
    %cst_22 = arith.constant dense<0.000000e+00> : vector<2x8x8xf32>
    %59 = tpu.matmul %58, %47, %cst_22 {dimension_numbers = #tpu.dot_dimension_numbers<[2], [1], [1], [2], [0, 0, 0, 1, 1, 2], [0], [0]>} : vector<2x8x8xf32>, vector<2x8x8xf32>, vector<2x8x8xf32> -> vector<2x8x8xf32>
    "tpu.trace_stop"() : () -> ()
    %60 = vector.extract_strided_slice %10 {offsets = [0, 0, 24], sizes = [2, 8, 8], strides = [1, 1, 1]} : vector<2x8x32xf32> to vector<2x8x8xf32>
    %61 = vector.extract_strided_slice %12 {offsets = [0, 0, 24], sizes = [2, 8, 8], strides = [1, 1, 1]} : vector<2x8x32xf32> to vector<2x8x8xf32>
    %62 = vector.extract_strided_slice %14 {offsets = [0, 0, 24], sizes = [2, 8, 8], strides = [1, 1, 1]} : vector<2x8x32xf32> to vector<2x8x8xf32>
    "tpu.trace_start"() <{level = 10 : i32, message = "bqe,bke->bqk"}> : () -> ()
    %cst_23 = arith.constant dense<0.000000e+00> : vector<2x8x8xf32>
    %63 = tpu.matmul %60, %61, %cst_23 {dimension_numbers = #tpu.dot_dimension_numbers<[2], [2], [1], [1], [0, 0, 0, 1, 1, 1], [0], [0]>} : vector<2x8x8xf32>, vector<2x8x8xf32>, vector<2x8x8xf32> -> vector<2x8x8xf32>
    "tpu.trace_stop"() : () -> ()
    %cst_24 = arith.constant dense<0xFF800000> : vector<2x8xf32>
    %64 = vector.multi_reduction <maximumf>, %63, %cst_24 [2] : vector<2x8x8xf32> to vector<2x8xf32>
    %65 = vector.shape_cast %64 : vector<2x8xf32> to vector<2x8x1xf32>
    %66 = vector.broadcast %65 : vector<2x8x1xf32> to vector<2x8x8xf32>
    %67 = arith.subf %63, %66 : vector<2x8x8xf32>
    %68 = math.exp %67 : vector<2x8x8xf32>
    %cst_25 = arith.constant dense<0.000000e+00> : vector<2x8xf32>
    %69 = vector.multi_reduction <add>, %68, %cst_25 [2] : vector<2x8x8xf32> to vector<2x8xf32>
    %70 = vector.shape_cast %69 : vector<2x8xf32> to vector<2x8x1xf32>
    %71 = tpu.reciprocal %70 {approx = true} : vector<2x8x1xf32> -> vector<2x8x1xf32>
    %72 = vector.broadcast %71 : vector<2x8x1xf32> to vector<2x8x8xf32>
    %73 = arith.mulf %68, %72 : vector<2x8x8xf32>
    "tpu.trace_start"() <{level = 10 : i32, message = "bqk,bke->bqe"}> : () -> ()
    %cst_26 = arith.constant dense<0.000000e+00> : vector<2x8x8xf32>
    %74 = tpu.matmul %73, %62, %cst_26 {dimension_numbers = #tpu.dot_dimension_numbers<[2], [1], [1], [2], [0, 0, 0, 1, 1, 2], [0], [0]>} : vector<2x8x8xf32>, vector<2x8x8xf32>, vector<2x8x8xf32> -> vector<2x8x8xf32>
    "tpu.trace_stop"() : () -> ()
    %75 = tpu.concatenate %29, %44, %59, %74 in 2 : vector<2x8x8xf32>, vector<2x8x8xf32>, vector<2x8x8xf32>, vector<2x8x8xf32> -> vector<2x8x32xf32>
    %76 = vector.shape_cast %75 : vector<2x8x32xf32> to vector<16x32xf32>
    %c0_27 = arith.constant 0 : index
    %c0_28 = arith.constant 0 : index
    %77 = vector.load %arg4[%c0_27, %c0_28] : memref<32x32xf32, #tpu.memory_space<vmem>>, vector<32x32xf32>
    %cst_29 = arith.constant dense<0.000000e+00> : vector<16x32xf32>
    %78 = tpu.matmul %76, %77, %cst_29 {dimension_numbers = #tpu.dot_dimension_numbers<[1], [0], [0], [1], [0, 0, 1, 1], [], []>} : vector<16x32xf32>, vector<32x32xf32>, vector<16x32xf32> -> vector<16x32xf32>
    %79 = vector.extract_strided_slice %2 {offsets = [0, 0], sizes = [1, 32], strides = [1, 1]} : vector<10x32xf32> to vector<1x32xf32>
    %80 = vector.broadcast %79 : vector<1x32xf32> to vector<16x32xf32>
    %81 = arith.addf %78, %80 : vector<16x32xf32>
    %82 = arith.addf %3, %81 : vector<16x32xf32>
    %83 = vector.extract_strided_slice %2 {offsets = [1, 0], sizes = [1, 32], strides = [1, 1]} : vector<10x32xf32> to vector<1x32xf32>
    %84 = vector.extract_strided_slice %2 {offsets = [2, 0], sizes = [1, 32], strides = [1, 1]} : vector<10x32xf32> to vector<1x32xf32>
    %cst_30 = arith.constant dense<0.000000e+00> : vector<16xf32>
    %85 = vector.multi_reduction <add>, %82, %cst_30 [1] : vector<16x32xf32> to vector<16xf32>
    %86 = vector.shape_cast %85 : vector<16xf32> to vector<16x1xf32>
    %cst_31 = arith.constant 3.200000e+01 : f32
    %87 = vector.broadcast %cst_31 : f32 to vector<16x1xf32>
    %88 = arith.divf %86, %87 : vector<16x1xf32>
    %89 = vector.broadcast %88 : vector<16x1xf32> to vector<16x32xf32>
    %90 = arith.subf %82, %89 : vector<16x32xf32>
    %91 = arith.mulf %90, %90 : vector<16x32xf32>
    %cst_32 = arith.constant dense<0.000000e+00> : vector<16xf32>
    %92 = vector.multi_reduction <add>, %91, %cst_32 [1] : vector<16x32xf32> to vector<16xf32>
    %93 = vector.shape_cast %92 : vector<16xf32> to vector<16x1xf32>
    %cst_33 = arith.constant 3.200000e+01 : f32
    %94 = vector.broadcast %cst_33 : f32 to vector<16x1xf32>
    %95 = arith.divf %93, %94 : vector<16x1xf32>
    %cst_34 = arith.constant 9.99999974E-6 : f32
    %96 = vector.broadcast %cst_34 : f32 to vector<16x1xf32>
    %97 = arith.addf %95, %96 : vector<16x1xf32>
    %98 = math.rsqrt %97 : vector<16x1xf32>
    %99 = vector.broadcast %98 : vector<16x1xf32> to vector<16x32xf32>
    %100 = arith.mulf %90, %99 : vector<16x32xf32>
    %101 = vector.broadcast %83 : vector<1x32xf32> to vector<16x32xf32>
    %102 = arith.mulf %100, %101 : vector<16x32xf32>
    %103 = vector.broadcast %84 : vector<1x32xf32> to vector<16x32xf32>
    %104 = arith.addf %102, %103 : vector<16x32xf32>
    %105 = vector.shape_cast %104 : vector<16x32xf32> to vector<2x8x32xf32>
    %106 = vector.extract_strided_slice %105 {offsets = [0, 7, 0], sizes = [2, 1, 32], strides = [1, 1, 1]} : vector<2x8x32xf32> to vector<2x1x32xf32>
    %107 = vector.shape_cast %106 : vector<2x1x32xf32> to vector<2x32xf32>
    %c0_35 = arith.constant 0 : index
    %c0_36 = arith.constant 0 : index
    %108 = vector.load %arg5[%c0_35, %c0_36] : memref<32x32xf32, #tpu.memory_space<vmem>>, vector<32x32xf32>
    %cst_37 = arith.constant dense<0.000000e+00> : vector<2x32xf32>
    %109 = tpu.matmul %107, %108, %cst_37 {dimension_numbers = #tpu.dot_dimension_numbers<[1], [0], [0], [1], [0, 0, 1, 1], [], []>} : vector<2x32xf32>, vector<32x32xf32>, vector<2x32xf32> -> vector<2x32xf32>
    %110 = vector.extract_strided_slice %2 {offsets = [3, 0], sizes = [1, 32], strides = [1, 1]} : vector<10x32xf32> to vector<1x32xf32>
    %111 = vector.broadcast %110 : vector<1x32xf32> to vector<2x32xf32>
    %112 = arith.addf %109, %111 : vector<2x32xf32>
    %113 = vector.shape_cast %1 : vector<2x8x32xf32> to vector<16x32xf32>
    %c0_38 = arith.constant 0 : index
    %c0_39 = arith.constant 0 : index
    %114 = vector.load %arg6[%c0_38, %c0_39] : memref<32x64xf32, #tpu.memory_space<vmem>>, vector<32x64xf32>
    %cst_40 = arith.constant dense<0.000000e+00> : vector<16x64xf32>
    %115 = tpu.matmul %113, %114, %cst_40 {dimension_numbers = #tpu.dot_dimension_numbers<[1], [0], [0], [1], [0, 0, 1, 1], [], []>} : vector<16x32xf32>, vector<32x64xf32>, vector<16x64xf32> -> vector<16x64xf32>
    %c0_41 = arith.constant 0 : index
    %c0_42 = arith.constant 0 : index
    %116 = vector.load %arg11[%c0_41, %c0_42] : memref<1x64xf32, #tpu.memory_space<vmem>>, vector<1x64xf32>
    %117 = vector.broadcast %116 : vector<1x64xf32> to vector<16x64xf32>
    %118 = arith.addf %115, %117 : vector<16x64xf32>
    %119 = vector.extract_strided_slice %118 {offsets = [0, 0], sizes = [16, 32], strides = [1, 1]} : vector<16x64xf32> to vector<16x32xf32>
    %120 = vector.shape_cast %119 : vector<16x32xf32> to vector<2x8x32xf32>
    %121 = vector.extract_strided_slice %118 {offsets = [0, 32], sizes = [16, 32], strides = [1, 1]} : vector<16x64xf32> to vector<16x32xf32>
    %122 = vector.shape_cast %121 : vector<16x32xf32> to vector<2x8x32xf32>
    %123 = vector.shape_cast %112 : vector<2x32xf32> to vector<2x1x32xf32>
    %124 = vector.extract_strided_slice %123 {offsets = [0, 0, 0], sizes = [2, 1, 8], strides = [1, 1, 1]} : vector<2x1x32xf32> to vector<2x1x8xf32>
    %125 = vector.extract_strided_slice %120 {offsets = [0, 0, 0], sizes = [2, 8, 8], strides = [1, 1, 1]} : vector<2x8x32xf32> to vector<2x8x8xf32>
    %126 = vector.extract_strided_slice %122 {offsets = [0, 0, 0], sizes = [2, 8, 8], strides = [1, 1, 1]} : vector<2x8x32xf32> to vector<2x8x8xf32>
    "tpu.trace_start"() <{level = 10 : i32, message = "bqe,bke->bqk"}> : () -> ()
    %cst_43 = arith.constant dense<0.000000e+00> : vector<2x1x8xf32>
    %127 = tpu.matmul %124, %125, %cst_43 {dimension_numbers = #tpu.dot_dimension_numbers<[2], [2], [1], [1], [0, 0, 0, 1, 1, 1], [0], [0]>} : vector<2x1x8xf32>, vector<2x8x8xf32>, vector<2x1x8xf32> -> vector<2x1x8xf32>
    "tpu.trace_stop"() : () -> ()
    %cst_44 = arith.constant dense<0xFF800000> : vector<2x1xf32>
    %128 = vector.multi_reduction <maximumf>, %127, %cst_44 [2] : vector<2x1x8xf32> to vector<2x1xf32>
    %129 = vector.shape_cast %128 : vector<2x1xf32> to vector<2x1x1xf32>
    %130 = vector.broadcast %129 : vector<2x1x1xf32> to vector<2x1x8xf32>
    %131 = arith.subf %127, %130 : vector<2x1x8xf32>
    %132 = math.exp %131 : vector<2x1x8xf32>
    %cst_45 = arith.constant dense<0.000000e+00> : vector<2x1xf32>
    %133 = vector.multi_reduction <add>, %132, %cst_45 [2] : vector<2x1x8xf32> to vector<2x1xf32>
    %134 = vector.shape_cast %133 : vector<2x1xf32> to vector<2x1x1xf32>
    %135 = tpu.reciprocal %134 {approx = true} : vector<2x1x1xf32> -> vector<2x1x1xf32>
    %136 = vector.broadcast %135 : vector<2x1x1xf32> to vector<2x1x8xf32>
    %137 = arith.mulf %132, %136 : vector<2x1x8xf32>
    "tpu.trace_start"() <{level = 10 : i32, message = "bqk,bke->bqe"}> : () -> ()
    %cst_46 = arith.constant dense<0.000000e+00> : vector<2x1x8xf32>
    %138 = tpu.matmul %137, %126, %cst_46 {dimension_numbers = #tpu.dot_dimension_numbers<[2], [1], [1], [2], [0, 0, 0, 1, 1, 2], [0], [0]>} : vector<2x1x8xf32>, vector<2x8x8xf32>, vector<2x1x8xf32> -> vector<2x1x8xf32>
    "tpu.trace_stop"() : () -> ()
    %139 = vector.extract_strided_slice %123 {offsets = [0, 0, 8], sizes = [2, 1, 8], strides = [1, 1, 1]} : vector<2x1x32xf32> to vector<2x1x8xf32>
    %140 = vector.extract_strided_slice %120 {offsets = [0, 0, 8], sizes = [2, 8, 8], strides = [1, 1, 1]} : vector<2x8x32xf32> to vector<2x8x8xf32>
    %141 = vector.extract_strided_slice %122 {offsets = [0, 0, 8], sizes = [2, 8, 8], strides = [1, 1, 1]} : vector<2x8x32xf32> to vector<2x8x8xf32>
    "tpu.trace_start"() <{level = 10 : i32, message = "bqe,bke->bqk"}> : () -> ()
    %cst_47 = arith.constant dense<0.000000e+00> : vector<2x1x8xf32>
    %142 = tpu.matmul %139, %140, %cst_47 {dimension_numbers = #tpu.dot_dimension_numbers<[2], [2], [1], [1], [0, 0, 0, 1, 1, 1], [0], [0]>} : vector<2x1x8xf32>, vector<2x8x8xf32>, vector<2x1x8xf32> -> vector<2x1x8xf32>
    "tpu.trace_stop"() : () -> ()
    %cst_48 = arith.constant dense<0xFF800000> : vector<2x1xf32>
    %143 = vector.multi_reduction <maximumf>, %142, %cst_48 [2] : vector<2x1x8xf32> to vector<2x1xf32>
    %144 = vector.shape_cast %143 : vector<2x1xf32> to vector<2x1x1xf32>
    %145 = vector.broadcast %144 : vector<2x1x1xf32> to vector<2x1x8xf32>
    %146 = arith.subf %142, %145 : vector<2x1x8xf32>
    %147 = math.exp %146 : vector<2x1x8xf32>
    %cst_49 = arith.constant dense<0.000000e+00> : vector<2x1xf32>
    %148 = vector.multi_reduction <add>, %147, %cst_49 [2] : vector<2x1x8xf32> to vector<2x1xf32>
    %149 = vector.shape_cast %148 : vector<2x1xf32> to vector<2x1x1xf32>
    %150 = tpu.reciprocal %149 {approx = true} : vector<2x1x1xf32> -> vector<2x1x1xf32>
    %151 = vector.broadcast %150 : vector<2x1x1xf32> to vector<2x1x8xf32>
    %152 = arith.mulf %147, %151 : vector<2x1x8xf32>
    "tpu.trace_start"() <{level = 10 : i32, message = "bqk,bke->bqe"}> : () -> ()
    %cst_50 = arith.constant dense<0.000000e+00> : vector<2x1x8xf32>
    %153 = tpu.matmul %152, %141, %cst_50 {dimension_numbers = #tpu.dot_dimension_numbers<[2], [1], [1], [2], [0, 0, 0, 1, 1, 2], [0], [0]>} : vector<2x1x8xf32>, vector<2x8x8xf32>, vector<2x1x8xf32> -> vector<2x1x8xf32>
    "tpu.trace_stop"() : () -> ()
    %154 = vector.extract_strided_slice %123 {offsets = [0, 0, 16], sizes = [2, 1, 8], strides = [1, 1, 1]} : vector<2x1x32xf32> to vector<2x1x8xf32>
    %155 = vector.extract_strided_slice %120 {offsets = [0, 0, 16], sizes = [2, 8, 8], strides = [1, 1, 1]} : vector<2x8x32xf32> to vector<2x8x8xf32>
    %156 = vector.extract_strided_slice %122 {offsets = [0, 0, 16], sizes = [2, 8, 8], strides = [1, 1, 1]} : vector<2x8x32xf32> to vector<2x8x8xf32>
    "tpu.trace_start"() <{level = 10 : i32, message = "bqe,bke->bqk"}> : () -> ()
    %cst_51 = arith.constant dense<0.000000e+00> : vector<2x1x8xf32>
    %157 = tpu.matmul %154, %155, %cst_51 {dimension_numbers = #tpu.dot_dimension_numbers<[2], [2], [1], [1], [0, 0, 0, 1, 1, 1], [0], [0]>} : vector<2x1x8xf32>, vector<2x8x8xf32>, vector<2x1x8xf32> -> vector<2x1x8xf32>
    "tpu.trace_stop"() : () -> ()
    %cst_52 = arith.constant dense<0xFF800000> : vector<2x1xf32>
    %158 = vector.multi_reduction <maximumf>, %157, %cst_52 [2] : vector<2x1x8xf32> to vector<2x1xf32>
    %159 = vector.shape_cast %158 : vector<2x1xf32> to vector<2x1x1xf32>
    %160 = vector.broadcast %159 : vector<2x1x1xf32> to vector<2x1x8xf32>
    %161 = arith.subf %157, %160 : vector<2x1x8xf32>
    %162 = math.exp %161 : vector<2x1x8xf32>
    %cst_53 = arith.constant dense<0.000000e+00> : vector<2x1xf32>
    %163 = vector.multi_reduction <add>, %162, %cst_53 [2] : vector<2x1x8xf32> to vector<2x1xf32>
    %164 = vector.shape_cast %163 : vector<2x1xf32> to vector<2x1x1xf32>
    %165 = tpu.reciprocal %164 {approx = true} : vector<2x1x1xf32> -> vector<2x1x1xf32>
    %166 = vector.broadcast %165 : vector<2x1x1xf32> to vector<2x1x8xf32>
    %167 = arith.mulf %162, %166 : vector<2x1x8xf32>
    "tpu.trace_start"() <{level = 10 : i32, message = "bqk,bke->bqe"}> : () -> ()
    %cst_54 = arith.constant dense<0.000000e+00> : vector<2x1x8xf32>
    %168 = tpu.matmul %167, %156, %cst_54 {dimension_numbers = #tpu.dot_dimension_numbers<[2], [1], [1], [2], [0, 0, 0, 1, 1, 2], [0], [0]>} : vector<2x1x8xf32>, vector<2x8x8xf32>, vector<2x1x8xf32> -> vector<2x1x8xf32>
    "tpu.trace_stop"() : () -> ()
    %169 = vector.extract_strided_slice %123 {offsets = [0, 0, 24], sizes = [2, 1, 8], strides = [1, 1, 1]} : vector<2x1x32xf32> to vector<2x1x8xf32>
    %170 = vector.extract_strided_slice %120 {offsets = [0, 0, 24], sizes = [2, 8, 8], strides = [1, 1, 1]} : vector<2x8x32xf32> to vector<2x8x8xf32>
    %171 = vector.extract_strided_slice %122 {offsets = [0, 0, 24], sizes = [2, 8, 8], strides = [1, 1, 1]} : vector<2x8x32xf32> to vector<2x8x8xf32>
    "tpu.trace_start"() <{level = 10 : i32, message = "bqe,bke->bqk"}> : () -> ()
    %cst_55 = arith.constant dense<0.000000e+00> : vector<2x1x8xf32>
    %172 = tpu.matmul %169, %170, %cst_55 {dimension_numbers = #tpu.dot_dimension_numbers<[2], [2], [1], [1], [0, 0, 0, 1, 1, 1], [0], [0]>} : vector<2x1x8xf32>, vector<2x8x8xf32>, vector<2x1x8xf32> -> vector<2x1x8xf32>
    "tpu.trace_stop"() : () -> ()
    %cst_56 = arith.constant dense<0xFF800000> : vector<2x1xf32>
    %173 = vector.multi_reduction <maximumf>, %172, %cst_56 [2] : vector<2x1x8xf32> to vector<2x1xf32>
    %174 = vector.shape_cast %173 : vector<2x1xf32> to vector<2x1x1xf32>
    %175 = vector.broadcast %174 : vector<2x1x1xf32> to vector<2x1x8xf32>
    %176 = arith.subf %172, %175 : vector<2x1x8xf32>
    %177 = math.exp %176 : vector<2x1x8xf32>
    %cst_57 = arith.constant dense<0.000000e+00> : vector<2x1xf32>
    %178 = vector.multi_reduction <add>, %177, %cst_57 [2] : vector<2x1x8xf32> to vector<2x1xf32>
    %179 = vector.shape_cast %178 : vector<2x1xf32> to vector<2x1x1xf32>
    %180 = tpu.reciprocal %179 {approx = true} : vector<2x1x1xf32> -> vector<2x1x1xf32>
    %181 = vector.broadcast %180 : vector<2x1x1xf32> to vector<2x1x8xf32>
    %182 = arith.mulf %177, %181 : vector<2x1x8xf32>
    "tpu.trace_start"() <{level = 10 : i32, message = "bqk,bke->bqe"}> : () -> ()
    %cst_58 = arith.constant dense<0.000000e+00> : vector<2x1x8xf32>
    %183 = tpu.matmul %182, %171, %cst_58 {dimension_numbers = #tpu.dot_dimension_numbers<[2], [1], [1], [2], [0, 0, 0, 1, 1, 2], [0], [0]>} : vector<2x1x8xf32>, vector<2x8x8xf32>, vector<2x1x8xf32> -> vector<2x1x8xf32>
    "tpu.trace_stop"() : () -> ()
    %184 = tpu.concatenate %138, %153, %168, %183 in 2 : vector<2x1x8xf32>, vector<2x1x8xf32>, vector<2x1x8xf32>, vector<2x1x8xf32> -> vector<2x1x32xf32>
    %185 = vector.shape_cast %184 : vector<2x1x32xf32> to vector<2x32xf32>
    %c0_59 = arith.constant 0 : index
    %c0_60 = arith.constant 0 : index
    %186 = vector.load %arg7[%c0_59, %c0_60] : memref<32x32xf32, #tpu.memory_space<vmem>>, vector<32x32xf32>
    %cst_61 = arith.constant dense<0.000000e+00> : vector<2x32xf32>
    %187 = tpu.matmul %185, %186, %cst_61 {dimension_numbers = #tpu.dot_dimension_numbers<[1], [0], [0], [1], [0, 0, 1, 1], [], []>} : vector<2x32xf32>, vector<32x32xf32>, vector<2x32xf32> -> vector<2x32xf32>
    %188 = vector.extract_strided_slice %2 {offsets = [4, 0], sizes = [1, 32], strides = [1, 1]} : vector<10x32xf32> to vector<1x32xf32>
    %189 = vector.broadcast %188 : vector<1x32xf32> to vector<2x32xf32>
    %190 = arith.addf %187, %189 : vector<2x32xf32>
    %191 = arith.addf %107, %190 : vector<2x32xf32>
    %192 = vector.extract_strided_slice %2 {offsets = [5, 0], sizes = [1, 32], strides = [1, 1]} : vector<10x32xf32> to vector<1x32xf32>
    %193 = vector.extract_strided_slice %2 {offsets = [6, 0], sizes = [1, 32], strides = [1, 1]} : vector<10x32xf32> to vector<1x32xf32>
    %cst_62 = arith.constant dense<0.000000e+00> : vector<2xf32>
    %194 = vector.multi_reduction <add>, %191, %cst_62 [1] : vector<2x32xf32> to vector<2xf32>
    %195 = vector.shape_cast %194 : vector<2xf32> to vector<2x1xf32>
    %cst_63 = arith.constant 3.200000e+01 : f32
    %196 = vector.broadcast %cst_63 : f32 to vector<2x1xf32>
    %197 = arith.divf %195, %196 : vector<2x1xf32>
    %198 = vector.broadcast %197 : vector<2x1xf32> to vector<2x32xf32>
    %199 = arith.subf %191, %198 : vector<2x32xf32>
    %200 = arith.mulf %199, %199 : vector<2x32xf32>
    %cst_64 = arith.constant dense<0.000000e+00> : vector<2xf32>
    %201 = vector.multi_reduction <add>, %200, %cst_64 [1] : vector<2x32xf32> to vector<2xf32>
    %202 = vector.shape_cast %201 : vector<2xf32> to vector<2x1xf32>
    %cst_65 = arith.constant 3.200000e+01 : f32
    %203 = vector.broadcast %cst_65 : f32 to vector<2x1xf32>
    %204 = arith.divf %202, %203 : vector<2x1xf32>
    %cst_66 = arith.constant 9.99999974E-6 : f32
    %205 = vector.broadcast %cst_66 : f32 to vector<2x1xf32>
    %206 = arith.addf %204, %205 : vector<2x1xf32>
    %207 = math.rsqrt %206 : vector<2x1xf32>
    %208 = vector.broadcast %207 : vector<2x1xf32> to vector<2x32xf32>
    %209 = arith.mulf %199, %208 : vector<2x32xf32>
    %210 = vector.broadcast %192 : vector<1x32xf32> to vector<2x32xf32>
    %211 = arith.mulf %209, %210 : vector<2x32xf32>
    %212 = vector.broadcast %193 : vector<1x32xf32> to vector<2x32xf32>
    %213 = arith.addf %211, %212 : vector<2x32xf32>
    %c0_67 = arith.constant 0 : index
    %c0_68 = arith.constant 0 : index
    %c0_69 = arith.constant 0 : index
    %214 = vector.load %arg15[%c0_67, %c0_68, %c0_69] : memref<2x8x32xf32, #tpu.memory_space<vmem>>, vector<2x8x32xf32>
    tpu.vector_store %arg15[%c0_67, %c0_68, %c0_69], %105 {strides = array<i32>} : memref<2x8x32xf32, #tpu.memory_space<vmem>>, vector<2x8x32xf32>,
    %215 = vector.shape_cast %213 : vector<2x32xf32> to vector<2x1x32xf32>
    %c0_70 = arith.constant 0 : index
    %c7 = arith.constant 7 : index
    %c0_71 = arith.constant 0 : index
    %216 = vector.load %arg15[%c0_70, %c7, %c0_71] : memref<2x8x32xf32, #tpu.memory_space<vmem>>, vector<2x1x32xf32>
    tpu.vector_store %arg15[%c0_70, %c7, %c0_71], %215 {strides = array<i32>} : memref<2x8x32xf32, #tpu.memory_space<vmem>>, vector<2x1x32xf32>,
    %c0_72 = arith.constant 0 : index
    %c0_73 = arith.constant 0 : index
    %c0_74 = arith.constant 0 : index
    %217 = vector.load %arg15[%c0_72, %c0_73, %c0_74] : memref<2x8x32xf32, #tpu.memory_space<vmem>>, vector<2x8x32xf32>
    %218 = vector.shape_cast %217 : vector<2x8x32xf32> to vector<16x32xf32>
    %c0_75 = arith.constant 0 : index
    %c0_76 = arith.constant 0 : index
    %219 = vector.load %arg8[%c0_75, %c0_76] : memref<32x64xf32, #tpu.memory_space<vmem>>, vector<32x64xf32>
    %cst_77 = arith.constant dense<0.000000e+00> : vector<16x64xf32>
    %220 = tpu.matmul %218, %219, %cst_77 {dimension_numbers = #tpu.dot_dimension_numbers<[1], [0], [0], [1], [0, 0, 1, 1], [], []>} : vector<16x32xf32>, vector<32x64xf32>, vector<16x64xf32> -> vector<16x64xf32>
    %c0_78 = arith.constant 0 : index
    %c0_79 = arith.constant 0 : index
    %221 = vector.load %arg12[%c0_78, %c0_79] : memref<1x64xf32, #tpu.memory_space<vmem>>, vector<1x64xf32>
    %222 = vector.broadcast %221 : vector<1x64xf32> to vector<16x64xf32>
    %223 = arith.addf %220, %222 : vector<16x64xf32>
    %cst_80 = arith.constant 0.000000e+00 : f32
    %224 = vector.broadcast %cst_80 : f32 to vector<16x64xf32>
    %225 = arith.maximumf %223, %224 : vector<16x64xf32>
    %c0_81 = arith.constant 0 : index
    %c0_82 = arith.constant 0 : index
    %226 = vector.load %arg9[%c0_81, %c0_82] : memref<64x32xf32, #tpu.memory_space<vmem>>, vector<64x32xf32>
    %cst_83 = arith.constant dense<0.000000e+00> : vector<16x32xf32>
    %227 = tpu.matmul %225, %226, %cst_83 {dimension_numbers = #tpu.dot_dimension_numbers<[1], [0], [0], [1], [0, 0, 1, 1], [], []>} : vector<16x64xf32>, vector<64x32xf32>, vector<16x32xf32> -> vector<16x32xf32>
    %228 = vector.extract_strided_slice %2 {offsets = [7, 0], sizes = [1, 32], strides = [1, 1]} : vector<10x32xf32> to vector<1x32xf32>
    %229 = vector.broadcast %228 : vector<1x32xf32> to vector<16x32xf32>
    %230 = arith.addf %227, %229 : vector<16x32xf32>
    %231 = arith.addf %218, %230 : vector<16x32xf32>
    %232 = vector.extract_strided_slice %2 {offsets = [8, 0], sizes = [1, 32], strides = [1, 1]} : vector<10x32xf32> to vector<1x32xf32>
    %233 = vector.extract_strided_slice %2 {offsets = [9, 0], sizes = [1, 32], strides = [1, 1]} : vector<10x32xf32> to vector<1x32xf32>
    %cst_84 = arith.constant dense<0.000000e+00> : vector<16xf32>
    %234 = vector.multi_reduction <add>, %231, %cst_84 [1] : vector<16x32xf32> to vector<16xf32>
    %235 = vector.shape_cast %234 : vector<16xf32> to vector<16x1xf32>
    %cst_85 = arith.constant 3.200000e+01 : f32
    %236 = vector.broadcast %cst_85 : f32 to vector<16x1xf32>
    %237 = arith.divf %235, %236 : vector<16x1xf32>
    %238 = vector.broadcast %237 : vector<16x1xf32> to vector<16x32xf32>
    %239 = arith.subf %231, %238 : vector<16x32xf32>
    %240 = arith.mulf %239, %239 : vector<16x32xf32>
    %cst_86 = arith.constant dense<0.000000e+00> : vector<16xf32>
    %241 = vector.multi_reduction <add>, %240, %cst_86 [1] : vector<16x32xf32> to vector<16xf32>
    %242 = vector.shape_cast %241 : vector<16xf32> to vector<16x1xf32>
    %cst_87 = arith.constant 3.200000e+01 : f32
    %243 = vector.broadcast %cst_87 : f32 to vector<16x1xf32>
    %244 = arith.divf %242, %243 : vector<16x1xf32>
    %cst_88 = arith.constant 9.99999974E-6 : f32
    %245 = vector.broadcast %cst_88 : f32 to vector<16x1xf32>
    %246 = arith.addf %244, %245 : vector<16x1xf32>
    %247 = math.rsqrt %246 : vector<16x1xf32>
    %248 = vector.broadcast %247 : vector<16x1xf32> to vector<16x32xf32>
    %249 = arith.mulf %239, %248 : vector<16x32xf32>
    %250 = vector.broadcast %232 : vector<1x32xf32> to vector<16x32xf32>
    %251 = arith.mulf %249, %250 : vector<16x32xf32>
    %252 = vector.broadcast %233 : vector<1x32xf32> to vector<16x32xf32>
    %253 = arith.addf %251, %252 : vector<16x32xf32>
    %254 = vector.shape_cast %253 : vector<16x32xf32> to vector<2x8x32xf32>
    %c0_89 = arith.constant 0 : index
    %c0_90 = arith.constant 0 : index
    %c0_91 = arith.constant 0 : index
    %255 = vector.load %arg14[%c0_89, %c0_90, %c0_91] : memref<2x8x32xf32, #tpu.memory_space<vmem>>, vector<2x8x32xf32>
    tpu.vector_store %arg14[%c0_89, %c0_90, %c0_91], %254 {strides = array<i32>} : memref<2x8x32xf32, #tpu.memory_space<vmem>>, vector<2x8x32xf32>,
    return
  }
  func.func @transform_0(%arg0: i32) -> (i32, i32, i32) {
    %c0_i32 = arith.constant 0 : i32
    %c0_i32_0 = arith.constant 0 : i32
    %c0_i32_1 = arith.constant 0 : i32
    return %arg0, %c0_i32, %c0_i32_0 : i32, i32, i32
  }
  func.func @transform_1(%arg0: i32) -> (i32, i32, i32) {
    %c0_i32 = arith.constant 0 : i32
    %c0_i32_0 = arith.constant 0 : i32
    %c0_i32_1 = arith.constant 0 : i32
    return %arg0, %c0_i32, %c0_i32_0 : i32, i32, i32
  }
  func.func @transform_2(%arg0: i32) -> (i32, i32) {
    %c0_i32 = arith.constant 0 : i32
    %c0_i32_0 = arith.constant 0 : i32
    %c0_i32_1 = arith.constant 0 : i32
    return %c0_i32, %c0_i32_0 : i32, i32
  }
  func.func @transform_3(%arg0: i32) -> (i32, i32) {
    %c0_i32 = arith.constant 0 : i32
    %c0_i32_0 = arith.constant 0 : i32
    %c0_i32_1 = arith.constant 0 : i32
    return %c0_i32, %c0_i32_0 : i32, i32
  }
  func.func @transform_4(%arg0: i32) -> (i32, i32) {
    %c0_i32 = arith.constant 0 : i32
    %c0_i32_0 = arith.constant 0 : i32
    %c0_i32_1 = arith.constant 0 : i32
    return %c0_i32, %c0_i32_0 : i32, i32
  }
  func.func @transform_5(%arg0: i32) -> (i32, i32) {
    %c0_i32 = arith.constant 0 : i32
    %c0_i32_0 = arith.constant 0 : i32
    %c0_i32_1 = arith.constant 0 : i32
    return %c0_i32, %c0_i32_0 : i32, i32
  }
  func.func @transform_6(%arg0: i32) -> (i32, i32) {
    %c0_i32 = arith.constant 0 : i32
    %c0_i32_0 = arith.constant 0 : i32
    %c0_i32_1 = arith.constant 0 : i32
    return %c0_i32, %c0_i32_0 : i32, i32
  }
  func.func @transform_7(%arg0: i32) -> (i32, i32) {
    %c0_i32 = arith.constant 0 : i32
    %c0_i32_0 = arith.constant 0 : i32
    %c0_i32_1 = arith.constant 0 : i32
    return %c0_i32, %c0_i32_0 : i32, i32
  }
  func.func @transform_8(%arg0: i32) -> (i32, i32) {
    %c0_i32 = arith.constant 0 : i32
    %c0_i32_0 = arith.constant 0 : i32
    %c0_i32_1 = arith.constant 0 : i32
    return %c0_i32, %c0_i32_0 : i32, i32
  }
  func.func @transform_9(%arg0: i32) -> (i32, i32) {
    %c0_i32 = arith.constant 0 : i32
    %c0_i32_0 = arith.constant 0 : i32
    %c0_i32_1 = arith.constant 0 : i32
    return %c0_i32, %c0_i32_0 : i32, i32
  }
  func.func @transform_10(%arg0: i32) -> (i32, i32) {
    %c0_i32 = arith.constant 0 : i32
    %c0_i32_0 = arith.constant 0 : i32
    %c0_i32_1 = arith.constant 0 : i32
    return %c0_i32, %c0_i32_0 : i32, i32
  }
  func.func @transform_11(%arg0: i32) -> (i32, i32) {
    %c0_i32 = arith.constant 0 : i32
    %c0_i32_0 = arith.constant 0 : i32
    %c0_i32_1 = arith.constant 0 : i32
    return %c0_i32, %c0_i32_0 : i32, i32
  }
  func.func @transform_12(%arg0: i32) -> (i32, i32) {
    %c0_i32 = arith.constant 0 : i32
    %c0_i32_0 = arith.constant 0 : i32
    %c0_i32_1 = arith.constant 0 : i32
    return %c0_i32, %c0_i32_0 : i32, i32
  }
  func.func @transform_13(%arg0: i32) -> (i32, i32, i32) {
    %c0_i32 = arith.constant 0 : i32
    %c0_i32_0 = arith.constant 0 : i32
    %c0_i32_1 = arith.constant 0 : i32
    return %arg0, %c0_i32, %c0_i32_0 : i32, i32, i32
  }
}

module attributes {stable_mosaic.version = 11 : i64} {
  func.func @kern(%arg0: i32, %arg1: memref<16x32xf32, #tpu.memory_space<vmem>>, %arg2: memref<1x32xf32, #tpu.memory_space<vmem>>, %arg3: memref<1x32xf32, #tpu.memory_space<vmem>>, %arg4: memref<32x16xf32, #tpu.memory_space<vmem>>, %arg5: memref<1x16xf32, #tpu.memory_space<vmem>>, %arg6: memref<16x16xf32, #tpu.memory_space<vmem>>) attributes {dimension_semantics = [#tpu.dimension_semantics<parallel>], iteration_bounds = array<i64: 1>, scalar_prefetch = 0 : i64, scratch_operands = 0 : i64, tpu.core_type = #tpu.core_type<tc>, window_params = [{transform_indices = @transform_0, window_bounds = array<i64: 16, 32>}, {pipeline_mode = #tpu.pipeline_mode<synchronous>, transform_indices = @transform_1, window_bounds = array<i64: 1, 32>}, {pipeline_mode = #tpu.pipeline_mode<synchronous>, transform_indices = @transform_2, window_bounds = array<i64: 1, 32>}, {pipeline_mode = #tpu.pipeline_mode<synchronous>, transform_indices = @transform_3, window_bounds = array<i64: 32, 16>}, {pipeline_mode = #tpu.pipeline_mode<synchronous>, transform_indices = @transform_4, window_bounds = array<i64: 1, 16>}, {transform_indices = @transform_5, window_bounds = array<i64: 16, 16>}]} {
    %c0 = arith.constant 0 : index
    %c0_0 = arith.constant 0 : index
    %0 = vector.load %arg1[%c0, %c0_0] : memref<16x32xf32, #tpu.memory_space<vmem>>, vector<16x32xf32>
    %c0_1 = arith.constant 0 : index
    %c0_2 = arith.constant 0 : index
    %1 = vector.load %arg2[%c0_1, %c0_2] : memref<1x32xf32, #tpu.memory_space<vmem>>, vector<1x32xf32>
    %c0_3 = arith.constant 0 : index
    %c0_4 = arith.constant 0 : index
    %2 = vector.load %arg3[%c0_3, %c0_4] : memref<1x32xf32, #tpu.memory_space<vmem>>, vector<1x32xf32>
    %cst = arith.constant dense<0.000000e+00> : vector<16xf32>
    %3 = vector.multi_reduction <add>, %0, %cst [1] : vector<16x32xf32> to vector<16xf32>
    %4 = vector.shape_cast %3 : vector<16xf32> to vector<16x1xf32>
    %cst_5 = arith.constant 3.200000e+01 : f32
    %5 = vector.broadcast %cst_5 : f32 to vector<16x1xf32>
    %6 = arith.divf %4, %5 : vector<16x1xf32>
    %7 = vector.broadcast %6 : vector<16x1xf32> to vector<16x32xf32>
    %8 = arith.subf %0, %7 : vector<16x32xf32>
    %9 = arith.mulf %8, %8 : vector<16x32xf32>
    %cst_6 = arith.constant dense<0.000000e+00> : vector<16xf32>
    %10 = vector.multi_reduction <add>, %9, %cst_6 [1] : vector<16x32xf32> to vector<16xf32>
    %11 = vector.shape_cast %10 : vector<16xf32> to vector<16x1xf32>
    %cst_7 = arith.constant 3.200000e+01 : f32
    %12 = vector.broadcast %cst_7 : f32 to vector<16x1xf32>
    %13 = arith.divf %11, %12 : vector<16x1xf32>
    %cst_8 = arith.constant 9.99999974E-6 : f32
    %14 = vector.broadcast %cst_8 : f32 to vector<16x1xf32>
    %15 = arith.addf %13, %14 : vector<16x1xf32>
    %16 = math.rsqrt %15 : vector<16x1xf32>
    %17 = vector.broadcast %16 : vector<16x1xf32> to vector<16x32xf32>
    %18 = arith.mulf %8, %17 : vector<16x32xf32>
    %19 = vector.broadcast %1 : vector<1x32xf32> to vector<16x32xf32>
    %20 = arith.mulf %18, %19 : vector<16x32xf32>
    %21 = vector.broadcast %2 : vector<1x32xf32> to vector<16x32xf32>
    %22 = arith.addf %20, %21 : vector<16x32xf32>
    %c0_9 = arith.constant 0 : index
    %c0_10 = arith.constant 0 : index
    %23 = vector.load %arg4[%c0_9, %c0_10] : memref<32x16xf32, #tpu.memory_space<vmem>>, vector<32x16xf32>
    %cst_11 = arith.constant dense<0.000000e+00> : vector<16x16xf32>
    %24 = tpu.matmul %22, %23, %cst_11 {dimension_numbers = #tpu.dot_dimension_numbers<[1], [0], [0], [1], [0, 0, 1, 1], [], []>} : vector<16x32xf32>, vector<32x16xf32>, vector<16x16xf32> -> vector<16x16xf32>
    %c0_12 = arith.constant 0 : index
    %c0_13 = arith.constant 0 : index
    %25 = vector.load %arg5[%c0_12, %c0_13] : memref<1x16xf32, #tpu.memory_space<vmem>>, vector<1x16xf32>
    %26 = vector.broadcast %25 : vector<1x16xf32> to vector<16x16xf32>
    %27 = arith.addf %24, %26 : vector<16x16xf32>
    %c0_14 = arith.constant 0 : index
    %c0_15 = arith.constant 0 : index
    %28 = vector.load %arg6[%c0_14, %c0_15] : memref<16x16xf32, #tpu.memory_space<vmem>>, vector<16x16xf32>
    tpu.vector_store %arg6[%c0_14, %c0_15], %27 {strides = array<i32>} : memref<16x16xf32, #tpu.memory_space<vmem>>, vector<16x16xf32>,
    return
  }
  func.func @transform_0(%arg0: i32) -> (i32, i32) {
    %c0_i32 = arith.constant 0 : i32
    %c0_i32_0 = arith.constant 0 : i32
    return %arg0, %c0_i32 : i32, i32
  }
  func.func @transform_1(%arg0: i32) -> (i32, i32) {
    %c0_i32 = arith.constant 0 : i32
    %c0_i32_0 = arith.constant 0 : i32
    %c0_i32_1 = arith.constant 0 : i32
    return %c0_i32, %c0_i32_0 : i32, i32
  }
  func.func @transform_2(%arg0: i32) -> (i32, i32) {
    %c0_i32 = arith.constant 0 : i32
    %c0_i32_0 = arith.constant 0 : i32
    %c0_i32_1 = arith.constant 0 : i32
    return %c0_i32, %c0_i32_0 : i32, i32
  }
  func.func @transform_3(%arg0: i32) -> (i32, i32) {
    %c0_i32 = arith.constant 0 : i32
    %c0_i32_0 = arith.constant 0 : i32
    %c0_i32_1 = arith.constant 0 : i32
    return %c0_i32, %c0_i32_0 : i32, i32
  }
  func.func @transform_4(%arg0: i32) -> (i32, i32) {
    %c0_i32 = arith.constant 0 : i32
    %c0_i32_0 = arith.constant 0 : i32
    %c0_i32_1 = arith.constant 0 : i32
    return %c0_i32, %c0_i32_0 : i32, i32
  }
  func.func @transform_5(%arg0: i32) -> (i32, i32) {
    %c0_i32 = arith.constant 0 : i32
    %c0_i32_0 = arith.constant 0 : i32
    return %arg0, %c0_i32 : i32, i32
  }
}

</mosaic_0001>

<bundles_post_ra>
// kernel: encoder_forward.5
= control target key start
LH: loop header
LB: loop body
LE: loop exit
PB: predicated region body
PF: predicated region fallthrough
CT: control target
= control target key end

     0   :  { %vm25_vm0 = vcmask 261120   ;;  %s300_s0 = inlined_call_operand.vmem [shape: f32[16,32], index: 0, kind: input, shape index: {}]   ;;  %s301_s1 = inlined_call_operand.vmem [shape: f32[1,32], index: 1, kind: input, shape index: {}]   ;;  %s302_s2 = inlined_call_operand.vmem [shape: f32[1,32], index: 2, kind: input, shape index: {}]   ;;  %s303_s3 = inlined_call_operand.vmem [shape: f32[32,16], index: 3, kind: input, shape index: {}]   ;;  %s304_s4 = inlined_call_operand.vmem [shape: f32[1,16], index: 4, kind: input, shape index: {}]   ;;  %s305_s5 = inlined_call_operand.hbm [shape: f32[16,16], index: 5, kind: output, shape index: {}]  }
   0x1   :  { %v21_v0 = vld [vmem:[%s300_s0] sm:$0xff]  ;;  %v22_v1 = vld [vmem:[%s300_s0 + $0x8] sm:$0xff] }
   0x2   :  { %10 = vsyncpa [#allocation3], 0  ;;  %v26_v2 = vsel %vm25_vm0, %v21_v0, 0.0  ;;  %v29_v3 = vsel %vm25_vm0, %v22_v1, 0.0  ;;  %v72_v14 = vld [vmem:[%s303_s3 + $0x18] sm:$0xff]  ;;  %v71_v15 = vld [vmem:[%s303_s3 + $0x10] sm:$0xff] }
   0x3   :  { %27 = vadd.xlane.f32.xlu0 %v26_v2  ;;  %191 = vmatprep.subr.mxu0 %v72_v14  ;;  %v70_v16 = vld [vmem:[%s303_s3 + $0x8] sm:$0xff]  ;;  %v69_v17 = vld [vmem:[%s303_s3] sm:$0xff]  ;;  %vm161_vm1 = vcmask 130048  }
   0x4   :  { %192 = vmatpush3.msra.mxu0 %v72_v14  ;;  %v180_v25 = vld [vmem:[%s301_s1] ss:$0 sm:$0xff]  ;;  %s231_s1 = smov [#allocation2]  }
   0x5   :  { %193 = vmatprep.subr.mxu0 %v71_v15  ;;  %v181_v27 = vld [vmem:[%s302_s2] ss:$0 sm:$0xff]  ;;  %s169_s9 = sshll.u32 %s231_s1, 4  ;;  %s170_s9 = int_to_ptr.vmem [resolvable:$true] %s169_s9 }
   0x6   :  { %194 = vmatpush3.msra.mxu0 %v71_v15  ;;  %v182_v34 = vld [vmem:[%s304_s4] ss:$0 sm:$0xff]  ;;  %s209_s2 = scalar_lea.vmem %s170_s9, 256  ;;  %p214_p1 = scmp.lt.s32.totalorder %s170_s9, %s170_s9 }
   0x7   :  { %30 = vadd.xlane.f32.xlu0 %v29_v3  ;;  %195 = vmatprep.subr.mxu0 %v70_v16  ;;  %p210_p0 = scmp.ne.s32.totalorder %s170_s9, %s209_s2  ;;  %p215_p2 = scmp.lt.s32.totalorder %s209_s2, %s209_s2 }
   0x8   :  { %196 = vmatpush3.msra.mxu0 %v70_v16 }
   0x9   :  { %197 = vmatprep.subr.mxu0 %v69_v17  ;;  %p216_p3 = por %p215_p2, %p214_p1 }
   0xa   :  { %198 = vmatpush3.msra.mxu0 %v69_v17 }
   0xb   :  { %p217_p4 = pnand %p216_p3, %p210_p0 }
  0x8c   :  { %v28_v4 = vpop.xlane.xlu0 %27 }
  0x8d   :  { %v33_v5 = vmul.f32 0.03125, %v28_v4 }
  0x8f   :  { %v35_v6 = vsub.f32 %v21_v0, %v33_v5 }
  0x90   :  { %v31_v7 = vpop.xlane.xlu0 %30 }
  0x91   :  { %v34_v8 = vmul.f32 0.03125, %v31_v7  ;;  %v37_v9 = vmul.f32 %v35_v6, %v35_v6 }
  0x93   :  { %v36_v10 = vsub.f32 %v22_v1, %v34_v8  ;;  %v39_v11 = vsel %vm25_vm0, %v37_v9, 0.0 }
  0x94   :  { %40 = vadd.xlane.f32.xlu1 %v39_v11 }
  0x95   :  { %v38_v12 = vmul.f32 %v36_v10, %v36_v10 }
  0x97   :  { %v42_v13 = vsel %vm25_vm0, %v38_v12, 0.0 }
  0x98   :  { %43 = vadd.xlane.f32.xlu1 %v42_v13 }
 0x11d   :  { %v41_v18 = vpop.xlane.xlu1 %40 }
 0x11e   :  { %v45_v19 = vmul.f32 0.03125, %v41_v18 }
 0x120   :  { %v47_v20 = vadd.f32 1e-05, %v45_v19 }
 0x121   :  { %v44_v21 = vpop.xlane.xlu1 %43 }
 0x122   :  { %205 = vrsqrt.f32 %v47_v20  ;;  %v46_v22 = vmul.f32 0.03125, %v44_v21 }
 0x124   :  { %v48_v23 = vadd.f32 1e-05, %v46_v22 }
 0x126   :  { %207 = vrsqrt.f32 %v48_v23 }
 0x12f   :  { %v206_v24 = vpop.eup %205 }
 0x130   :  { %v51_v26 = vmul.f32 %v206_v24, %v35_v6 }
 0x132   :  { %v59_v28 = vmul.f32 %v180_v25, %v51_v26 }
 0x133   :  { %v208_v29 = vpop.eup %207 }
 0x134   :  { %v52_v30 = vmul.f32 %v208_v29, %v36_v10  ;;  %v67_v31 = vadd.f32 %v181_v27, %v59_v28 }
 0x136   :  { %v60_v32 = vmul.f32 %v180_v25, %v52_v30  ;;  %199 = vmatprep.mubr.msk.f32.mxu0 %vm25_vm0, %v67_v31 }
 0x138   :  { %v68_v33 = vadd.f32 %v181_v27, %v60_v32 }
 0x13a   :  { %200 = vmatmul.mubr.msk.f32.vlgmr.msra.gmra.mxu0 %vm25_vm0, %v68_v33 }
 0x1fa   :  { %v201_v35 = vpop.f32.mrf.mxu0 }
 0x1fb   :  { %v158_v36 = vadd.f32 %v201_v35, %v182_v34 }
 0x1fc   :  { %v152_v37 = vpop.f32.mrf.mxu0 }
 0x1fd   :  { %163 = vst.msk [vmem:[#allocation2 + $0x8] sm:$0xff] %vm161_vm1, %v158_v36  ;;  %v153_v38 = vadd.f32 %v182_v34, %v152_v37 }
 0x1ff   :  { %162 = vst.msk [vmem:[#allocation2] sm:$0xff] %vm161_vm1, %v153_v38 }
 0x200   :  { %220 = shalt.err (!%p217_p4)
}
 0x201   :  { %s232_s10 = smov 128   ;;  %s233_s11 = smov 8  }
 0x202   :  { %175 = dma.vmem_to_hbm [thread:$0]  %s170_s9, 256, %s305_s5, [#allocation3], %s232_s10, %s232_s10, %s233_s11  }
 0x203   :  { %229 = dma.done.wait [#allocation3], 256  }
 0x204   :  { %230 = vsyncadd [#allocation3], 4294967040 }
 0x205   :  { %179 = vsyncpa [#allocation3], 1 }

// kernel: encoder_forward.4
= control target key start
LH: loop header
LB: loop body
LE: loop exit
PB: predicated region body
PF: predicated region fallthrough
CT: control target
= control target key end

     0   :  { %vm61_vm0 = vcmask 261120   ;;  %v4078_v6 = vmov 0.0   ;;  %vm4079_vm1 = vmmov 0   ;;  %s4080_s20 = smov 96   ;;  %vm146_vm2 = vcmask 64512   ;;  %s4082_s21 = smov 88   ;;  %s4699_s2 = inlined_call_operand.vmem [shape: f32[32,96], index: 2, kind: input, shape index: {}]   ;;  %s4700_s0 = inlined_call_operand.vmem [shape: f32[2,8,32], index: 0, kind: input, shape index: {}]   ;;  %s4701_s9 = inlined_call_operand.vmem [shape: f32[1,96], index: 9, kind: input, shape index: {}]   ;;  %s4702_s3 = inlined_call_operand.vmem [shape: f32[32,32], index: 3, kind: input, shape index: {}]   ;;  %s4703_s12 = inlined_call_operand.vmem [shape: f32[10,32], index: 12, kind: input, shape index: {}]   ;;  %s4704_s5 = inlined_call_operand.vmem [shape: f32[32,64], index: 5, kind: input, shape index: {}]   ;;  %s4705_s4 = inlined_call_operand.vmem [shape: f32[32,32], index: 4, kind: input, shape index: {}]   ;;  %s4706_s1 = inlined_call_operand.vmem [shape: f32[2,8,32], index: 1, kind: input, shape index: {}]   ;;  %s4707_s10 = inlined_call_operand.vmem [shape: f32[1,64], index: 10, kind: input, shape index: {}]   ;;  %s4708_s6 = inlined_call_operand.vmem [shape: f32[32,32], index: 6, kind: input, shape index: {}]   ;;  %s4709_s7 = inlined_call_operand.vmem [shape: f32[32,64], index: 7, kind: input, shape index: {}]   ;;  %s4710_s8 = inlined_call_operand.vmem [shape: f32[64,32], index: 8, kind: input, shape index: {}]   ;;  %s4711_s11 = inlined_call_operand.vmem [shape: f32[1,64], index: 11, kind: input, shape index: {}]   ;;  %s4712_s13 = inlined_call_operand.vmem [shape: f32[2,8,32], index: 13, kind: output, shape index: {}]  }
   0x1   :  { %v53_v0 = vld [vmem:[%s4699_s2 + $0x18] sm:$0xff]  ;;  %v52_v1 = vld [vmem:[%s4699_s2 + $0x10] sm:$0xff]  ;;  %v4174_v2 = vld [vmem:[%s4700_s0] sm:$0xff]  ;;  %3761 = vmatprep.subr.mxu0 %v4078_v6  ;;  %3763 = vmatprep.mubr.msk.f32.mxu0 %vm4079_vm1, %v4078_v6  ;;  %s4083_s22 = smov 120   ;;  %s4084_s23 = smov 56   ;;  %vm1491_vm3 = vcmask 195584  }
   0x2   :  { %3740 = vmatprep.subr.mxu1 %v53_v0  ;;  %v51_v3 = vld [vmem:[%s4699_s2 + $0x8] sm:$0xff]  ;;  %3748 = vmatprep.mubr.msk.f32.mxu1 %vm61_vm0, %v4174_v2  ;;  %v50_v4 = vld [vmem:[%s4699_s2] sm:$0xff]  ;;  %s4085_s24 = smov 80   ;;  %s4086_s25 = smov 112   ;;  %vm1488_vm4 = vcmask 130048   ;;  %vm1636_vm5 = vcmask 1041409  }
   0x3   :  { %3741 = vmatpush3.msra.mxu1 %v53_v0  ;;  %v4187_v5 = vld [vmem:[%s4700_s0 + $0x8] sm:$0xff]  ;;  %v3569_v8 = vld [vmem:[%s4701_s9] ss:$0 sm:$0xff]  ;;  %s4081_s9 = smov 64   ;;  %s4087_s26 = smov 48   ;;  %vm1975_vm6 = vcmask 57344  }
   0x4   :  { %3742 = vmatprep.subr.mxu1 %v52_v1  ;;  %s4088_s27 = smov 72   ;;  %s4089_s28 = smov 104   ;;  %vm3274_vm7 = vcmask 261127   ;;  %vm3278_vm8 = vcmask 253952   ;;  %vm3441_vm9 = vcmask 523264  }
   0x5   :  { %3743 = vmatpush3.msra.mxu1 %v52_v1  ;;  %s4090_s29 = smov 40   ;;  %s4091_s30 = smov 8  }
   0x6   :  { %3744 = vmatprep.subr.mxu1 %v51_v3  ;;  %s4092_s14 = smov 16  }
   0x7   :  { %3745 = vmatpush3.msra.mxu1 %v51_v3 }
   0x8   :  { %3746 = vmatprep.subr.mxu1 %v50_v4 }
   0x9   :  { %3747 = vmatpush3.msra.mxu1 %v50_v4 }
   0xa   :  { %3749 = vmatmul.mubr.msk.f32.vlgmr.msra.gmra.mxu1 %vm61_vm0, %v4187_v5  ;;  %3751 = vmatprep.subr.mxu1 %v4078_v6 }
   0xb   :  { %3753 = vmatprep.mubr.msk.f32.mxu1 %vm4079_vm1, %v4078_v6 }
  0xca   :  { %v3750_v7 = vpop.f32.mrf.mxu1 }
  0xcb   :  { %v4204_v11 = vadd.f32 %v3750_v7, %v3569_v8 }
  0xcc   :  { %v134_v9 = vpop.f32.mrf.mxu1 }
  0xcd   :  { %v4200_v10 = vadd.f32 %v3569_v8, %v134_v9 }
  0xcf   :  { %144 = vrot.lane.b32.xlu0 %v4200_v10, %s4080_s20 }
  0xd3   :  { %222 = vrot.lane.b32.xlu0 %v4204_v11, %s4080_s20 }
 0x141   :  { %v145_v12 = vpop.permute.xlu0 %144 }
 0x142   :  { %3752 = vmatpush3.xpose.msk.msra.mxu1 %vm146_vm2, %v145_v12 }
 0x143   :  { %3756 = vmatprep.subr.mxu1 %v4078_v6 }
 0x145   :  { %3754 = vmatmul.mubr.msk.f32.vlgmr.msra.gmra.mxu1 %vm146_vm2, %v4200_v10  ;;  %v223_v13 = vpop.permute.xlu0 %222 }
 0x146   :  { %3757 = vmatpush3.xpose.msk.msra.mxu1 %vm146_vm2, %v223_v13  ;;  %3758 = vmatprep.mubr.msk.f32.mxu1 %vm4079_vm1, %v4078_v6 }
 0x147   :  { %3766 = vmatprep.subr.mxu1 %v4078_v6 }
 0x149   :  { %3759 = vmatmul.mubr.msk.f32.vlgmr.msra.gmra.mxu1 %vm146_vm2, %v4204_v11 }
 0x14a   :  { %3768 = vmatprep.mubr.msk.f32.mxu1 %vm4079_vm1, %v4078_v6 }
 0x205   :  { %v217_v14 = vpop.f32.mrf.mxu1 }
 0x206   :  { %v298_v15 = vsel %vm146_vm2, %v217_v14, -inf }
 0x207   :  { %299 = vmax.xlane.f32.xlu1 %v298_v15  ;;  %v3755_v16 = vpop.f32.mrf.mxu1 }
 0x209   :  { %v294_v17 = vpop.f32.mrf.mxu1 }
 0x20a   :  { %v301_v18 = vsel %vm146_vm2, %v294_v17, -inf }
 0x20b   :  { %302 = vmax.xlane.f32.xlu1 %v301_v18  ;;  %v3760_v19 = vpop.f32.mrf.mxu1 }
 0x21c   :  { %320 = vrot.lane.b32.xlu1 %v4200_v10, %s4081_s9 }
 0x220   :  { %396 = vrot.lane.b32.xlu1 %v4204_v11, %s4081_s9 }
 0x224   :  { %474 = vrot.lane.b32.xlu1 %v4200_v10, %s4082_s21 }
 0x228   :  { %552 = vrot.lane.b32.xlu1 %v4204_v11, %s4082_s21 }
 0x290   :  { %v300_v20 = vpop.xlane.xlu1 %299 }
 0x291   :  { %v304_v21 = vsub.f32 %v217_v14, %v300_v20 }
 0x293   :  { %v306_v22 = vmul.f32 1.442695, %v304_v21 }
 0x294   :  { %v303_v23 = vpop.xlane.xlu1 %302 }
 0x295   :  { %4002 = vpow2.f32 %v306_v22  ;;  %v305_v24 = vsub.f32 %v294_v17, %v303_v23 }
 0x297   :  { %v308_v25 = vmul.f32 1.442695, %v305_v24 }
 0x298   :  { %v321_v26 = vpop.permute.xlu1 %320 }
 0x299   :  { %4004 = vpow2.f32 %v308_v25  ;;  %3762 = vmatpush3.msra.mxu0 %v321_v26 }
 0x29a   :  { %3771 = vmatprep.subr.mxu0 %v4078_v6 }
 0x29c   :  { %v397_v27 = vpop.permute.xlu1 %396 }
 0x29d   :  { %3767 = vmatpush3.msra.mxu1 %v397_v27 }
 0x29e   :  { %3776 = vmatprep.subr.mxu1 %v4078_v6 }
 0x2a0   :  { %v475_v32 = vpop.permute.xlu1 %474 }
 0x2a2   :  { %v4003_v28 = vpop.eup %4002 }
 0x2a3   :  { %v310_v29 = vsel %vm146_vm2, %v4003_v28, 0.0 }
 0x2a4   :  { %311 = vadd.xlane.f32.xlu0 %v310_v29  ;;  %v553_v33 = vpop.permute.xlu1 %552 }
 0x2a6   :  { %v4005_v30 = vpop.eup %4004 }
 0x2a7   :  { %v313_v31 = vsel %vm146_vm2, %v4005_v30, 0.0 }
 0x2a8   :  { %314 = vadd.xlane.f32.xlu1 %v313_v31 }
 0x2b9   :  { %550 = vrot.lane.b32.xlu1 %v4204_v11, %s4083_s22 }
 0x2ba   :  { %472 = vrot.lane.b32.xlu0 %v4200_v10, %s4083_s22 }
 0x32d   :  { %v312_v34 = vpop.xlane.xlu0 %311 }
 0x32e   :  { %4006 = vrcp.f32 %v312_v34 }
 0x331   :  { %v315_v35 = vpop.xlane.xlu1 %314  ;;  %v473_v40 = vpop.permute.xlu0 %472 }
 0x332   :  { %4008 = vrcp.f32 %v315_v35 }
 0x335   :  { %v551_v41 = vpop.permute.xlu1 %550 }
 0x33b   :  { %v4007_v36 = vpop.eup %4006 }
 0x33c   :  { %v318_v37 = vmul.f32 %v4007_v36, %v4003_v28 }
 0x33e   :  { %3764 = vmatmul.mubr.msk.f32.vlgmr.msra.gmra.mxu0 %vm146_vm2, %v318_v37 }
 0x33f   :  { %v4009_v38 = vpop.eup %4008  ;;  %3772 = vmatpush3.xpose.msk.msra.mxu0 %vm146_vm2, %v475_v32  ;;  %3773 = vmatprep.mubr.msk.f32.mxu0 %vm4079_vm1, %v4078_v6 }
 0x340   :  { %v319_v39 = vmul.f32 %v4009_v38, %v4005_v30  ;;  %3781 = vmatprep.subr.mxu0 %v4078_v6 }
 0x342   :  { %3769 = vmatmul.mubr.msk.f32.vlgmr.msra.gmra.mxu1 %vm146_vm2, %v319_v39  ;;  %3774 = vmatmul.mubr.msk.f32.vlgmr.msra.gmra.mxu0 %vm146_vm2, %v473_v40 }
 0x343   :  { %3777 = vmatpush3.xpose.msk.msra.mxu1 %vm146_vm2, %v553_v33  ;;  %3778 = vmatprep.mubr.msk.f32.mxu1 %vm4079_vm1, %v4078_v6 }
 0x344   :  { %3786 = vmatprep.subr.mxu1 %v4078_v6  ;;  %3783 = vmatprep.mubr.msk.f32.mxu0 %vm4079_vm1, %v4078_v6 }
 0x346   :  { %3779 = vmatmul.mubr.msk.f32.vlgmr.msra.gmra.mxu1 %vm146_vm2, %v551_v41 }
 0x347   :  { %3788 = vmatprep.mubr.msk.f32.mxu1 %vm4079_vm1, %v4078_v6 }
 0x3fe   :  { %v4252_v42 = vpop.f32.mrf.mxu0 }
 0x400   :  { %v3765_v43 = vpop.f32.mrf.mxu0 }
 0x402   :  { %v4254_v44 = vpop.f32.mrf.mxu1  ;;  %v546_v45 = vpop.f32.mrf.mxu0 }
 0x403   :  { %v628_v46 = vsel %vm146_vm2, %v546_v45, -inf }
 0x404   :  { %v3770_v47 = vpop.f32.mrf.mxu1  ;;  %629 = vmax.xlane.f32.xlu1 %v628_v46  ;;  %v3775_v48 = vpop.f32.mrf.mxu0 }
 0x406   :  { %v624_v49 = vpop.f32.mrf.mxu1 }
 0x407   :  { %v631_v50 = vsel %vm146_vm2, %v624_v49, -inf }
 0x408   :  { %632 = vmax.xlane.f32.xlu0 %v631_v50  ;;  %v3780_v51 = vpop.f32.mrf.mxu1 }
 0x415   :  { %650 = vrot.lane.b32.xlu1 %v4200_v10, %s4084_s23 }
 0x419   :  { %804 = vrot.lane.b32.xlu1 %v4200_v10, %s4085_s24 }
 0x41d   :  { %882 = vrot.lane.b32.xlu1 %v4204_v11, %s4085_s24 }
 0x41e   :  { %726 = vrot.lane.b32.xlu0 %v4204_v11, %s4084_s23  ;;  %s4093_s23 = smov 24  }
 0x422   :  { %802 = vrot.lane.b32.xlu0 %v4200_v10, %s4086_s25 }
 0x48d   :  { %v630_v52 = vpop.xlane.xlu1 %629 }
 0x48e   :  { %v634_v53 = vsub.f32 %v546_v45, %v630_v52 }
 0x490   :  { %v636_v54 = vmul.f32 1.442695, %v634_v53 }
 0x491   :  { %v651_v55 = vpop.permute.xlu1 %650  ;;  %v633_v56 = vpop.xlane.xlu0 %632 }
 0x492   :  { %4010 = vpow2.f32 %v636_v54  ;;  %v635_v57 = vsub.f32 %v624_v49, %v633_v56  ;;  %3782 = vmatpush3.msra.mxu0 %v651_v55 }
 0x493   :  { %3791 = vmatprep.subr.mxu0 %v4078_v6 }
 0x494   :  { %v638_v58 = vmul.f32 1.442695, %v635_v57 }
 0x495   :  { %v727_v59 = vpop.permute.xlu0 %726  ;;  %v805_v0 = vpop.permute.xlu1 %804 }
 0x496   :  { %4012 = vpow2.f32 %v638_v58  ;;  %3787 = vmatpush3.msra.mxu1 %v727_v59 }
 0x497   :  { %3796 = vmatprep.subr.mxu1 %v4078_v6 }
 0x499   :  { %v883_v1 = vpop.permute.xlu1 %882  ;;  %v803_v13 = vpop.permute.xlu0 %802 }
 0x49f   :  { %v4011_v60 = vpop.eup %4010 }
 0x4a0   :  { %v640_v61 = vsel %vm146_vm2, %v4011_v60, 0.0 }
 0x4a1   :  { %641 = vadd.xlane.f32.xlu1 %v640_v61 }
 0x4a3   :  { %v4013_v62 = vpop.eup %4012 }
 0x4a4   :  { %v643_v63 = vsel %vm146_vm2, %v4013_v62, 0.0 }
 0x4a5   :  { %644 = vadd.xlane.f32.xlu1 %v643_v63 }
 0x4b6   :  { %880 = vrot.lane.b32.xlu1 %v4204_v11, %s4086_s25 }
 0x52a   :  { %v642_v3 = vpop.xlane.xlu1 %641 }
 0x52b   :  { %4014 = vrcp.f32 %v642_v3 }
 0x52e   :  { %v645_v4 = vpop.xlane.xlu1 %644 }
 0x52f   :  { %4016 = vrcp.f32 %v645_v4 }
 0x532   :  { %v881_v14 = vpop.permute.xlu1 %880 }
 0x538   :  { %v4015_v7 = vpop.eup %4014 }
 0x539   :  { %v648_v8 = vmul.f32 %v4015_v7, %v4011_v60 }
 0x53b   :  { %3784 = vmatmul.mubr.msk.f32.vlgmr.msra.gmra.mxu0 %vm146_vm2, %v648_v8 }
 0x53c   :  { %v4017_v9 = vpop.eup %4016  ;;  %3792 = vmatpush3.xpose.msk.msra.mxu0 %vm146_vm2, %v805_v0  ;;  %3793 = vmatprep.mubr.msk.f32.mxu0 %vm4079_vm1, %v4078_v6 }
 0x53d   :  { %v649_v12 = vmul.f32 %v4017_v9, %v4013_v62  ;;  %3801 = vmatprep.subr.mxu0 %v4078_v6 }
 0x53f   :  { %3789 = vmatmul.mubr.msk.f32.vlgmr.msra.gmra.mxu1 %vm146_vm2, %v649_v12  ;;  %3794 = vmatmul.mubr.msk.f32.vlgmr.msra.gmra.mxu0 %vm146_vm2, %v803_v13 }
 0x540   :  { %3797 = vmatpush3.xpose.msk.msra.mxu1 %vm146_vm2, %v883_v1  ;;  %3798 = vmatprep.mubr.msk.f32.mxu1 %vm4079_vm1, %v4078_v6 }
 0x541   :  { %3806 = vmatprep.subr.mxu1 %v4078_v6  ;;  %3803 = vmatprep.mubr.msk.f32.mxu0 %vm4079_vm1, %v4078_v6 }
 0x543   :  { %3799 = vmatmul.mubr.msk.f32.vlgmr.msra.gmra.mxu1 %vm146_vm2, %v881_v14 }
 0x544   :  { %3808 = vmatprep.mubr.msk.f32.mxu1 %vm4079_vm1, %v4078_v6 }
 0x5fb   :  { %v4288_v15 = vpop.f32.mrf.mxu0 }
 0x5fd   :  { %v3785_v16 = vpop.f32.mrf.mxu0 }
 0x5ff   :  { %v4290_v17 = vpop.f32.mrf.mxu1  ;;  %v876_v18 = vpop.f32.mrf.mxu0 }
 0x600   :  { %v958_v19 = vsel %vm146_vm2, %v876_v18, -inf }
 0x601   :  { %v3790_v20 = vpop.f32.mrf.mxu1  ;;  %959 = vmax.xlane.f32.xlu0 %v958_v19  ;;  %v3795_v21 = vpop.f32.mrf.mxu0  ;;  %v1494_v19 = vld [vmem:[%s4702_s3] sm:$0xff] }
 0x603   :  { %v954_v22 = vpop.f32.mrf.mxu1 }
 0x604   :  { %v961_v23 = vsel %vm146_vm2, %v954_v22, -inf }
 0x605   :  { %962 = vmax.xlane.f32.xlu1 %v961_v23  ;;  %v3800_v24 = vpop.f32.mrf.mxu1 }
 0x616   :  { %980 = vrot.lane.b32.xlu1 %v4200_v10, %s4087_s26 }
 0x617   :  { %1056 = vrot.lane.b32.xlu0 %v4204_v11, %s4087_s26 }
 0x61a   :  { %1134 = vrot.lane.b32.xlu1 %v4200_v10, %s4088_s27 }
 0x61e   :  { %1212 = vrot.lane.b32.xlu1 %v4204_v11, %s4088_s27 }
 0x622   :  { %1210 = vrot.lane.b32.xlu1 %v4204_v11, %s4089_s28 }
 0x68a   :  { %v960_v25 = vpop.xlane.xlu0 %959 }
 0x68b   :  { %v964_v26 = vsub.f32 %v876_v18, %v960_v25  ;;  %v1495_v18 = vld [vmem:[%s4702_s3 + $0x8] sm:$0xff] }
 0x68d   :  { %v966_v27 = vmul.f32 1.442695, %v964_v26 }
 0x68e   :  { %v963_v28 = vpop.xlane.xlu1 %962  ;;  %v1057_v29 = vpop.permute.xlu0 %1056 }
 0x68f   :  { %4018 = vpow2.f32 %v966_v27  ;;  %v965_v30 = vsub.f32 %v954_v22, %v963_v28  ;;  %3807 = vmatpush3.msra.mxu1 %v1057_v29 }
 0x690   :  { %3816 = vmatprep.subr.mxu1 %v4078_v6 }
 0x691   :  { %v968_v31 = vmul.f32 1.442695, %v965_v30 }
 0x692   :  { %v981_v32 = vpop.permute.xlu1 %980 }
 0x693   :  { %4020 = vpow2.f32 %v968_v31  ;;  %3802 = vmatpush3.msra.mxu0 %v981_v32 }
 0x694   :  { %3811 = vmatprep.subr.mxu0 %v4078_v6 }
 0x696   :  { %v1135_v39 = vpop.permute.xlu1 %1134 }
 0x69a   :  { %v1213_v45 = vpop.permute.xlu1 %1212 }
 0x69c   :  { %v4019_v33 = vpop.eup %4018 }
 0x69d   :  { %v970_v34 = vsel %vm146_vm2, %v4019_v33, 0.0 }
 0x69e   :  { %971 = vadd.xlane.f32.xlu0 %v970_v34  ;;  %v1211_v48 = vpop.permute.xlu1 %1210 }
 0x6a0   :  { %v4021_v35 = vpop.eup %4020 }
 0x6a1   :  { %v973_v36 = vsel %vm146_vm2, %v4021_v35, 0.0 }
 0x6a2   :  { %974 = vadd.xlane.f32.xlu0 %v973_v36 }
 0x6b8   :  { %1132 = vrot.lane.b32.xlu0 %v4200_v10, %s4089_s28 }
 0x727   :  { %v972_v37 = vpop.xlane.xlu0 %971 }
 0x728   :  { %4022 = vrcp.f32 %v972_v37 }
 0x72b   :  { %v975_v38 = vpop.xlane.xlu0 %974 }
 0x72c   :  { %4024 = vrcp.f32 %v975_v38  ;;  %v4373_v38 = vld [vmem:[%s4703_s12] sm:$0xff] }
 0x72f   :  { %v1133_v47 = vpop.permute.xlu0 %1132 }
 0x735   :  { %v4023_v40 = vpop.eup %4022 }
 0x736   :  { %v978_v41 = vmul.f32 %v4023_v40, %v4019_v33 }
 0x738   :  { %3804 = vmatmul.mubr.msk.f32.vlgmr.msra.gmra.mxu0 %vm146_vm2, %v978_v41 }
 0x739   :  { %v4025_v43 = vpop.eup %4024  ;;  %3812 = vmatpush3.xpose.msk.msra.mxu0 %vm146_vm2, %v1135_v39  ;;  %3813 = vmatprep.mubr.msk.f32.mxu0 %vm4079_vm1, %v4078_v6 }
 0x73a   :  { %v979_v46 = vmul.f32 %v4025_v43, %v4021_v35  ;;  %3821 = vmatprep.subr.mxu0 %v4078_v6 }
 0x73c   :  { %3809 = vmatmul.mubr.msk.f32.vlgmr.msra.gmra.mxu1 %vm146_vm2, %v979_v46  ;;  %3814 = vmatmul.mubr.msk.f32.vlgmr.msra.gmra.mxu0 %vm146_vm2, %v1133_v47 }
 0x73d   :  { %3817 = vmatpush3.xpose.msk.msra.mxu1 %vm146_vm2, %v1213_v45  ;;  %3818 = vmatprep.mubr.msk.f32.mxu1 %vm4079_vm1, %v4078_v6 }
 0x73e   :  { %3826 = vmatprep.subr.mxu1 %v4078_v6  ;;  %3823 = vmatprep.mubr.msk.f32.mxu0 %vm4079_vm1, %v4078_v6 }
 0x740   :  { %3819 = vmatmul.mubr.msk.f32.vlgmr.msra.gmra.mxu1 %vm146_vm2, %v1211_v48 }
 0x741   :  { %3828 = vmatprep.mubr.msk.f32.mxu1 %vm4079_vm1, %v4078_v6 }
 0x7f8   :  { %v1052_v49 = vpop.f32.mrf.mxu0 }
 0x7fa   :  { %v3805_v50 = vpop.f32.mrf.mxu0 }
 0x7fc   :  { %v1128_v51 = vpop.f32.mrf.mxu1  ;;  %v1206_v52 = vpop.f32.mrf.mxu0 }
 0x7fd   :  { %v1288_v53 = vsel %vm146_vm2, %v1206_v52, -inf }
 0x7fe   :  { %v3810_v54 = vpop.f32.mrf.mxu1  ;;  %1289 = vmax.xlane.f32.xlu0 %v1288_v53  ;;  %v3815_v55 = vpop.f32.mrf.mxu0 }
 0x800   :  { %v1284_v56 = vpop.f32.mrf.mxu1 }
 0x801   :  { %v1291_v57 = vsel %vm146_vm2, %v1284_v56, -inf }
 0x802   :  { %1292 = vmax.xlane.f32.xlu1 %v1291_v57  ;;  %v3820_v58 = vpop.f32.mrf.mxu1 }
 0x803   :  { %v1712_v58 = vld [vmem:[%s4704_s5 + $0x10] sm:$0xff] }
 0x813   :  { %1310 = vrot.lane.b32.xlu1 %v4200_v10, %s4090_s29 }
 0x817   :  { %1464 = vrot.lane.b32.xlu1 %v4288_v15, %s4091_s30 }
 0x81b   :  { %1466 = vrot.lane.b32.xlu1 %v4290_v17, %s4091_s30  ;;  %v1496_v17 = vld [vmem:[%s4702_s3 + $0x10] sm:$0xff] }
 0x81f   :  { %1474 = vrot.lane.b32.xlu1 %v1128_v51, %s4092_s14 }
 0x887   :  { %v1290_v59 = vpop.xlane.xlu0 %1289 }
 0x888   :  { %v1294_v60 = vsub.f32 %v1206_v52, %v1290_v59  ;;  %v1711_v59 = vld [vmem:[%s4704_s5 + $0x8] sm:$0xff] }
 0x88a   :  { %v1296_v61 = vmul.f32 1.442695, %v1294_v60  ;;  %v1627_v60 = vld [vmem:[%s4705_s4 + $0x18] sm:$0xff] }
 0x88b   :  { %v1293_v62 = vpop.xlane.xlu1 %1292 }
 0x88c   :  { %4026 = vpow2.f32 %v1296_v61  ;;  %v1295_v63 = vsub.f32 %v1284_v56, %v1293_v62  ;;  %v1626_v61 = vld [vmem:[%s4705_s4 + $0x10] sm:$0xff]  ;;  %v1710_v62 = vld [vmem:[%s4704_s5] sm:$0xff] }
 0x88e   :  { %v1298_v0 = vmul.f32 1.442695, %v1295_v63  ;;  %v46_v63 = vld [vmem:[%s4706_s1] sm:$0xff] }
 0x88f   :  { %v1311_v1 = vpop.permute.xlu1 %1310 }
 0x890   :  { %4028 = vpow2.f32 %v1298_v0  ;;  %3822 = vmatpush3.msra.mxu0 %v1311_v1  ;;  %v47_v0 = vld [vmem:[%s4706_s1 + $0x8] sm:$0xff] }
 0x891   :  { %v1625_v1 = vld [vmem:[%s4705_s4 + $0x8] sm:$0xff] }
 0x893   :  { %v1465_v24 = vpop.permute.xlu1 %1464 }
 0x894   :  { %v1486_v27 = vsel %vm146_vm2, %v4252_v42, %v1465_v24  ;;  %v1498_v42 = vlaneseq }
 0x896   :  { %v4365_v36 = vshrl.u32 %v1498_v42, 7 }
 0x897   :  { %v1467_v25 = vpop.permute.xlu1 %1466 }
 0x898   :  { %v1487_v32 = vsel %vm146_vm2, %v4254_v44, %v1467_v25  ;;  %v4368_v37 = vsub.s32 0, %v4365_v36 }
 0x899   :  { %v4027_v10 = vpop.eup %4026 }
 0x89a   :  { %v1300_v3 = vsel %vm146_vm2, %v4027_v10, 0.0  ;;  %v1501_v44 = vrot.slane %v4373_v38, %v4368_v37 }
 0x89b   :  { %1301 = vadd.xlane.f32.xlu0 %v1300_v3  ;;  %v1475_v28 = vpop.permute.xlu1 %1474 }
 0x89c   :  { %v1490_v33 = vsel %vm1488_vm4, %v1487_v32, %v1475_v28  ;;  %v4094_v32 = vmov 1966171168  }
 0x89d   :  { %v4029_v4 = vpop.eup %4028 }
 0x89e   :  { %v1303_v7 = vsel %vm146_vm2, %v4029_v4, 0.0 }
 0x89f   :  { %1304 = vadd.xlane.f32.xlu0 %v1303_v7 }
 0x8b5   :  { %1386 = vrot.lane.b32.xlu0 %v4204_v11, %s4090_s29  ;;  %v1497_v11 = vld [vmem:[%s4702_s3 + $0x18] sm:$0xff] }
 0x8b6   :  { %3831 = vmatprep.subr.mxu0 %v1497_v11 }
 0x8b9   :  { %1472 = vrot.lane.b32.xlu0 %v1052_v49, %s4092_s14 }
 0x924   :  { %v1302_v8 = vpop.xlane.xlu0 %1301 }
 0x925   :  { %4030 = vrcp.f32 %v1302_v8 }
 0x928   :  { %v1305_v9 = vpop.xlane.xlu0 %1304 }
 0x929   :  { %4032 = vrcp.f32 %v1305_v9 }
 0x92c   :  { %v1387_v12 = vpop.permute.xlu0 %1386 }
 0x92d   :  { %3827 = vmatpush3.msra.mxu1 %v1387_v12 }
 0x92e   :  { %3842 = vmatprep.subr.mxu1 %v4078_v6 }
 0x930   :  { %v1473_v26 = vpop.permute.xlu0 %1472 }
 0x931   :  { %v1489_v29 = vsel %vm1488_vm4, %v1486_v27, %v1473_v26  ;;  %v3599_v27 = vld [vmem:[%s4707_s10] ss:$0 sm:$0xff] }
 0x932   :  { %v4031_v13 = vpop.eup %4030 }
 0x933   :  { %v1308_v14 = vmul.f32 %v4031_v13, %v4027_v10  ;;  %v1624_v10 = vld [vmem:[%s4705_s4] sm:$0xff]  ;;  %v1614_v13 = vsub.s32 1, %v4365_v36 }
 0x935   :  { %3824 = vmatmul.mubr.msk.f32.vlgmr.msra.gmra.mxu0 %vm146_vm2, %v1308_v14  ;;  %v1620_v14 = vsub.s32 2, %v4365_v36 }
 0x936   :  { %v4033_v15 = vpop.eup %4032  ;;  %3832 = vmatpush3.msra.mxu0 %v1497_v11 }
 0x937   :  { %v1309_v16 = vmul.f32 %v4033_v15, %v4029_v4  ;;  %3833 = vmatprep.subr.mxu0 %v1496_v17  ;;  %v1615_v15 = vrot.slane %v4373_v38, %v1614_v13 }
 0x938   :  { %3834 = vmatpush3.msra.mxu0 %v1496_v17  ;;  %v1621_v17 = vrot.slane %v4373_v38, %v1620_v14 }
 0x939   :  { %3829 = vmatmul.mubr.msk.f32.vlgmr.msra.gmra.mxu1 %vm146_vm2, %v1309_v16  ;;  %3835 = vmatprep.subr.mxu0 %v1495_v18 }
 0x93a   :  { %3850 = vmatprep.mubr.msk.f32.mxu1 %vm4079_vm1, %v4078_v6  ;;  %3836 = vmatpush3.msra.mxu0 %v1495_v18 }
 0x93b   :  { %3837 = vmatprep.subr.mxu0 %v1494_v19  ;;  %3843 = vmatpush3.msra.mxu1 %v1627_v60 }
 0x93c   :  { %3838 = vmatpush3.msra.mxu0 %v1494_v19  ;;  %3844 = vmatprep.subr.mxu1 %v4078_v6 }
 0x93d   :  { %3845 = vmatpush3.msra.mxu1 %v1626_v61 }
 0x93e   :  { %3846 = vmatprep.subr.mxu1 %v4078_v6 }
 0x93f   :  { %3847 = vmatpush3.msra.mxu1 %v1625_v1 }
 0x940   :  { %3848 = vmatprep.subr.mxu1 %v4078_v6 }
 0x941   :  { %3849 = vmatpush3.msra.mxu1 %v1624_v10 }
 0x942   :  { %3864 = vmatprep.subr.mxu1 %v4078_v6 }
 0x9f5   :  { %v1382_v20 = vpop.f32.mrf.mxu0 }
 0x9f6   :  { %1480 = vrot.lane.b32.xlu0 %v1382_v20, %s4093_s23 }
 0x9f7   :  { %v3825_v21 = vpop.f32.mrf.mxu0 }
 0x9f9   :  { %v1458_v22 = vpop.f32.mrf.mxu1 }
 0x9fa   :  { %1482 = vrot.lane.b32.xlu1 %v1458_v22, %s4093_s23 }
 0x9fb   :  { %v3830_v23 = vpop.f32.mrf.mxu1 }
 0xa68   :  { %v1481_v30 = vpop.permute.xlu0 %1480 }
 0xa69   :  { %v1492_v31 = vsel %vm1491_vm3, %v1489_v29, %v1481_v30 }
 0xa6a   :  { %3839 = vmatprep.mubr.msk.f32.mxu0 %vm61_vm0, %v1492_v31 }
 0xa6c   :  { %v1483_v34 = vpop.permute.xlu1 %1482 }
 0xa6d   :  { %v1493_v35 = vsel %vm1491_vm3, %v1490_v33, %v1483_v34  ;;  %v1804_v33 = vunpack.c.l.s4 %v4094_v32  ;;  %v1630_v34 = vsub.s32 3, %v4365_v36 }
 0xa6e   :  { %3840 = vmatmul.mubr.msk.f32.vlgmr.msra.gmra.mxu0 %vm61_vm0, %v1493_v35 }
 0xa6f   :  { %3861 = vmatprep.mubr.msk.f32.mxu0 %vm61_vm0, %v46_v63  ;;  %v1805_v35 = vunpack.c.0.s8 %v1804_v33  ;;  %v1631_v42 = vrot.slane %v4373_v38, %v1630_v34 }
 0xb2e   :  { %v3841_v39 = vpop.f32.mrf.mxu0 }
 0xb2f   :  { %v1580_v40 = vadd.f32 %v3841_v39, %v1501_v44 }
 0xb30   :  { %v1574_v41 = vpop.f32.mrf.mxu0 }
 0xb31   :  { %v1575_v43 = vadd.f32 %v1574_v41, %v1501_v44  ;;  %v1584_v45 = vadd.f32 %v1580_v40, %v4187_v5  ;;  %v1808_v44 = vsub.s32 %v1805_v35, %v4365_v36 }
 0xb33   :  { %v1588_v46 = vsel %vm61_vm0, %v1584_v45, 0.0  ;;  %v1583_v47 = vadd.f32 %v1575_v43, %v4174_v2  ;;  %v1713_v2 = vld [vmem:[%s4704_s5 + $0x18] sm:$0xff] }
 0xb34   :  { %1589 = vadd.xlane.f32.xlu1 %v1588_v46  ;;  %3853 = vmatprep.subr.mxu0 %v1713_v2 }
 0xb35   :  { %v1585_v48 = vsel %vm61_vm0, %v1583_v47, 0.0  ;;  %3854 = vmatpush3.msra.mxu0 %v1713_v2 }
 0xb36   :  { %1586 = vadd.xlane.f32.xlu0 %v1585_v48  ;;  %3855 = vmatprep.subr.mxu0 %v1712_v58 }
 0xb37   :  { %3856 = vmatpush3.msra.mxu0 %v1712_v58 }
 0xb38   :  { %3857 = vmatprep.subr.mxu0 %v1711_v59 }
 0xb39   :  { %3858 = vmatpush3.msra.mxu0 %v1711_v59 }
 0xb3a   :  { %3859 = vmatprep.subr.mxu0 %v1710_v62 }
 0xb3b   :  { %3860 = vmatpush3.msra.mxu0 %v1710_v62 }
 0xb3c   :  { %3862 = vmatmul.mubr.msk.f32.vlgmr.msra.gmra.mxu0 %vm61_vm0, %v47_v0  ;;  %3874 = vmatprep.subr.mxu0 %v4078_v6 }
 0xb3d   :  { %3876 = vmatprep.mubr.msk.f32.mxu0 %vm4079_vm1, %v4078_v6 }
 0xbbd   :  { %v1590_v49 = vpop.xlane.xlu1 %1589 }
 0xbbe   :  { %v1593_v50 = vmul.f32 0.03125, %v1590_v49 }
 0xbbf   :  { %v1587_v51 = vpop.xlane.xlu0 %1586 }
 0xbc0   :  { %v1592_v52 = vmul.f32 0.03125, %v1587_v51  ;;  %v1595_v53 = vsub.f32 %v1584_v45, %v1593_v50 }
 0xbc2   :  { %v1594_v54 = vsub.f32 %v1583_v47, %v1592_v52  ;;  %v1597_v57 = vmul.f32 %v1595_v53, %v1595_v53 }
 0xbc4   :  { %v1596_v55 = vmul.f32 %v1594_v54, %v1594_v54  ;;  %v1601_v5 = vsel %vm61_vm0, %v1597_v57, 0.0 }
 0xbc6   :  { %v1598_v56 = vsel %vm61_vm0, %v1596_v55, 0.0 }
 0xbc7   :  { %1599 = vadd.xlane.f32.xlu0 %v1598_v56 }
 0xbcb   :  { %1602 = vadd.xlane.f32.xlu0 %v1601_v5 }
 0xbfc   :  { %v3863_v28 = vpop.f32.mrf.mxu0 }
 0xbfd   :  { %v4445_v29 = vadd.f32 %v3863_v28, %v3599_v27 }
 0xbfe   :  { %v1793_v30 = vpop.f32.mrf.mxu0 }
 0xbff   :  { %v4447_v31 = vadd.f32 %v3599_v27, %v1793_v30 }
 0xc50   :  { %v1600_v3 = vpop.xlane.xlu0 %1599 }
 0xc51   :  { %v1604_v4 = vmul.f32 0.03125, %v1600_v3 }
 0xc53   :  { %v1606_v7 = vadd.f32 1e-05, %v1604_v4 }
 0xc54   :  { %v1603_v8 = vpop.xlane.xlu0 %1602 }
 0xc55   :  { %4034 = vrsqrt.f32 %v1606_v7  ;;  %v1605_v9 = vmul.f32 0.03125, %v1603_v8 }
 0xc57   :  { %v1607_v12 = vadd.f32 1e-05, %v1605_v9 }
 0xc59   :  { %4036 = vrsqrt.f32 %v1607_v12 }
 0xc62   :  { %v4035_v16 = vpop.eup %4034 }
 0xc63   :  { %v1610_v11 = vmul.f32 %v4035_v16, %v1594_v54 }
 0xc65   :  { %v1616_v18 = vmul.f32 %v1615_v15, %v1610_v11 }
 0xc66   :  { %v4037_v19 = vpop.eup %4036 }
 0xc67   :  { %v1611_v20 = vmul.f32 %v4037_v19, %v1595_v53  ;;  %v4428_v21 = vadd.f32 %v1621_v17, %v1616_v18 }
 0xc69   :  { %v1617_v22 = vmul.f32 %v1615_v15, %v1611_v20  ;;  %3329 = vst.msk [vmem:[#allocation2] sm:$0xff] %vm61_vm0, %v4428_v21  ;;  %v1634_v24 = vrot.slane %v4428_v21, 7 }
 0xc6b   :  { %v4432_v23 = vadd.f32 %v1621_v17, %v1617_v22 }
 0xc6d   :  { %v1635_v25 = vrot.slane %v4432_v23, 6  ;;  %3330 = vst.msk [vmem:[#allocation2 + $0x8] sm:$0xff] %vm61_vm0, %v4432_v23 }
 0xc6f   :  { %v1637_v26 = vsel %vm1636_vm5, %v1635_v25, %v1634_v24 }
 0xc70   :  { %3851 = vmatmul.mubr.msk.f32.vlgmr.msra.gmra.mxu1 %vm61_vm0, %v1637_v26 }
 0xc71   :  { %3866 = vmatprep.mubr.msk.f32.mxu1 %vm4079_vm1, %v4078_v6  ;;  %3865 = vmatpush3.xpose.msk.msra.mxu1 %vm146_vm2, %v4447_v31 }
 0xc72   :  { %3869 = vmatprep.subr.mxu1 %v4078_v6 }
 0xd30   :  { %v1706_v39 = vpop.f32.mrf.mxu1 }
 0xd31   :  { %v1707_v40 = vadd.f32 %v1706_v39, %v1631_v42 }
 0xd32   :  { %v3852_v41 = vpop.f32.mrf.mxu1 }
 0xd33   :  { %v1809_v43 = vrot.slane %v1707_v40, %v1808_v44 }
 0xd35   :  { %v1810_v45 = vcombine.high %v1809_v43, %v1809_v43  ;;  %v1817_v46 = vrot.slane %v1809_v43, %v1808_v44 }
 0xd37   :  { %3867 = vmatmul.mubr.msk.f32.vlgmr.msra.gmra.mxu1 %vm146_vm2, %v1817_v46  ;;  %v1824_v47 = vrot.slane %v1810_v45, %v1808_v44  ;;  %v4479_v0 = vrot.slane %v1817_v46, %v4368_v37 }
 0xd38   :  { %3870 = vmatpush3.xpose.msk.msra.mxu1 %vm146_vm2, %v4445_v29  ;;  %3871 = vmatprep.mubr.msk.f32.mxu1 %vm4079_vm1, %v4078_v6 }
 0xd39   :  { %3879 = vmatprep.subr.mxu1 %v4078_v6  ;;  %v4482_v1 = vrot.slane %v1824_v47, %v4368_v37 }
 0xd3b   :  { %3872 = vmatmul.mubr.msk.f32.vlgmr.msra.gmra.mxu1 %vm146_vm2, %v1824_v47 }
 0xd3c   :  { %3881 = vmatprep.mubr.msk.f32.mxu1 %vm4079_vm1, %v4078_v6 }
 0xdf7   :  { %v1896_v48 = vpop.f32.mrf.mxu1 }
 0xdf8   :  { %v1976_v49 = vsel %vm1975_vm6, %v1896_v48, -inf }
 0xdf9   :  { %1977 = vmax.xlane.f32.xlu0 %v1976_v49  ;;  %v3868_v50 = vpop.f32.mrf.mxu1 }
 0xdfb   :  { %v1971_v51 = vpop.f32.mrf.mxu1 }
 0xdfc   :  { %v1979_v52 = vsel %vm1975_vm6, %v1971_v51, -inf }
 0xdfd   :  { %1980 = vmax.xlane.f32.xlu1 %v1979_v52  ;;  %v3873_v53 = vpop.f32.mrf.mxu1 }
 0xe0e   :  { %2074 = vrot.lane.b32.xlu1 %v4445_v29, %s4080_s20 }
 0xe0f   :  { %1998 = vrot.lane.b32.xlu0 %v4447_v31, %s4080_s20 }
 0xe12   :  { %2238 = vrot.lane.b32.xlu1 %v4445_v29, %s4083_s22 }
 0xe16   :  { %2156 = vrot.lane.b32.xlu1 %v4447_v31, %s4083_s22 }
 0xe82   :  { %v1978_v54 = vpop.xlane.xlu0 %1977 }
 0xe83   :  { %v1982_v55 = vsub.f32 %v1896_v48, %v1978_v54 }
 0xe85   :  { %v1984_v56 = vmul.f32 1.442695, %v1982_v55 }
 0xe86   :  { %v1999_v57 = vpop.permute.xlu0 %1998  ;;  %v1981_v5 = vpop.xlane.xlu1 %1980 }
 0xe87   :  { %4038 = vpow2.f32 %v1984_v56  ;;  %v1983_v2 = vsub.f32 %v1971_v51, %v1981_v5  ;;  %3875 = vmatpush3.msra.mxu0 %v1999_v57 }
 0xe88   :  { %3884 = vmatprep.subr.mxu0 %v4078_v6 }
 0xe89   :  { %v1986_v58 = vmul.f32 1.442695, %v1983_v2 }
 0xe8a   :  { %v2075_v59 = vpop.permute.xlu1 %2074 }
 0xe8b   :  { %4040 = vpow2.f32 %v1986_v58  ;;  %3880 = vmatpush3.msra.mxu1 %v2075_v59 }
 0xe8c   :  { %3889 = vmatprep.subr.mxu1 %v4078_v6 }
 0xe8e   :  { %v2239_v10 = vpop.permute.xlu1 %2238 }
 0xe92   :  { %v2157_v3 = vpop.permute.xlu1 %2156 }
 0xe94   :  { %v4039_v60 = vpop.eup %4038 }
 0xe95   :  { %v1988_v61 = vsel %vm1975_vm6, %v4039_v60, 0.0 }
 0xe96   :  { %1989 = vadd.xlane.f32.xlu0 %v1988_v61 }
 0xe98   :  { %v4041_v62 = vpop.eup %4040 }
 0xe99   :  { %v1991_v63 = vsel %vm1975_vm6, %v4041_v62, 0.0 }
 0xe9a   :  { %1992 = vadd.xlane.f32.xlu1 %v1991_v63 }
 0xeab   :  { %2154 = vrot.lane.b32.xlu1 %v4479_v0, %s4083_s22 }
 0xeac   :  { %2236 = vrot.lane.b32.xlu0 %v4482_v1, %s4083_s22 }
 0xf1f   :  { %v1990_v4 = vpop.xlane.xlu0 %1989 }
 0xf20   :  { %4042 = vrcp.f32 %v1990_v4 }
 0xf23   :  { %v1993_v7 = vpop.xlane.xlu1 %1992  ;;  %v2237_v16 = vpop.permute.xlu0 %2236 }
 0xf24   :  { %4044 = vrcp.f32 %v1993_v7 }
 0xf27   :  { %v2155_v15 = vpop.permute.xlu1 %2154 }
 0xf2d   :  { %v4043_v8 = vpop.eup %4042 }
 0xf2e   :  { %v1996_v9 = vmul.f32 %v4043_v8, %v4039_v60 }
 0xf30   :  { %3877 = vmatmul.mubr.msk.f32.vlgmr.msra.gmra.mxu0 %vm146_vm2, %v1996_v9 }
 0xf31   :  { %v4045_v12 = vpop.eup %4044  ;;  %3885 = vmatpush3.xpose.msk.msra.mxu0 %vm146_vm2, %v2157_v3  ;;  %3886 = vmatprep.mubr.msk.f32.mxu0 %vm4079_vm1, %v4078_v6 }
 0xf32   :  { %v1997_v14 = vmul.f32 %v4045_v12, %v4041_v62  ;;  %3894 = vmatprep.subr.mxu0 %v4078_v6 }
 0xf34   :  { %3882 = vmatmul.mubr.msk.f32.vlgmr.msra.gmra.mxu1 %vm146_vm2, %v1997_v14  ;;  %3887 = vmatmul.mubr.msk.f32.vlgmr.msra.gmra.mxu0 %vm146_vm2, %v2155_v15 }
 0xf35   :  { %3890 = vmatpush3.xpose.msk.msra.mxu1 %vm146_vm2, %v2239_v10  ;;  %3891 = vmatprep.mubr.msk.f32.mxu1 %vm4079_vm1, %v4078_v6 }
 0xf36   :  { %3899 = vmatprep.subr.mxu1 %v4078_v6  ;;  %3896 = vmatprep.mubr.msk.f32.mxu0 %vm4079_vm1, %v4078_v6 }
 0xf38   :  { %3892 = vmatmul.mubr.msk.f32.vlgmr.msra.gmra.mxu1 %vm146_vm2, %v2237_v16 }
 0xf39   :  { %3901 = vmatprep.mubr.msk.f32.mxu1 %vm4079_vm1, %v4078_v6 }
 0xff0   :  { %v4504_v11 = vpop.f32.mrf.mxu0 }
 0xff2   :  { %v3878_v17 = vpop.f32.mrf.mxu0 }
 0xff4   :  { %v4506_v18 = vpop.f32.mrf.mxu1  ;;  %v2228_v19 = vpop.f32.mrf.mxu0 }
 0xff5   :  { %v2314_v20 = vsel %vm1975_vm6, %v2228_v19, -inf }
 0xff6   :  { %2315 = vmax.xlane.f32.xlu1 %v2314_v20  ;;  %v3883_v22 = vpop.f32.mrf.mxu1  ;;  %v3888_v24 = vpop.f32.mrf.mxu0 }
 0xff8   :  { %v2310_v25 = vpop.f32.mrf.mxu1 }
 0xff9   :  { %v2317_v26 = vsel %vm1975_vm6, %v2310_v25, -inf }
 0xffa   :  { %2318 = vmax.xlane.f32.xlu0 %v2317_v26  ;;  %v3893_v27 = vpop.f32.mrf.mxu1 }
0x1007   :  { %2412 = vrot.lane.b32.xlu1 %v4445_v29, %s4082_s21 }
0x100b   :  { %2568 = vrot.lane.b32.xlu1 %v4445_v29, %s4086_s25 }
0x100f   :  { %2490 = vrot.lane.b32.xlu1 %v4447_v31, %s4086_s25 }
0x1013   :  { %2488 = vrot.lane.b32.xlu1 %v4479_v0, %s4086_s25 }
0x107f   :  { %v2316_v28 = vpop.xlane.xlu1 %2315 }
0x1080   :  { %v2320_v30 = vsub.f32 %v2228_v19, %v2316_v28 }
0x1082   :  { %v2322_v32 = vmul.f32 1.442695, %v2320_v30 }
0x1083   :  { %v2413_v33 = vpop.permute.xlu1 %2412  ;;  %v2319_v34 = vpop.xlane.xlu0 %2318 }
0x1084   :  { %4046 = vpow2.f32 %v2322_v32  ;;  %v2321_v35 = vsub.f32 %v2310_v25, %v2319_v34  ;;  %3900 = vmatpush3.msra.mxu1 %v2413_v33 }
0x1085   :  { %3909 = vmatprep.subr.mxu1 %v4078_v6 }
0x1086   :  { %v2324_v42 = vmul.f32 1.442695, %v2321_v35 }
0x1087   :  { %v2569_v46 = vpop.permute.xlu1 %2568 }
0x1088   :  { %4048 = vpow2.f32 %v2324_v42 }
0x108b   :  { %v2491_v49 = vpop.permute.xlu1 %2490 }
0x108f   :  { %v2489_v53 = vpop.permute.xlu1 %2488 }
0x1091   :  { %v4047_v44 = vpop.eup %4046 }
0x1092   :  { %v2326_v39 = vsel %vm1975_vm6, %v4047_v44, 0.0 }
0x1093   :  { %2327 = vadd.xlane.f32.xlu0 %v2326_v39 }
0x1095   :  { %v4049_v40 = vpop.eup %4048 }
0x1096   :  { %v2329_v41 = vsel %vm1975_vm6, %v4049_v40, 0.0 }
0x1097   :  { %2330 = vadd.xlane.f32.xlu0 %v2329_v41 }
0x10ad   :  { %2336 = vrot.lane.b32.xlu0 %v4447_v31, %s4082_s21 }
0x10b1   :  { %2566 = vrot.lane.b32.xlu0 %v4482_v1, %s4086_s25 }
0x111c   :  { %v2328_v43 = vpop.xlane.xlu0 %2327 }
0x111d   :  { %4050 = vrcp.f32 %v2328_v43 }
0x1120   :  { %v2331_v45 = vpop.xlane.xlu0 %2330 }
0x1121   :  { %4052 = vrcp.f32 %v2331_v45 }
0x1124   :  { %v2337_v47 = vpop.permute.xlu0 %2336 }
0x1125   :  { %3895 = vmatpush3.msra.mxu0 %v2337_v47 }
0x1126   :  { %3904 = vmatprep.subr.mxu0 %v4078_v6 }
0x1128   :  { %v2567_v54 = vpop.permute.xlu0 %2566 }
0x112a   :  { %v4051_v48 = vpop.eup %4050 }
0x112b   :  { %v2334_v50 = vmul.f32 %v4051_v48, %v4047_v44 }
0x112d   :  { %3897 = vmatmul.mubr.msk.f32.vlgmr.msra.gmra.mxu0 %vm146_vm2, %v2334_v50 }
0x112e   :  { %v4053_v51 = vpop.eup %4052  ;;  %3905 = vmatpush3.xpose.msk.msra.mxu0 %vm146_vm2, %v2491_v49  ;;  %3906 = vmatprep.mubr.msk.f32.mxu0 %vm4079_vm1, %v4078_v6 }
0x112f   :  { %v2335_v52 = vmul.f32 %v4053_v51, %v4049_v40  ;;  %3914 = vmatprep.subr.mxu0 %v4078_v6 }
0x1131   :  { %3902 = vmatmul.mubr.msk.f32.vlgmr.msra.gmra.mxu1 %vm146_vm2, %v2335_v52  ;;  %3907 = vmatmul.mubr.msk.f32.vlgmr.msra.gmra.mxu0 %vm146_vm2, %v2489_v53 }
0x1132   :  { %3910 = vmatpush3.xpose.msk.msra.mxu1 %vm146_vm2, %v2569_v46  ;;  %3911 = vmatprep.mubr.msk.f32.mxu1 %vm4079_vm1, %v4078_v6 }
0x1133   :  { %3919 = vmatprep.subr.mxu1 %v4078_v6  ;;  %3916 = vmatprep.mubr.msk.f32.mxu0 %vm4079_vm1, %v4078_v6 }
0x1135   :  { %3912 = vmatmul.mubr.msk.f32.vlgmr.msra.gmra.mxu1 %vm146_vm2, %v2567_v54 }
0x1136   :  { %3921 = vmatprep.mubr.msk.f32.mxu1 %vm4079_vm1, %v4078_v6 }
0x11ed   :  { %v4542_v55 = vpop.f32.mrf.mxu0 }
0x11ef   :  { %v3898_v56 = vpop.f32.mrf.mxu0 }
0x11f1   :  { %v4544_v57 = vpop.f32.mrf.mxu1  ;;  %v2562_v5 = vpop.f32.mrf.mxu0 }
0x11f2   :  { %v2644_v2 = vsel %vm1975_vm6, %v2562_v5, -inf }
0x11f3   :  { %2645 = vmax.xlane.f32.xlu1 %v2644_v2  ;;  %v3903_v58 = vpop.f32.mrf.mxu1  ;;  %v3908_v59 = vpop.f32.mrf.mxu0 }
0x11f4   :  { %v3180_v59 = vld [vmem:[%s4708_s6 + $0x10] sm:$0xff] }
0x11f5   :  { %v2640_v60 = vpop.f32.mrf.mxu1 }
0x11f6   :  { %v2647_v61 = vsel %vm1975_vm6, %v2640_v60, -inf }
0x11f7   :  { %2648 = vmax.xlane.f32.xlu0 %v2647_v61  ;;  %v3913_v62 = vpop.f32.mrf.mxu1  ;;  %v3178_v61 = vld [vmem:[%s4708_s6] sm:$0xff] }
0x1204   :  { %2742 = vrot.lane.b32.xlu1 %v4445_v29, %s4085_s24 }
0x1208   :  { %2898 = vrot.lane.b32.xlu1 %v4445_v29, %s4089_s28 }
0x120c   :  { %2820 = vrot.lane.b32.xlu1 %v4447_v31, %s4089_s28 }
0x1210   :  { %2818 = vrot.lane.b32.xlu1 %v4479_v0, %s4089_s28 }
0x127c   :  { %v2646_v63 = vpop.xlane.xlu1 %2645 }
0x127d   :  { %v2650_v10 = vsub.f32 %v2562_v5, %v2646_v63 }
0x127f   :  { %v2652_v3 = vmul.f32 1.442695, %v2650_v10 }
0x1280   :  { %v2743_v4 = vpop.permute.xlu1 %2742  ;;  %v2649_v7 = vpop.xlane.xlu0 %2648 }
0x1281   :  { %4054 = vpow2.f32 %v2652_v3  ;;  %v2651_v8 = vsub.f32 %v2640_v60, %v2649_v7  ;;  %3920 = vmatpush3.msra.mxu1 %v2743_v4  ;;  %v3179_v60 = vld [vmem:[%s4708_s6 + $0x8] sm:$0xff] }
0x1282   :  { %3929 = vmatprep.subr.mxu1 %v4078_v6 }
0x1283   :  { %v2654_v9 = vmul.f32 1.442695, %v2651_v8 }
0x1284   :  { %v2899_v19 = vpop.permute.xlu1 %2898 }
0x1285   :  { %4056 = vpow2.f32 %v2654_v9 }
0x1288   :  { %v2821_v24 = vpop.permute.xlu1 %2820 }
0x128c   :  { %v2819_v27 = vpop.permute.xlu1 %2818 }
0x128e   :  { %v4055_v12 = vpop.eup %4054 }
0x128f   :  { %v2656_v14 = vsel %vm1975_vm6, %v4055_v12, 0.0 }
0x1290   :  { %2657 = vadd.xlane.f32.xlu0 %v2656_v14 }
0x1292   :  { %v4057_v15 = vpop.eup %4056 }
0x1293   :  { %v2659_v16 = vsel %vm1975_vm6, %v4057_v15, 0.0 }
0x1294   :  { %2660 = vadd.xlane.f32.xlu0 %v2659_v16 }
0x12aa   :  { %2666 = vrot.lane.b32.xlu0 %v4447_v31, %s4085_s24 }
0x12ae   :  { %2896 = vrot.lane.b32.xlu0 %v4482_v1, %s4089_s28 }
0x1319   :  { %v2658_v0 = vpop.xlane.xlu0 %2657 }
0x131a   :  { %4058 = vrcp.f32 %v2658_v0 }
0x131d   :  { %v2661_v17 = vpop.xlane.xlu0 %2660 }
0x131e   :  { %4060 = vrcp.f32 %v2661_v17 }
0x1321   :  { %v2667_v20 = vpop.permute.xlu0 %2666 }
0x1322   :  { %3915 = vmatpush3.msra.mxu0 %v2667_v20 }
0x1323   :  { %3924 = vmatprep.subr.mxu0 %v4078_v6 }
0x1325   :  { %v2897_v28 = vpop.permute.xlu0 %2896 }
0x1327   :  { %v4059_v22 = vpop.eup %4058 }
0x1328   :  { %v2664_v25 = vmul.f32 %v4059_v22, %v4055_v12 }
0x132a   :  { %3917 = vmatmul.mubr.msk.f32.vlgmr.msra.gmra.mxu0 %vm146_vm2, %v2664_v25 }
0x132b   :  { %v4061_v26 = vpop.eup %4060  ;;  %3925 = vmatpush3.xpose.msk.msra.mxu0 %vm146_vm2, %v2821_v24  ;;  %3926 = vmatprep.mubr.msk.f32.mxu0 %vm4079_vm1, %v4078_v6 }
0x132c   :  { %v2665_v1 = vmul.f32 %v4061_v26, %v4057_v15  ;;  %3934 = vmatprep.subr.mxu0 %v4078_v6 }
0x132e   :  { %3922 = vmatmul.mubr.msk.f32.vlgmr.msra.gmra.mxu1 %vm146_vm2, %v2665_v1  ;;  %3927 = vmatmul.mubr.msk.f32.vlgmr.msra.gmra.mxu0 %vm146_vm2, %v2819_v27 }
0x132f   :  { %3930 = vmatpush3.xpose.msk.msra.mxu1 %vm146_vm2, %v2899_v19  ;;  %3931 = vmatprep.mubr.msk.f32.mxu1 %vm4079_vm1, %v4078_v6 }
0x1330   :  { %3939 = vmatprep.subr.mxu1 %v4078_v6  ;;  %3936 = vmatprep.mubr.msk.f32.mxu0 %vm4079_vm1, %v4078_v6 }
0x1332   :  { %3932 = vmatmul.mubr.msk.f32.vlgmr.msra.gmra.mxu1 %vm146_vm2, %v2897_v28 }
0x1333   :  { %3941 = vmatprep.mubr.msk.f32.mxu1 %vm4079_vm1, %v4078_v6 }
0x13ea   :  { %v2738_v30 = vpop.f32.mrf.mxu0 }
0x13ec   :  { %v3918_v32 = vpop.f32.mrf.mxu0 }
0x13ee   :  { %v2814_v33 = vpop.f32.mrf.mxu1  ;;  %v2892_v34 = vpop.f32.mrf.mxu0 }
0x13ef   :  { %v2974_v35 = vsel %vm1975_vm6, %v2892_v34, -inf }
0x13f0   :  { %2975 = vmax.xlane.f32.xlu1 %v2974_v35  ;;  %v3923_v42 = vpop.f32.mrf.mxu1  ;;  %v3928_v44 = vpop.f32.mrf.mxu0 }
0x13f2   :  { %v2970_v39 = vpop.f32.mrf.mxu1 }
0x13f3   :  { %v2977_v40 = vsel %vm1975_vm6, %v2970_v39, -inf }
0x13f4   :  { %2978 = vmax.xlane.f32.xlu0 %v2977_v40  ;;  %v3933_v41 = vpop.f32.mrf.mxu1 }
0x1401   :  { %3072 = vrot.lane.b32.xlu1 %v4445_v29, %s4088_s27 }
0x1405   :  { %3152 = vrot.lane.b32.xlu1 %v4544_v57, %s4091_s30 }
0x1409   :  { %3160 = vrot.lane.b32.xlu1 %v2814_v33, %s4092_s14 }
0x1479   :  { %v2976_v43 = vpop.xlane.xlu1 %2975 }
0x147a   :  { %v2980_v45 = vsub.f32 %v2892_v34, %v2976_v43 }
0x147c   :  { %v2982_v46 = vmul.f32 1.442695, %v2980_v45 }
0x147d   :  { %v3073_v47 = vpop.permute.xlu1 %3072  ;;  %v2979_v48 = vpop.xlane.xlu0 %2978 }
0x147e   :  { %4062 = vpow2.f32 %v2982_v46  ;;  %v2981_v49 = vsub.f32 %v2970_v39, %v2979_v48  ;;  %3940 = vmatpush3.msra.mxu1 %v3073_v47  ;;  %v3338_v48 = vld [vmem:[%s4709_s7 + $0x18] sm:$0xff] }
0x147f   :  { %3955 = vmatprep.subr.mxu1 %v3338_v48 }
0x1480   :  { %v2984_v50 = vmul.f32 1.442695, %v2981_v49  ;;  %v3337_v49 = vld [vmem:[%s4709_s7 + $0x10] sm:$0xff] }
0x1481   :  { %v3153_v4 = vpop.permute.xlu1 %3152 }
0x1482   :  { %4064 = vpow2.f32 %v2984_v50  ;;  %v3173_v9 = vsel %vm146_vm2, %v4506_v18, %v3153_v4  ;;  %v3184_v18 = vsub.s32 4, %v4365_v36  ;;  %v3336_v50 = vld [vmem:[%s4709_s7 + $0x8] sm:$0xff] }
0x1484   :  { %v3185_v24 = vrot.slane %v4373_v38, %v3184_v18 }
0x1485   :  { %v3161_v8 = vpop.permute.xlu1 %3160 }
0x148b   :  { %v4063_v51 = vpop.eup %4062 }
0x148c   :  { %v2986_v52 = vsel %vm1975_vm6, %v4063_v51, 0.0 }
0x148d   :  { %2987 = vadd.xlane.f32.xlu0 %v2986_v52  ;;  %v3436_v52 = vld [vmem:[%s4710_s8 + $0x38] sm:$0xff] }
0x148f   :  { %v4065_v29 = vpop.eup %4064 }
0x1490   :  { %v2989_v53 = vsel %vm1975_vm6, %v4065_v29, 0.0 }
0x1491   :  { %2990 = vadd.xlane.f32.xlu0 %v2989_v53  ;;  %v3434_v53 = vld [vmem:[%s4710_s8 + $0x28] sm:$0xff] }
0x14a7   :  { %2996 = vrot.lane.b32.xlu0 %v4447_v31, %s4088_s27 }
0x14ab   :  { %3150 = vrot.lane.b32.xlu0 %v4542_v55, %s4091_s30  ;;  %v3181_v55 = vld [vmem:[%s4708_s6 + $0x18] sm:$0xff] }
0x14af   :  { %3158 = vrot.lane.b32.xlu0 %v2738_v30, %s4092_s14 }
0x1516   :  { %v2988_v54 = vpop.xlane.xlu0 %2987 }
0x1517   :  { %4066 = vrcp.f32 %v2988_v54  ;;  %v3433_v54 = vld [vmem:[%s4710_s8 + $0x20] sm:$0xff] }
0x151a   :  { %v2991_v56 = vpop.xlane.xlu0 %2990 }
0x151b   :  { %4068 = vrcp.f32 %v2991_v56 }
0x151e   :  { %v2997_v57 = vpop.permute.xlu0 %2996 }
0x151f   :  { %3935 = vmatpush3.msra.mxu0 %v2997_v57 }
0x1520   :  { %3944 = vmatprep.subr.mxu0 %v4078_v6 }
0x1522   :  { %v3151_v7 = vpop.permute.xlu0 %3150 }
0x1523   :  { %v3172_v16 = vsel %vm146_vm2, %v4504_v11, %v3151_v7 }
0x1524   :  { %v4067_v5 = vpop.eup %4066 }
0x1525   :  { %v2994_v2 = vmul.f32 %v4067_v5, %v4063_v51  ;;  %v3335_v51 = vld [vmem:[%s4709_s7] sm:$0xff] }
0x1526   :  { %v3159_v14 = vpop.permute.xlu0 %3158 }
0x1527   :  { %3937 = vmatmul.mubr.msk.f32.vlgmr.msra.gmra.mxu0 %vm146_vm2, %v2994_v2  ;;  %v3174_v0 = vsel %vm1488_vm4, %v3172_v16, %v3159_v14  ;;  %v3431_v16 = vld [vmem:[%s4710_s8 + $0x10] sm:$0xff] }
0x1528   :  { %v4069_v58 = vpop.eup %4068  ;;  %3952 = vmatprep.mubr.msk.f32.mxu0 %vm4079_vm1, %v4078_v6  ;;  %3945 = vmatpush3.msra.mxu0 %v3181_v55  ;;  %v3319_v55 = vsub.s32 5, %v4365_v36 }
0x1529   :  { %v2995_v31 = vmul.f32 %v4069_v58, %v4065_v29  ;;  %3946 = vmatprep.subr.mxu0 %v4078_v6  ;;  %v3435_v29 = vld [vmem:[%s4710_s8 + $0x30] sm:$0xff] }
0x152a   :  { %3947 = vmatpush3.msra.mxu0 %v3180_v59  ;;  %v3325_v59 = vsub.s32 6, %v4365_v36 }
0x152b   :  { %3942 = vmatmul.mubr.msk.f32.vlgmr.msra.gmra.mxu1 %vm146_vm2, %v2995_v31  ;;  %3948 = vmatprep.subr.mxu0 %v4078_v6 }
0x152c   :  { %3949 = vmatpush3.msra.mxu0 %v3179_v60  ;;  %3956 = vmatpush3.msra.mxu1 %v3338_v48 }
0x152d   :  { %3950 = vmatprep.subr.mxu0 %v4078_v6  ;;  %v3175_v6 = vsel %vm1488_vm4, %v3173_v9, %v3161_v8  ;;  %3957 = vmatprep.subr.mxu1 %v3337_v49 }
0x152e   :  { %3951 = vmatpush3.msra.mxu0 %v3178_v61  ;;  %3958 = vmatpush3.msra.mxu1 %v3337_v49  ;;  %v3320_v61 = vrot.slane %v4373_v38, %v3319_v55 }
0x152f   :  { %3959 = vmatprep.subr.mxu1 %v3336_v50  ;;  %3966 = vmatprep.subr.mxu0 %v3436_v52 }
0x1530   :  { %3960 = vmatpush3.msra.mxu1 %v3336_v50 }
0x1531   :  { %3961 = vmatprep.subr.mxu1 %v3335_v51 }
0x1532   :  { %3962 = vmatpush3.msra.mxu1 %v3335_v51 }
0x15e7   :  { %v3068_v62 = vpop.f32.mrf.mxu0 }
0x15e9   :  { %v3938_v63 = vpop.f32.mrf.mxu0 }
0x15ea   :  { %v3326_v63 = vrot.slane %v4373_v38, %v3325_v59 }
0x15eb   :  { %v3144_v10 = vpop.f32.mrf.mxu1 }
0x15ec   :  { %3168 = vrot.lane.b32.xlu1 %v3144_v10, %s4093_s23 }
0x15ed   :  { %v3943_v3 = vpop.f32.mrf.mxu1 }
0x15f0   :  { %3166 = vrot.lane.b32.xlu1 %v3068_v62, %s4093_s23 }
0x165e   :  { %v3169_v12 = vpop.permute.xlu1 %3168 }
0x165f   :  { %v3177_v15 = vsel %vm1491_vm3, %v3175_v6, %v3169_v12 }
0x1660   :  { %v3188_v17 = vrot.slane %v3177_v15, 7  ;;  %v3432_v15 = vld [vmem:[%s4710_s8 + $0x18] sm:$0xff] }
0x1662   :  { %v3167_v19 = vpop.permute.xlu1 %3166 }
0x1663   :  { %v3176_v20 = vsel %vm1491_vm3, %v3174_v0, %v3167_v19  ;;  %v3430_v0 = vld [vmem:[%s4710_s8 + $0x8] sm:$0xff]  ;;  %v3627_v19 = vld [vmem:[%s4711_s11] ss:$0 sm:$0xff] }
0x1664   :  { %v3189_v22 = vsel %vm1636_vm5, %v3188_v17, %v3176_v20  ;;  %v3429_v17 = vld [vmem:[%s4710_s8] sm:$0xff] }
0x1665   :  { %3953 = vmatmul.mubr.msk.f32.vlgmr.msra.gmra.mxu0 %vm61_vm0, %v3189_v22 }
0x1666   :  { %3967 = vmatpush3.msra.mxu0 %v3436_v52 }
0x1667   :  { %3968 = vmatprep.subr.mxu0 %v3435_v29 }
0x1668   :  { %3969 = vmatpush3.msra.mxu0 %v3435_v29  ;;  %v49_v29 = vld [vmem:[%s4703_s12 + $0x8] sm:$0x3] }
0x1669   :  { %3970 = vmatprep.subr.mxu0 %v3434_v53 }
0x166a   :  { %3971 = vmatpush3.msra.mxu0 %v3434_v53  ;;  %v3554_v53 = vrot.slane %v49_v29, %v4368_v37 }
0x166b   :  { %3972 = vmatprep.subr.mxu0 %v3433_v54 }
0x166c   :  { %3973 = vmatpush3.msra.mxu0 %v3433_v54 }
0x166d   :  { %3974 = vmatprep.subr.mxu0 %v3432_v15 }
0x166e   :  { %3975 = vmatpush3.msra.mxu0 %v3432_v15 }
0x166f   :  { %3976 = vmatprep.subr.mxu0 %v3431_v16 }
0x1670   :  { %3977 = vmatpush3.msra.mxu0 %v3431_v16 }
0x1671   :  { %3978 = vmatprep.subr.mxu0 %v3430_v0 }
0x1672   :  { %3979 = vmatpush3.msra.mxu0 %v3430_v0 }
0x1673   :  { %3980 = vmatprep.subr.mxu0 %v3429_v17 }
0x1674   :  { %3981 = vmatpush3.msra.mxu0 %v3429_v17 }
0x1725   :  { %v3258_v25 = vpop.f32.mrf.mxu0 }
0x1726   :  { %v3259_v26 = vadd.f32 %v3258_v25, %v3185_v24 }
0x1727   :  { %v3954_v1 = vpop.f32.mrf.mxu0 }
0x1728   :  { %v3263_v27 = vrot.slane %v3259_v26, 1  ;;  %v3264_v28 = vrot.slane %v3259_v26, 2  ;;  %v3439_v1 = vsub.s32 7, %v4365_v36 }
0x172a   :  { %v3267_v11 = vadd.f32 %v3263_v27, %v4428_v21  ;;  %v3268_v30 = vadd.f32 %v3264_v28, %v4432_v23  ;;  %v3440_v27 = vrot.slane %v4373_v38, %v3439_v1 }
0x172c   :  { %v3275_v32 = vsel %vm3274_vm7, %v3267_v11, 0.0  ;;  %v3271_v33 = vrot.slane %v3268_v30, 7 }
0x172d   :  { %3276 = vadd.xlane.f32.xlu1 %v3275_v32 }
0x172e   :  { %v3279_v34 = vsel %vm3278_vm8, %v3271_v33, 0.0 }
0x172f   :  { %3280 = vadd.xlane.f32.xlu0 %v3279_v34 }
0x17b6   :  { %v3277_v35 = vpop.xlane.xlu1 %3276 }
0x17b7   :  { %v3282_v39 = vmul.f32 0.03125, %v3277_v35 }
0x17b8   :  { %v3281_v42 = vpop.xlane.xlu0 %3280 }
0x17b9   :  { %v3283_v44 = vmul.f32 0.03125, %v3281_v42  ;;  %v3289_v43 = vsub.f32 %v3267_v11, %v3282_v39 }
0x17bb   :  { %v3286_v40 = vrot.slane %v3283_v44, 1  ;;  %v3291_v21 = vmul.f32 %v3289_v43, %v3289_v43 }
0x17bd   :  { %v3290_v41 = vsub.f32 %v3268_v30, %v3286_v40  ;;  %v3298_v23 = vsel %vm3274_vm7, %v3291_v21, 0.0 }
0x17bf   :  { %v3292_v45 = vmul.f32 %v3290_v41, %v3290_v41 }
0x17c1   :  { %v3295_v46 = vrot.slane %v3292_v45, 7 }
0x17c3   :  { %v3301_v47 = vsel %vm3278_vm8, %v3295_v46, 0.0 }
0x17c4   :  { %3302 = vadd.xlane.f32.xlu0 %v3301_v47 }
0x17c8   :  { %3299 = vadd.xlane.f32.xlu0 %v3298_v23 }
0x184d   :  { %v3303_v56 = vpop.xlane.xlu0 %3302 }
0x184e   :  { %v3305_v57 = vmul.f32 0.03125, %v3303_v56  ;;  %v3560_v56 = vrot.slane %v49_v29, %v1614_v13 }
0x1850   :  { %v3307_v5 = vadd.f32 1e-05, %v3305_v57 }
0x1851   :  { %v3300_v2 = vpop.xlane.xlu0 %3299 }
0x1852   :  { %4070 = vrsqrt.f32 %v3307_v5  ;;  %v3304_v58 = vmul.f32 0.03125, %v3300_v2 }
0x1854   :  { %v3306_v31 = vadd.f32 1e-05, %v3304_v58 }
0x1856   :  { %4072 = vrsqrt.f32 %v3306_v31 }
0x185f   :  { %v4071_v60 = vpop.eup %4070 }
0x1860   :  { %v3312_v62 = vrot.slane %v4071_v60, 1 }
0x1862   :  { %v3316_v10 = vmul.f32 %v3312_v62, %v3290_v41 }
0x1863   :  { %v4073_v3 = vpop.eup %4072 }
0x1864   :  { %v3322_v4 = vmul.f32 %v3320_v61, %v3316_v10  ;;  %v3315_v7 = vmul.f32 %v4073_v3, %v3289_v43 }
0x1866   :  { %v3328_v8 = vadd.f32 %v3326_v63, %v3322_v4  ;;  %v3321_v9 = vmul.f32 %v3320_v61, %v3315_v7 }
0x1868   :  { %3332 = vst.msk [vmem:[#allocation2 + $0x8] sm:$0x80] %vm3274_vm7, %v3328_v8  ;;  %v3327_v6 = vadd.f32 %v3326_v63, %v3321_v9 }
0x186a   :  { %3331 = vst.msk [vmem:[#allocation2] sm:$0x80] %vm3274_vm7, %v3327_v6 }
0x186f   :  { %v3334_v14 = vld [vmem:[#allocation2 + $0x8] sm:$0xff] }
0x1871   :  { %v3333_v12 = vld [vmem:[#allocation2] sm:$0xff] }
0x1872   :  { %3963 = vmatprep.mubr.msk.f32.mxu1 %vm61_vm0, %v3333_v12 }
0x1873   :  { %3964 = vmatmul.mubr.msk.f32.vlgmr.msra.gmra.mxu1 %vm61_vm0, %v3334_v14 }
0x1933   :  { %v3965_v20 = vpop.f32.mrf.mxu1 }
0x1934   :  { %v3424_v22 = vadd.f32 %v3965_v20, %v3627_v19 }
0x1935   :  { %v3418_v18 = vpop.f32.mrf.mxu1 }
0x1936   :  { %v3419_v24 = vadd.f32 %v3627_v19, %v3418_v18  ;;  %v3428_v26 = vmax.f32 %v3424_v22, 0.0 }
0x1938   :  { %v3427_v25 = vmax.f32 %v3419_v24, 0.0 }
0x193a   :  { %3982 = vmatprep.mubr.msk.f32.mxu0 %vm3441_vm9, %v3427_v25 }
0x193b   :  { %3983 = vmatmul.mubr.msk.f32.vlgmr.msra.gmra.mxu0 %vm3441_vm9, %v3428_v26 }
0x19fb   :  { %v3984_v28 = vpop.f32.mrf.mxu0 }
0x19fc   :  { %v3520_v11 = vadd.f32 %v3984_v28, %v3440_v27 }
0x19fd   :  { %v3514_v30 = vpop.f32.mrf.mxu0 }
0x19fe   :  { %v3515_v32 = vadd.f32 %v3514_v30, %v3440_v27  ;;  %v3524_v33 = vadd.f32 %v3520_v11, %v3334_v14 }
0x1a00   :  { %v3523_v34 = vadd.f32 %v3515_v32, %v3333_v12  ;;  %v3528_v35 = vsel %vm61_vm0, %v3524_v33, 0.0 }
0x1a01   :  { %3529 = vadd.xlane.f32.xlu0 %v3528_v35 }
0x1a02   :  { %v3525_v42 = vsel %vm61_vm0, %v3523_v34, 0.0 }
0x1a03   :  { %3526 = vadd.xlane.f32.xlu1 %v3525_v42 }
0x1a8a   :  { %v3530_v44 = vpop.xlane.xlu0 %3529 }
0x1a8b   :  { %v3532_v39 = vmul.f32 0.03125, %v3530_v44 }
0x1a8c   :  { %v3527_v40 = vpop.xlane.xlu1 %3526 }
0x1a8d   :  { %v3534_v41 = vsub.f32 %v3524_v33, %v3532_v39  ;;  %v3531_v43 = vmul.f32 0.03125, %v3527_v40 }
0x1a8f   :  { %v3533_v45 = vsub.f32 %v3523_v34, %v3531_v43  ;;  %v3536_v46 = vmul.f32 %v3534_v41, %v3534_v41 }
0x1a91   :  { %v3540_v38 = vsel %vm61_vm0, %v3536_v46, 0.0  ;;  %v3535_v47 = vmul.f32 %v3533_v45, %v3533_v45 }
0x1a92   :  { %3541 = vadd.xlane.f32.xlu0 %v3540_v38 }
0x1a93   :  { %v3537_v21 = vsel %vm61_vm0, %v3535_v47, 0.0 }
0x1a94   :  { %3538 = vadd.xlane.f32.xlu1 %v3537_v21 }
0x1b1b   :  { %v3542_v23 = vpop.xlane.xlu0 %3541 }
0x1b1c   :  { %v3544_v48 = vmul.f32 0.03125, %v3542_v23 }
0x1b1d   :  { %v3539_v49 = vpop.xlane.xlu1 %3538 }
0x1b1e   :  { %v3546_v50 = vadd.f32 1e-05, %v3544_v48  ;;  %v3543_v51 = vmul.f32 0.03125, %v3539_v49 }
0x1b20   :  { %4074 = vrsqrt.f32 %v3546_v50  ;;  %v3545_v52 = vadd.f32 1e-05, %v3543_v51 }
0x1b22   :  { %4076 = vrsqrt.f32 %v3545_v52 }
0x1b2d   :  { %v4075_v54 = vpop.eup %4074 }
0x1b2e   :  { %v3550_v57 = vmul.f32 %v4075_v54, %v3534_v41 }
0x1b2f   :  { %v4077_v5 = vpop.eup %4076 }
0x1b30   :  { %v3556_v2 = vmul.f32 %v3554_v53, %v3550_v57  ;;  %v3549_v58 = vmul.f32 %v4077_v5, %v3533_v45 }
0x1b32   :  { %v3562_v31 = vadd.f32 %v3560_v56, %v3556_v2  ;;  %v3555_v55 = vmul.f32 %v3554_v53, %v3549_v58 }
0x1b34   :  { %3564 = vst.msk [vmem:[%s4712_s13 + $0x8] sm:$0xff] %vm61_vm0, %v3562_v31  ;;  %v3561_v59 = vadd.f32 %v3560_v56, %v3555_v55 }
0x1b36   :  { %3563 = vst.msk [vmem:[%s4712_s13] sm:$0xff] %vm61_vm0, %v3561_v59 }

// kernel: encoder_forward.3
= control target key start
LH: loop header
LB: loop body
LE: loop exit
PB: predicated region body
PF: predicated region fallthrough
CT: control target
= control target key end

     0   :  { %18 = vsyncpa [#allocation4], 0  ;;  %s4940_s0 = inlined_call_operand.hbm [shape: f32[2,8,32], index: 0, kind: input, shape index: {}]   ;;  %s4941_s1 = inlined_call_operand.vmem [shape: f32[2,8,32], index: 1, kind: input, shape index: {}]   ;;  %s4942_s2 = inlined_call_operand.vmem [shape: f32[32,96], index: 2, kind: input, shape index: {}]   ;;  %s4943_s3 = inlined_call_operand.vmem [shape: f32[32,32], index: 3, kind: input, shape index: {}]   ;;  %s4944_s4 = inlined_call_operand.vmem [shape: f32[32,32], index: 4, kind: input, shape index: {}]   ;;  %s4945_s5 = inlined_call_operand.hbm [shape: f32[32,64], index: 5, kind: input, shape index: {}]   ;;  %s4946_s6 = inlined_call_operand.hbm [shape: f32[32,32], index: 6, kind: input, shape index: {}]   ;;  %s4947_s7 = inlined_call_operand.hbm [shape: f32[32,64], index: 7, kind: input, shape index: {}]   ;;  %s4948_s8 = inlined_call_operand.vmem [shape: f32[64,32], index: 8, kind: input, shape index: {}]   ;;  %s4949_s9 = inlined_call_operand.vmem [shape: f32[1,96], index: 9, kind: input, shape index: {}]   ;;  %s4950_s10 = inlined_call_operand.hbm [shape: f32[1,64], index: 10, kind: input, shape index: {}]   ;;  %s4951_s11 = inlined_call_operand.hbm [shape: f32[1,64], index: 11, kind: input, shape index: {}]   ;;  %s4952_s12 = inlined_call_operand.hbm [shape: f32[10,32], index: 12, kind: input, shape index: {}]   ;;  %s4953_s13 = inlined_call_operand.vmem [shape: f32[2,8,32], index: 13, kind: output, shape index: {}]  }
   0x1   :  { %19 = vsyncpa [#allocation6], 0 }
   0x2   :  { %20 = vsyncpa [#allocation9], 0 }
   0x3   :  { %21 = vsyncpa [#allocation12], 0  ;;  %s4329_s25 = smov [#allocation5]   ;;  %s4330_s27 = smov [#allocation8]  }
   0x4   :  { %s47_s26 = sshll.u32 %s4329_s25, 4  ;;  %s71_s28 = sshll.u32 %s4330_s27, 4  ;;  %s48_s26 = int_to_ptr.vmem [resolvable:$true] %s47_s26  ;;  %s72_s28 = int_to_ptr.vmem [resolvable:$true] %s71_s28 }
   0x5   :  { %s4189_s29 = scalar_lea.vmem %s48_s26, 512  ;;  %p4194_p1 = scmp.lt.s32.totalorder %s48_s26, %s48_s26 }
   0x6   :  { %p4190_p0 = scmp.ne.s32.totalorder %s48_s26, %s4189_s29  ;;  %p4195_p2 = scmp.lt.s32.totalorder %s4189_s29, %s4189_s29 }
   0x8   :  { %p4196_p3 = por %p4195_p2, %p4194_p1 }
   0xa   :  { %p4197_p4 = pnand %p4196_p3, %p4190_p0 }
   0xc   :  { %4200 = shalt.err (!%p4197_p4)
}
   0xd   :  { %s4331_s30 = smov 128   ;;  %s4332_s14 = smov 8  }
   0xe   :  { %53 = dma.hbm_to_vmem [thread:$0]  %s4945_s5, 512, %s48_s26, [#allocation6], %s4331_s30, %s4331_s30, %s4332_s14  }
   0xf   :  { %s4209_s17 = scalar_lea.vmem %s72_s28, 512  ;;  %p4214_p6 = scmp.lt.s32.totalorder %s72_s28, %s72_s28 }
  0x10   :  { %p4210_p5 = scmp.ne.s32.totalorder %s72_s28, %s4209_s17  ;;  %p4215_p7 = scmp.lt.s32.totalorder %s4209_s17, %s4209_s17 }
  0x12   :  { %p4216_p8 = por %p4215_p7, %p4214_p6 }
  0x14   :  { %p4217_p9 = pnand %p4216_p8, %p4210_p5 }
  0x16   :  { %4220 = shalt.err (!%p4217_p9)
}
  0x17   :  { %77 = dma.hbm_to_vmem [thread:$0]  %s4947_s7, 512, %s72_s28, [#allocation9], %s4331_s30, %s4331_s30, %s4332_s14  }
  0x18   :  { %s4333_s20 = smov [#allocation11]   ;;  %s4334_s22 = smov [#allocation3]  }
  0x19   :  { %s98_s21 = sshll.u32 %s4333_s20, 4  ;;  %s27_s23 = sshll.u32 %s4334_s22, 4  ;;  %s99_s21 = int_to_ptr.vmem [resolvable:$true] %s98_s21  ;;  %s28_s23 = int_to_ptr.vmem [resolvable:$true] %s27_s23 }
  0x1a   :  { %s4229_s5 = scalar_lea.vmem %s99_s21, 16  ;;  %s4233_s24 = scalar_lea.vmem %s99_s21, 32 }
  0x1b   :  { %p4230_p10 = scmp.ne.s32.totalorder %s99_s21, %s4229_s5  ;;  %p4234_p11 = scmp.lt.s32.totalorder %s99_s21, %s99_s21 }
  0x1c   :  { %p4235_p12 = scmp.lt.s32.totalorder %s4233_s24, %s4229_s5 }
  0x1e   :  { %p4236_p13 = por %p4235_p12, %p4234_p11 }
  0x20   :  { %p4237_p0 = pnand %p4236_p13, %p4230_p10 }
  0x22   :  { %4240 = shalt.err (!%p4237_p0)
}
  0x23   :  { %101 = dma.hbm_to_vmem [thread:$0]  %s4951_s11, 16, %s99_s21, [#allocation12]  }
  0x24   :  { %s4249_s27 = scalar_lea.vmem %s28_s23, 256  ;;  %p4254_p2 = scmp.lt.s32.totalorder %s28_s23, %s28_s23 }
  0x25   :  { %p4250_p1 = scmp.ne.s32.totalorder %s28_s23, %s4249_s27  ;;  %p4255_p3 = scmp.lt.s32.totalorder %s4249_s27, %s4249_s27 }
  0x27   :  { %p4256_p4 = por %p4255_p3, %p4254_p2 }
  0x29   :  { %p4257_p5 = pnand %p4256_p4, %p4250_p1 }
  0x2b   :  { %4260 = shalt.err (!%p4257_p5)
}
  0x2c   :  { %33 = dma.hbm_to_vmem [thread:$0]  %s4940_s0, 256, %s28_s23, [#allocation4], %s4331_s30, %s4331_s30, %s4332_s14  }
  0x2d   :  { %s4335_s29 = smov [#allocation7]   ;;  %s4336_s16 = smov [#allocation10]  }
  0x2e   :  { %s59_s15 = sshll.u32 %s4335_s29, 4  ;;  %s88_s17 = sshll.u32 %s4336_s16, 4  ;;  %s60_s15 = int_to_ptr.vmem [resolvable:$true] %s59_s15  ;;  %s89_s17 = int_to_ptr.vmem [resolvable:$true] %s88_s17 }
  0x2f   :  { %s4269_s11 = scalar_lea.vmem %s60_s15, 512  ;;  %p4274_p7 = scmp.lt.s32.totalorder %s60_s15, %s60_s15 }
  0x30   :  { %p4270_p6 = scmp.ne.s32.totalorder %s60_s15, %s4269_s11  ;;  %p4275_p8 = scmp.lt.s32.totalorder %s4269_s11, %s4269_s11 }
  0x32   :  { %p4276_p9 = por %p4275_p8, %p4274_p7 }
  0x34   :  { %p4277_p10 = pnand %p4276_p9, %p4270_p6 }
  0x36   :  { %4280 = shalt.err (!%p4277_p10)
}
  0x37   :  { %65 = dma.hbm_to_vmem [thread:$0]  %s4946_s6, 512, %s60_s15, [#allocation6], %s4331_s30, %s4331_s30, %s4332_s14  }
  0x38   :  { %s4289_s0 = scalar_lea.vmem %s89_s17, 16  ;;  %s4293_s20 = scalar_lea.vmem %s89_s17, 32 }
  0x39   :  { %p4290_p11 = scmp.ne.s32.totalorder %s89_s17, %s4289_s0  ;;  %p4294_p12 = scmp.lt.s32.totalorder %s89_s17, %s89_s17 }
  0x3a   :  { %p4295_p13 = scmp.lt.s32.totalorder %s4293_s20, %s4289_s0 }
  0x3c   :  { %p4296_p0 = por %p4295_p13, %p4294_p12 }
  0x3e   :  { %p4297_p1 = pnand %p4296_p0, %p4290_p11 }
  0x40   :  { %4300 = shalt.err (!%p4297_p1)
}
  0x41   :  { %91 = dma.hbm_to_vmem [thread:$0]  %s4950_s10, 16, %s89_s17, [#allocation9]  }
  0x42   :  { %s4337_s23 = smov [#allocation13]  }
  0x43   :  { %s107_s5 = sshll.u32 %s4337_s23, 4  ;;  %s108_s5 = int_to_ptr.vmem [resolvable:$true] %s107_s5 }
  0x44   :  { %s4309_s24 = scalar_lea.vmem %s108_s5, 256  ;;  %p4314_p3 = scmp.lt.s32.totalorder %s108_s5, %s108_s5 }
  0x45   :  { %p4310_p2 = scmp.ne.s32.totalorder %s108_s5, %s4309_s24  ;;  %p4315_p4 = scmp.lt.s32.totalorder %s4309_s24, %s4309_s24 }
  0x47   :  { %p4316_p5 = por %p4315_p4, %p4314_p3 }
  0x49   :  { %p4317_p6 = pnand %p4316_p5, %p4310_p2 }
  0x4b   :  { %4320 = shalt.err (!%p4317_p6)
}
  0x4c   :  { %113 = dma.hbm_to_vmem [thread:$0]  %s4952_s12, 256, %s108_s5, [#allocation12], %s4331_s30, %s4331_s30, %s4332_s14  }
  0x4d   :  { %4321 = dma.done.wait [#allocation4], 256  }
  0x4e   :  { %4322 = vsyncadd [#allocation4], 4294967040 }
  0x4f   :  { %4323 = dma.done.wait [#allocation6], 1024  }
  0x50   :  { %4324 = vsyncadd [#allocation6], 4294966272 }
  0x51   :  { %4325 = dma.done.wait [#allocation9], 528  }
  0x52   :  { %4326 = vsyncadd [#allocation9], 4294966768 }
  0x53   :  { %4327 = dma.done.wait [#allocation12], 272  }
  0x54   :  { %4328 = vsyncadd [#allocation12], 4294967024  ;;  %vm152_vm0 = vcmask 261120   ;;  %v144_v0 = vld [vmem:[%s4942_s2 + $0x18] sm:$0xff]  ;;  %v143_v1 = vld [vmem:[%s4942_s2 + $0x10] sm:$0xff]  ;;  %v4338_v6 = vmov 0.0  }
  0x55   :  { %3835 = vmatprep.subr.mxu1 %v144_v0  ;;  %v4466_v2 = vld [vmem:[#allocation3] sm:$0xff]  ;;  %v142_v3 = vld [vmem:[%s4942_s2 + $0x8] sm:$0xff]  ;;  %v141_v4 = vld [vmem:[%s4942_s2] sm:$0xff]  ;;  %3856 = vmatprep.subr.mxu0 %v4338_v6  ;;  %vm4339_vm1 = vmmov 0   ;;  %s4340_s16 = smov 96   ;;  %vm237_vm2 = vcmask 64512  }
  0x56   :  { %3836 = vmatpush3.msra.mxu1 %v144_v0  ;;  %3843 = vmatprep.mubr.msk.f32.mxu1 %vm152_vm0, %v4466_v2  ;;  %v4476_v5 = vld [vmem:[#allocation3 + $0x8] sm:$0xff]  ;;  %v3664_v8 = vld [vmem:[%s4949_s9] ss:$0 sm:$0xff]  ;;  %s4341_s9 = smov 64   ;;  %s4342_s17 = smov 88   ;;  %vm1582_vm3 = vcmask 195584  }
  0x57   :  { %3837 = vmatprep.subr.mxu1 %v143_v1  ;;  %3858 = vmatprep.mubr.msk.f32.mxu0 %vm4339_vm1, %v4338_v6  ;;  %s4343_s11 = smov 120   ;;  %s4344_s18 = smov 56   ;;  %vm1579_vm4 = vcmask 130048   ;;  %vm1727_vm5 = vcmask 1041409   ;;  %vm2066_vm6 = vcmask 57344   ;;  %vm3365_vm7 = vcmask 261127  }
  0x58   :  { %3838 = vmatpush3.msra.mxu1 %v143_v1  ;;  %s4345_s19 = smov 80   ;;  %s4346_s0 = smov 112   ;;  %vm3369_vm8 = vcmask 253952   ;;  %vm3532_vm9 = vcmask 523264  }
  0x59   :  { %3839 = vmatprep.subr.mxu1 %v142_v3  ;;  %s4347_s20 = smov 48   ;;  %s4348_s21 = smov 72  }
  0x5a   :  { %3840 = vmatpush3.msra.mxu1 %v142_v3  ;;  %s4349_s22 = smov 104   ;;  %s4350_s23 = smov 40  }
  0x5b   :  { %3841 = vmatprep.subr.mxu1 %v141_v4  ;;  %s4351_s5 = smov 16   ;;  %s4352_s30 = smov 24  }
  0x5c   :  { %3842 = vmatpush3.msra.mxu1 %v141_v4 }
  0x5d   :  { %3844 = vmatmul.mubr.msk.f32.vlgmr.msra.gmra.mxu1 %vm152_vm0, %v4476_v5  ;;  %3846 = vmatprep.subr.mxu1 %v4338_v6 }
  0x5e   :  { %3848 = vmatprep.mubr.msk.f32.mxu1 %vm4339_vm1, %v4338_v6 }
 0x11d   :  { %v3845_v7 = vpop.f32.mrf.mxu1 }
 0x11e   :  { %v4493_v11 = vadd.f32 %v3845_v7, %v3664_v8 }
 0x11f   :  { %v225_v9 = vpop.f32.mrf.mxu1 }
 0x120   :  { %v4489_v10 = vadd.f32 %v3664_v8, %v225_v9 }
 0x122   :  { %235 = vrot.lane.b32.xlu0 %v4489_v10, %s4340_s16 }
 0x126   :  { %313 = vrot.lane.b32.xlu0 %v4493_v11, %s4340_s16 }
 0x194   :  { %v236_v12 = vpop.permute.xlu0 %235 }
 0x195   :  { %3847 = vmatpush3.xpose.msk.msra.mxu1 %vm237_vm2, %v236_v12 }
 0x196   :  { %3851 = vmatprep.subr.mxu1 %v4338_v6 }
 0x198   :  { %3849 = vmatmul.mubr.msk.f32.vlgmr.msra.gmra.mxu1 %vm237_vm2, %v4489_v10  ;;  %v314_v13 = vpop.permute.xlu0 %313 }
 0x199   :  { %3852 = vmatpush3.xpose.msk.msra.mxu1 %vm237_vm2, %v314_v13  ;;  %3853 = vmatprep.mubr.msk.f32.mxu1 %vm4339_vm1, %v4338_v6 }
 0x19a   :  { %3861 = vmatprep.subr.mxu1 %v4338_v6 }
 0x19c   :  { %3854 = vmatmul.mubr.msk.f32.vlgmr.msra.gmra.mxu1 %vm237_vm2, %v4493_v11 }
 0x19d   :  { %3863 = vmatprep.mubr.msk.f32.mxu1 %vm4339_vm1, %v4338_v6 }
 0x258   :  { %v308_v14 = vpop.f32.mrf.mxu1 }
 0x259   :  { %v389_v15 = vsel %vm237_vm2, %v308_v14, -inf }
 0x25a   :  { %390 = vmax.xlane.f32.xlu1 %v389_v15  ;;  %v3850_v16 = vpop.f32.mrf.mxu1 }
 0x25c   :  { %v385_v17 = vpop.f32.mrf.mxu1 }
 0x25d   :  { %v392_v18 = vsel %vm237_vm2, %v385_v17, -inf }
 0x25e   :  { %393 = vmax.xlane.f32.xlu1 %v392_v18  ;;  %v3855_v19 = vpop.f32.mrf.mxu1 }
 0x26f   :  { %411 = vrot.lane.b32.xlu1 %v4489_v10, %s4341_s9 }
 0x273   :  { %487 = vrot.lane.b32.xlu1 %v4493_v11, %s4341_s9 }
 0x277   :  { %565 = vrot.lane.b32.xlu1 %v4489_v10, %s4342_s17 }
 0x27b   :  { %643 = vrot.lane.b32.xlu1 %v4493_v11, %s4342_s17 }
 0x2e3   :  { %v391_v20 = vpop.xlane.xlu1 %390 }
 0x2e4   :  { %v395_v21 = vsub.f32 %v308_v14, %v391_v20 }
 0x2e6   :  { %v397_v22 = vmul.f32 1.442695, %v395_v21 }
 0x2e7   :  { %v394_v23 = vpop.xlane.xlu1 %393 }
 0x2e8   :  { %4105 = vpow2.f32 %v397_v22  ;;  %v396_v24 = vsub.f32 %v385_v17, %v394_v23 }
 0x2ea   :  { %v399_v25 = vmul.f32 1.442695, %v396_v24 }
 0x2eb   :  { %v412_v26 = vpop.permute.xlu1 %411 }
 0x2ec   :  { %4107 = vpow2.f32 %v399_v25  ;;  %3857 = vmatpush3.msra.mxu0 %v412_v26 }
 0x2ed   :  { %3866 = vmatprep.subr.mxu0 %v4338_v6 }
 0x2ef   :  { %v488_v27 = vpop.permute.xlu1 %487 }
 0x2f0   :  { %3862 = vmatpush3.msra.mxu1 %v488_v27 }
 0x2f1   :  { %3871 = vmatprep.subr.mxu1 %v4338_v6 }
 0x2f3   :  { %v566_v32 = vpop.permute.xlu1 %565 }
 0x2f5   :  { %v4106_v28 = vpop.eup %4105 }
 0x2f6   :  { %v401_v29 = vsel %vm237_vm2, %v4106_v28, 0.0 }
 0x2f7   :  { %402 = vadd.xlane.f32.xlu0 %v401_v29  ;;  %v644_v33 = vpop.permute.xlu1 %643 }
 0x2f9   :  { %v4108_v30 = vpop.eup %4107 }
 0x2fa   :  { %v404_v31 = vsel %vm237_vm2, %v4108_v30, 0.0 }
 0x2fb   :  { %405 = vadd.xlane.f32.xlu1 %v404_v31 }
 0x30c   :  { %641 = vrot.lane.b32.xlu1 %v4493_v11, %s4343_s11 }
 0x30d   :  { %563 = vrot.lane.b32.xlu0 %v4489_v10, %s4343_s11 }
 0x380   :  { %v403_v34 = vpop.xlane.xlu0 %402 }
 0x381   :  { %4109 = vrcp.f32 %v403_v34 }
 0x384   :  { %v406_v35 = vpop.xlane.xlu1 %405  ;;  %v564_v40 = vpop.permute.xlu0 %563 }
 0x385   :  { %4111 = vrcp.f32 %v406_v35 }
 0x388   :  { %v642_v41 = vpop.permute.xlu1 %641 }
 0x38e   :  { %v4110_v36 = vpop.eup %4109 }
 0x38f   :  { %v409_v37 = vmul.f32 %v4110_v36, %v4106_v28 }
 0x391   :  { %3859 = vmatmul.mubr.msk.f32.vlgmr.msra.gmra.mxu0 %vm237_vm2, %v409_v37 }
 0x392   :  { %v4112_v38 = vpop.eup %4111  ;;  %3867 = vmatpush3.xpose.msk.msra.mxu0 %vm237_vm2, %v566_v32  ;;  %3868 = vmatprep.mubr.msk.f32.mxu0 %vm4339_vm1, %v4338_v6 }
 0x393   :  { %v410_v39 = vmul.f32 %v4112_v38, %v4108_v30  ;;  %3876 = vmatprep.subr.mxu0 %v4338_v6 }
 0x395   :  { %3864 = vmatmul.mubr.msk.f32.vlgmr.msra.gmra.mxu1 %vm237_vm2, %v410_v39  ;;  %3869 = vmatmul.mubr.msk.f32.vlgmr.msra.gmra.mxu0 %vm237_vm2, %v564_v40 }
 0x396   :  { %3872 = vmatpush3.xpose.msk.msra.mxu1 %vm237_vm2, %v644_v33  ;;  %3873 = vmatprep.mubr.msk.f32.mxu1 %vm4339_vm1, %v4338_v6 }
 0x397   :  { %3881 = vmatprep.subr.mxu1 %v4338_v6  ;;  %3878 = vmatprep.mubr.msk.f32.mxu0 %vm4339_vm1, %v4338_v6 }
 0x399   :  { %3874 = vmatmul.mubr.msk.f32.vlgmr.msra.gmra.mxu1 %vm237_vm2, %v642_v41 }
 0x39a   :  { %3883 = vmatprep.mubr.msk.f32.mxu1 %vm4339_vm1, %v4338_v6 }
 0x451   :  { %v4541_v42 = vpop.f32.mrf.mxu0 }
 0x453   :  { %v3860_v43 = vpop.f32.mrf.mxu0 }
 0x455   :  { %v4543_v44 = vpop.f32.mrf.mxu1  ;;  %v637_v45 = vpop.f32.mrf.mxu0 }
 0x456   :  { %v719_v46 = vsel %vm237_vm2, %v637_v45, -inf }
 0x457   :  { %v3865_v47 = vpop.f32.mrf.mxu1  ;;  %720 = vmax.xlane.f32.xlu1 %v719_v46  ;;  %v3870_v48 = vpop.f32.mrf.mxu0 }
 0x459   :  { %v715_v49 = vpop.f32.mrf.mxu1 }
 0x45a   :  { %v722_v50 = vsel %vm237_vm2, %v715_v49, -inf }
 0x45b   :  { %723 = vmax.xlane.f32.xlu0 %v722_v50  ;;  %v3875_v51 = vpop.f32.mrf.mxu1 }
 0x468   :  { %741 = vrot.lane.b32.xlu1 %v4489_v10, %s4344_s18 }
 0x46c   :  { %895 = vrot.lane.b32.xlu1 %v4489_v10, %s4345_s19 }
 0x470   :  { %973 = vrot.lane.b32.xlu1 %v4493_v11, %s4345_s19 }
 0x471   :  { %817 = vrot.lane.b32.xlu0 %v4493_v11, %s4344_s18 }
 0x475   :  { %893 = vrot.lane.b32.xlu0 %v4489_v10, %s4346_s0 }
 0x4e0   :  { %v721_v52 = vpop.xlane.xlu1 %720 }
 0x4e1   :  { %v725_v53 = vsub.f32 %v637_v45, %v721_v52 }
 0x4e3   :  { %v727_v54 = vmul.f32 1.442695, %v725_v53 }
 0x4e4   :  { %v742_v55 = vpop.permute.xlu1 %741  ;;  %v724_v56 = vpop.xlane.xlu0 %723 }
 0x4e5   :  { %4113 = vpow2.f32 %v727_v54  ;;  %v726_v57 = vsub.f32 %v715_v49, %v724_v56  ;;  %3877 = vmatpush3.msra.mxu0 %v742_v55 }
 0x4e6   :  { %3886 = vmatprep.subr.mxu0 %v4338_v6 }
 0x4e7   :  { %v729_v58 = vmul.f32 1.442695, %v726_v57 }
 0x4e8   :  { %v818_v59 = vpop.permute.xlu0 %817  ;;  %v896_v0 = vpop.permute.xlu1 %895 }
 0x4e9   :  { %4115 = vpow2.f32 %v729_v58  ;;  %3882 = vmatpush3.msra.mxu1 %v818_v59 }
 0x4ea   :  { %3891 = vmatprep.subr.mxu1 %v4338_v6 }
 0x4ec   :  { %v974_v1 = vpop.permute.xlu1 %973  ;;  %v894_v13 = vpop.permute.xlu0 %893 }
 0x4f2   :  { %v4114_v60 = vpop.eup %4113 }
 0x4f3   :  { %v731_v61 = vsel %vm237_vm2, %v4114_v60, 0.0 }
 0x4f4   :  { %732 = vadd.xlane.f32.xlu1 %v731_v61 }
 0x4f6   :  { %v4116_v62 = vpop.eup %4115 }
 0x4f7   :  { %v734_v63 = vsel %vm237_vm2, %v4116_v62, 0.0 }
 0x4f8   :  { %735 = vadd.xlane.f32.xlu1 %v734_v63 }
 0x509   :  { %971 = vrot.lane.b32.xlu1 %v4493_v11, %s4346_s0 }
 0x57d   :  { %v733_v3 = vpop.xlane.xlu1 %732 }
 0x57e   :  { %4117 = vrcp.f32 %v733_v3 }
 0x581   :  { %v736_v4 = vpop.xlane.xlu1 %735 }
 0x582   :  { %4119 = vrcp.f32 %v736_v4 }
 0x585   :  { %v972_v14 = vpop.permute.xlu1 %971 }
 0x58b   :  { %v4118_v7 = vpop.eup %4117 }
 0x58c   :  { %v739_v8 = vmul.f32 %v4118_v7, %v4114_v60 }
 0x58e   :  { %3879 = vmatmul.mubr.msk.f32.vlgmr.msra.gmra.mxu0 %vm237_vm2, %v739_v8 }
 0x58f   :  { %v4120_v9 = vpop.eup %4119  ;;  %3887 = vmatpush3.xpose.msk.msra.mxu0 %vm237_vm2, %v896_v0  ;;  %3888 = vmatprep.mubr.msk.f32.mxu0 %vm4339_vm1, %v4338_v6 }
 0x590   :  { %v740_v12 = vmul.f32 %v4120_v9, %v4116_v62  ;;  %3896 = vmatprep.subr.mxu0 %v4338_v6 }
 0x592   :  { %3884 = vmatmul.mubr.msk.f32.vlgmr.msra.gmra.mxu1 %vm237_vm2, %v740_v12  ;;  %3889 = vmatmul.mubr.msk.f32.vlgmr.msra.gmra.mxu0 %vm237_vm2, %v894_v13 }
 0x593   :  { %3892 = vmatpush3.xpose.msk.msra.mxu1 %vm237_vm2, %v974_v1  ;;  %3893 = vmatprep.mubr.msk.f32.mxu1 %vm4339_vm1, %v4338_v6 }
 0x594   :  { %3901 = vmatprep.subr.mxu1 %v4338_v6  ;;  %3898 = vmatprep.mubr.msk.f32.mxu0 %vm4339_vm1, %v4338_v6 }
 0x596   :  { %3894 = vmatmul.mubr.msk.f32.vlgmr.msra.gmra.mxu1 %vm237_vm2, %v972_v14 }
 0x597   :  { %3903 = vmatprep.mubr.msk.f32.mxu1 %vm4339_vm1, %v4338_v6 }
 0x64e   :  { %v4577_v15 = vpop.f32.mrf.mxu0 }
 0x650   :  { %v3880_v16 = vpop.f32.mrf.mxu0 }
 0x652   :  { %v4579_v17 = vpop.f32.mrf.mxu1  ;;  %v967_v18 = vpop.f32.mrf.mxu0 }
 0x653   :  { %v1049_v19 = vsel %vm237_vm2, %v967_v18, -inf }
 0x654   :  { %v3885_v20 = vpop.f32.mrf.mxu1  ;;  %1050 = vmax.xlane.f32.xlu0 %v1049_v19  ;;  %v3890_v21 = vpop.f32.mrf.mxu0  ;;  %v1585_v19 = vld [vmem:[%s4943_s3] sm:$0xff] }
 0x656   :  { %v1045_v22 = vpop.f32.mrf.mxu1 }
 0x657   :  { %v1052_v23 = vsel %vm237_vm2, %v1045_v22, -inf }
 0x658   :  { %1053 = vmax.xlane.f32.xlu1 %v1052_v23  ;;  %v3895_v24 = vpop.f32.mrf.mxu1 }
 0x669   :  { %1071 = vrot.lane.b32.xlu1 %v4489_v10, %s4347_s20 }
 0x66a   :  { %1147 = vrot.lane.b32.xlu0 %v4493_v11, %s4347_s20 }
 0x66d   :  { %1225 = vrot.lane.b32.xlu1 %v4489_v10, %s4348_s21 }
 0x671   :  { %1303 = vrot.lane.b32.xlu1 %v4493_v11, %s4348_s21 }
 0x675   :  { %1301 = vrot.lane.b32.xlu1 %v4493_v11, %s4349_s22 }
 0x6dd   :  { %v1051_v25 = vpop.xlane.xlu0 %1050 }
 0x6de   :  { %v1055_v26 = vsub.f32 %v967_v18, %v1051_v25  ;;  %v1586_v18 = vld [vmem:[%s4943_s3 + $0x8] sm:$0xff] }
 0x6e0   :  { %v1057_v27 = vmul.f32 1.442695, %v1055_v26 }
 0x6e1   :  { %v1054_v28 = vpop.xlane.xlu1 %1053  ;;  %v1148_v29 = vpop.permute.xlu0 %1147 }
 0x6e2   :  { %4121 = vpow2.f32 %v1057_v27  ;;  %v1056_v30 = vsub.f32 %v1045_v22, %v1054_v28  ;;  %3902 = vmatpush3.msra.mxu1 %v1148_v29 }
 0x6e3   :  { %3911 = vmatprep.subr.mxu1 %v4338_v6 }
 0x6e4   :  { %v1059_v31 = vmul.f32 1.442695, %v1056_v30 }
 0x6e5   :  { %v1072_v32 = vpop.permute.xlu1 %1071 }
 0x6e6   :  { %4123 = vpow2.f32 %v1059_v31  ;;  %3897 = vmatpush3.msra.mxu0 %v1072_v32 }
 0x6e7   :  { %3906 = vmatprep.subr.mxu0 %v4338_v6 }
 0x6e9   :  { %v1226_v39 = vpop.permute.xlu1 %1225 }
 0x6ed   :  { %v1304_v45 = vpop.permute.xlu1 %1303 }
 0x6ef   :  { %v4122_v33 = vpop.eup %4121 }
 0x6f0   :  { %v1061_v34 = vsel %vm237_vm2, %v4122_v33, 0.0 }
 0x6f1   :  { %1062 = vadd.xlane.f32.xlu0 %v1061_v34  ;;  %v1302_v48 = vpop.permute.xlu1 %1301 }
 0x6f3   :  { %v4124_v35 = vpop.eup %4123 }
 0x6f4   :  { %v1064_v36 = vsel %vm237_vm2, %v4124_v35, 0.0 }
 0x6f5   :  { %1065 = vadd.xlane.f32.xlu0 %v1064_v36 }
 0x70b   :  { %1223 = vrot.lane.b32.xlu0 %v4489_v10, %s4349_s22 }
 0x77a   :  { %v1063_v37 = vpop.xlane.xlu0 %1062 }
 0x77b   :  { %4125 = vrcp.f32 %v1063_v37 }
 0x77e   :  { %v1066_v38 = vpop.xlane.xlu0 %1065 }
 0x77f   :  { %4127 = vrcp.f32 %v1066_v38  ;;  %v4659_v38 = vld [vmem:[#allocation13] sm:$0xff] }
 0x782   :  { %v1224_v47 = vpop.permute.xlu0 %1223 }
 0x788   :  { %v4126_v40 = vpop.eup %4125 }
 0x789   :  { %v1069_v41 = vmul.f32 %v4126_v40, %v4122_v33 }
 0x78b   :  { %3899 = vmatmul.mubr.msk.f32.vlgmr.msra.gmra.mxu0 %vm237_vm2, %v1069_v41 }
 0x78c   :  { %v4128_v43 = vpop.eup %4127  ;;  %3907 = vmatpush3.xpose.msk.msra.mxu0 %vm237_vm2, %v1226_v39  ;;  %3908 = vmatprep.mubr.msk.f32.mxu0 %vm4339_vm1, %v4338_v6 }
 0x78d   :  { %v1070_v46 = vmul.f32 %v4128_v43, %v4124_v35  ;;  %3916 = vmatprep.subr.mxu0 %v4338_v6 }
 0x78f   :  { %3904 = vmatmul.mubr.msk.f32.vlgmr.msra.gmra.mxu1 %vm237_vm2, %v1070_v46  ;;  %3909 = vmatmul.mubr.msk.f32.vlgmr.msra.gmra.mxu0 %vm237_vm2, %v1224_v47 }
 0x790   :  { %3912 = vmatpush3.xpose.msk.msra.mxu1 %vm237_vm2, %v1304_v45  ;;  %3913 = vmatprep.mubr.msk.f32.mxu1 %vm4339_vm1, %v4338_v6 }
 0x791   :  { %3921 = vmatprep.subr.mxu1 %v4338_v6  ;;  %3918 = vmatprep.mubr.msk.f32.mxu0 %vm4339_vm1, %v4338_v6 }
 0x793   :  { %3914 = vmatmul.mubr.msk.f32.vlgmr.msra.gmra.mxu1 %vm237_vm2, %v1302_v48 }
 0x794   :  { %3923 = vmatprep.mubr.msk.f32.mxu1 %vm4339_vm1, %v4338_v6 }
 0x84b   :  { %v1143_v49 = vpop.f32.mrf.mxu0 }
 0x84d   :  { %v3900_v50 = vpop.f32.mrf.mxu0 }
 0x84f   :  { %v1219_v51 = vpop.f32.mrf.mxu1  ;;  %v1297_v52 = vpop.f32.mrf.mxu0 }
 0x850   :  { %v1379_v53 = vsel %vm237_vm2, %v1297_v52, -inf }
 0x851   :  { %v3905_v54 = vpop.f32.mrf.mxu1  ;;  %1380 = vmax.xlane.f32.xlu0 %v1379_v53  ;;  %v3910_v55 = vpop.f32.mrf.mxu0 }
 0x853   :  { %v1375_v56 = vpop.f32.mrf.mxu1 }
 0x854   :  { %v1382_v57 = vsel %vm237_vm2, %v1375_v56, -inf }
 0x855   :  { %1383 = vmax.xlane.f32.xlu1 %v1382_v57  ;;  %v3915_v58 = vpop.f32.mrf.mxu1 }
 0x856   :  { %v1804_v58 = vld [vmem:[#allocation5 + $0x18] sm:$0xff] }
 0x866   :  { %1401 = vrot.lane.b32.xlu1 %v4489_v10, %s4350_s23 }
 0x86a   :  { %1555 = vrot.lane.b32.xlu1 %v4577_v15, %s4332_s14 }
 0x86e   :  { %1557 = vrot.lane.b32.xlu1 %v4579_v17, %s4332_s14  ;;  %v1587_v17 = vld [vmem:[%s4943_s3 + $0x10] sm:$0xff] }
 0x872   :  { %1565 = vrot.lane.b32.xlu1 %v1219_v51, %s4351_s5 }
 0x8da   :  { %v1381_v59 = vpop.xlane.xlu0 %1380 }
 0x8db   :  { %v1385_v60 = vsub.f32 %v1297_v52, %v1381_v59  ;;  %v1718_v59 = vld [vmem:[%s4944_s4 + $0x18] sm:$0xff] }
 0x8dd   :  { %v1387_v61 = vmul.f32 1.442695, %v1385_v60  ;;  %v1802_v60 = vld [vmem:[#allocation5 + $0x8] sm:$0xff] }
 0x8de   :  { %v1384_v62 = vpop.xlane.xlu1 %1383 }
 0x8df   :  { %4129 = vpow2.f32 %v1387_v61  ;;  %v1386_v63 = vsub.f32 %v1375_v56, %v1384_v62  ;;  %v1717_v61 = vld [vmem:[%s4944_s4 + $0x10] sm:$0xff]  ;;  %v1801_v62 = vld [vmem:[#allocation5] sm:$0xff] }
 0x8e1   :  { %v1389_v0 = vmul.f32 1.442695, %v1386_v63  ;;  %v137_v63 = vld [vmem:[%s4941_s1] sm:$0xff] }
 0x8e2   :  { %v1402_v1 = vpop.permute.xlu1 %1401 }
 0x8e3   :  { %4131 = vpow2.f32 %v1389_v0  ;;  %3917 = vmatpush3.msra.mxu0 %v1402_v1  ;;  %v1716_v0 = vld [vmem:[%s4944_s4 + $0x8] sm:$0xff] }
 0x8e4   :  { %v138_v1 = vld [vmem:[%s4941_s1 + $0x8] sm:$0xff] }
 0x8e6   :  { %v1556_v24 = vpop.permute.xlu1 %1555 }
 0x8e7   :  { %v1577_v27 = vsel %vm237_vm2, %v4541_v42, %v1556_v24  ;;  %v1589_v42 = vlaneseq }
 0x8e9   :  { %v4654_v36 = vshrl.u32 %v1589_v42, 7 }
 0x8ea   :  { %v1558_v25 = vpop.permute.xlu1 %1557 }
 0x8eb   :  { %v1578_v32 = vsel %vm237_vm2, %v4543_v44, %v1558_v25  ;;  %v4657_v37 = vsub.s32 0, %v4654_v36 }
 0x8ec   :  { %v4130_v10 = vpop.eup %4129 }
 0x8ed   :  { %v1391_v3 = vsel %vm237_vm2, %v4130_v10, 0.0  ;;  %v1592_v39 = vrot.slane %v4659_v38, %v4657_v37 }
 0x8ee   :  { %1392 = vadd.xlane.f32.xlu0 %v1391_v3  ;;  %v1566_v28 = vpop.permute.xlu1 %1565 }
 0x8ef   :  { %v1581_v33 = vsel %vm1579_vm4, %v1578_v32, %v1566_v28  ;;  %v4353_v32 = vmov 1966171168  }
 0x8f0   :  { %v4132_v4 = vpop.eup %4131 }
 0x8f1   :  { %v1394_v7 = vsel %vm237_vm2, %v4132_v4, 0.0 }
 0x8f2   :  { %1395 = vadd.xlane.f32.xlu0 %v1394_v7 }
 0x908   :  { %1477 = vrot.lane.b32.xlu0 %v4493_v11, %s4350_s23  ;;  %v1588_v11 = vld [vmem:[%s4943_s3 + $0x18] sm:$0xff] }
 0x909   :  { %3926 = vmatprep.subr.mxu0 %v1588_v11 }
 0x90c   :  { %1563 = vrot.lane.b32.xlu0 %v1143_v49, %s4351_s5 }
 0x977   :  { %v1393_v8 = vpop.xlane.xlu0 %1392 }
 0x978   :  { %4133 = vrcp.f32 %v1393_v8 }
 0x97b   :  { %v1396_v9 = vpop.xlane.xlu0 %1395 }
 0x97c   :  { %4135 = vrcp.f32 %v1396_v9 }
 0x97f   :  { %v1478_v12 = vpop.permute.xlu0 %1477 }
 0x980   :  { %3922 = vmatpush3.msra.mxu1 %v1478_v12 }
 0x981   :  { %3937 = vmatprep.subr.mxu1 %v4338_v6 }
 0x983   :  { %v1564_v26 = vpop.permute.xlu0 %1563 }
 0x984   :  { %v1580_v29 = vsel %vm1579_vm4, %v1577_v27, %v1564_v26  ;;  %v3694_v27 = vld [vmem:[#allocation10] ss:$0 sm:$0xff] }
 0x985   :  { %v4134_v13 = vpop.eup %4133 }
 0x986   :  { %v1399_v14 = vmul.f32 %v4134_v13, %v4130_v10  ;;  %v1715_v10 = vld [vmem:[%s4944_s4] sm:$0xff]  ;;  %v1705_v13 = vsub.s32 1, %v4654_v36 }
 0x988   :  { %3919 = vmatmul.mubr.msk.f32.vlgmr.msra.gmra.mxu0 %vm237_vm2, %v1399_v14  ;;  %v1711_v14 = vsub.s32 2, %v4654_v36 }
 0x989   :  { %v4136_v15 = vpop.eup %4135  ;;  %3927 = vmatpush3.msra.mxu0 %v1588_v11 }
 0x98a   :  { %v1400_v16 = vmul.f32 %v4136_v15, %v4132_v4  ;;  %3928 = vmatprep.subr.mxu0 %v1587_v17  ;;  %v1706_v15 = vrot.slane %v4659_v38, %v1705_v13 }
 0x98b   :  { %3929 = vmatpush3.msra.mxu0 %v1587_v17  ;;  %v1712_v17 = vrot.slane %v4659_v38, %v1711_v14 }
 0x98c   :  { %3924 = vmatmul.mubr.msk.f32.vlgmr.msra.gmra.mxu1 %vm237_vm2, %v1400_v16  ;;  %3930 = vmatprep.subr.mxu0 %v1586_v18 }
 0x98d   :  { %3945 = vmatprep.mubr.msk.f32.mxu1 %vm4339_vm1, %v4338_v6  ;;  %3931 = vmatpush3.msra.mxu0 %v1586_v18 }
 0x98e   :  { %3932 = vmatprep.subr.mxu0 %v1585_v19  ;;  %3938 = vmatpush3.msra.mxu1 %v1718_v59 }
 0x98f   :  { %3933 = vmatpush3.msra.mxu0 %v1585_v19  ;;  %3939 = vmatprep.subr.mxu1 %v4338_v6 }
 0x990   :  { %3948 = vmatprep.subr.mxu0 %v1804_v58  ;;  %3940 = vmatpush3.msra.mxu1 %v1717_v61 }
 0x991   :  { %3941 = vmatprep.subr.mxu1 %v4338_v6 }
 0x992   :  { %3942 = vmatpush3.msra.mxu1 %v1716_v0 }
 0x993   :  { %3943 = vmatprep.subr.mxu1 %v4338_v6 }
 0x994   :  { %3944 = vmatpush3.msra.mxu1 %v1715_v10 }
 0x995   :  { %3959 = vmatprep.subr.mxu1 %v4338_v6 }
 0xa48   :  { %v1473_v20 = vpop.f32.mrf.mxu0 }
 0xa49   :  { %1571 = vrot.lane.b32.xlu0 %v1473_v20, %s4352_s30 }
 0xa4a   :  { %v3920_v21 = vpop.f32.mrf.mxu0 }
 0xa4c   :  { %v1549_v22 = vpop.f32.mrf.mxu1 }
 0xa4d   :  { %1573 = vrot.lane.b32.xlu1 %v1549_v22, %s4352_s30 }
 0xa4e   :  { %v3925_v23 = vpop.f32.mrf.mxu1 }
 0xabb   :  { %v1572_v30 = vpop.permute.xlu0 %1571 }
 0xabc   :  { %v1583_v31 = vsel %vm1582_vm3, %v1580_v29, %v1572_v30 }
 0xabd   :  { %3934 = vmatprep.mubr.msk.f32.mxu0 %vm152_vm0, %v1583_v31 }
 0xabf   :  { %v1574_v34 = vpop.permute.xlu1 %1573 }
 0xac0   :  { %v1584_v35 = vsel %vm1582_vm3, %v1581_v33, %v1574_v34  ;;  %v1895_v33 = vunpack.c.l.s4 %v4353_v32  ;;  %v1721_v34 = vsub.s32 3, %v4654_v36 }
 0xac1   :  { %3935 = vmatmul.mubr.msk.f32.vlgmr.msra.gmra.mxu0 %vm152_vm0, %v1584_v35 }
 0xac2   :  { %3949 = vmatpush3.msra.mxu0 %v1804_v58  ;;  %3956 = vmatprep.mubr.msk.f32.mxu0 %vm152_vm0, %v137_v63  ;;  %v1896_v35 = vunpack.c.0.s8 %v1895_v33  ;;  %v1722_v42 = vrot.slane %v4659_v38, %v1721_v34 }
 0xb81   :  { %v3936_v40 = vpop.f32.mrf.mxu0 }
 0xb82   :  { %v1671_v44 = vadd.f32 %v3936_v40, %v1592_v39 }
 0xb83   :  { %v1665_v41 = vpop.f32.mrf.mxu0 }
 0xb84   :  { %v1666_v43 = vadd.f32 %v1665_v41, %v1592_v39  ;;  %v1675_v45 = vadd.f32 %v1671_v44, %v4476_v5  ;;  %v1899_v39 = vsub.s32 %v1896_v35, %v4654_v36 }
 0xb86   :  { %v1679_v46 = vsel %vm152_vm0, %v1675_v45, 0.0  ;;  %v1674_v47 = vadd.f32 %v1666_v43, %v4466_v2  ;;  %v1803_v2 = vld [vmem:[#allocation5 + $0x10] sm:$0xff] }
 0xb87   :  { %1680 = vadd.xlane.f32.xlu1 %v1679_v46  ;;  %3950 = vmatprep.subr.mxu0 %v1803_v2 }
 0xb88   :  { %v1676_v48 = vsel %vm152_vm0, %v1674_v47, 0.0  ;;  %3951 = vmatpush3.msra.mxu0 %v1803_v2 }
 0xb89   :  { %1677 = vadd.xlane.f32.xlu0 %v1676_v48  ;;  %3952 = vmatprep.subr.mxu0 %v1802_v60 }
 0xb8a   :  { %3953 = vmatpush3.msra.mxu0 %v1802_v60 }
 0xb8b   :  { %3954 = vmatprep.subr.mxu0 %v1801_v62 }
 0xb8c   :  { %3955 = vmatpush3.msra.mxu0 %v1801_v62 }
 0xb8d   :  { %3957 = vmatmul.mubr.msk.f32.vlgmr.msra.gmra.mxu0 %vm152_vm0, %v138_v1  ;;  %3969 = vmatprep.subr.mxu0 %v4338_v6 }
 0xb8e   :  { %3971 = vmatprep.mubr.msk.f32.mxu0 %vm4339_vm1, %v4338_v6 }
 0xc10   :  { %v1681_v49 = vpop.xlane.xlu1 %1680 }
 0xc11   :  { %v1684_v50 = vmul.f32 0.03125, %v1681_v49 }
 0xc12   :  { %v1678_v51 = vpop.xlane.xlu0 %1677 }
 0xc13   :  { %v1683_v52 = vmul.f32 0.03125, %v1678_v51  ;;  %v1686_v53 = vsub.f32 %v1675_v45, %v1684_v50 }
 0xc15   :  { %v1685_v54 = vsub.f32 %v1674_v47, %v1683_v52  ;;  %v1688_v57 = vmul.f32 %v1686_v53, %v1686_v53 }
 0xc17   :  { %v1687_v55 = vmul.f32 %v1685_v54, %v1685_v54  ;;  %v1692_v5 = vsel %vm152_vm0, %v1688_v57, 0.0 }
 0xc19   :  { %v1689_v56 = vsel %vm152_vm0, %v1687_v55, 0.0 }
 0xc1a   :  { %1690 = vadd.xlane.f32.xlu0 %v1689_v56 }
 0xc1e   :  { %1693 = vadd.xlane.f32.xlu0 %v1692_v5 }
 0xc4d   :  { %v3958_v28 = vpop.f32.mrf.mxu0 }
 0xc4e   :  { %v4716_v29 = vadd.f32 %v3958_v28, %v3694_v27 }
 0xc4f   :  { %v1884_v30 = vpop.f32.mrf.mxu0 }
 0xc50   :  { %v4718_v31 = vadd.f32 %v3694_v27, %v1884_v30 }
 0xca3   :  { %v1691_v3 = vpop.xlane.xlu0 %1690 }
 0xca4   :  { %v1695_v4 = vmul.f32 0.03125, %v1691_v3 }
 0xca6   :  { %v1697_v7 = vadd.f32 1e-05, %v1695_v4 }
 0xca7   :  { %v1694_v8 = vpop.xlane.xlu0 %1693 }
 0xca8   :  { %4137 = vrsqrt.f32 %v1697_v7  ;;  %v1696_v9 = vmul.f32 0.03125, %v1694_v8 }
 0xcaa   :  { %v1698_v12 = vadd.f32 1e-05, %v1696_v9 }
 0xcac   :  { %4139 = vrsqrt.f32 %v1698_v12 }
 0xcb5   :  { %v4138_v16 = vpop.eup %4137 }
 0xcb6   :  { %v1701_v11 = vmul.f32 %v4138_v16, %v1685_v54 }
 0xcb8   :  { %v1707_v18 = vmul.f32 %v1706_v15, %v1701_v11 }
 0xcb9   :  { %v4140_v19 = vpop.eup %4139 }
 0xcba   :  { %v1702_v20 = vmul.f32 %v4140_v19, %v1686_v53  ;;  %v4702_v21 = vadd.f32 %v1712_v17, %v1707_v18 }
 0xcbc   :  { %v1708_v22 = vmul.f32 %v1706_v15, %v1702_v20  ;;  %3420 = vst.msk [vmem:[#allocation2] sm:$0xff] %vm152_vm0, %v4702_v21  ;;  %v1725_v24 = vrot.slane %v4702_v21, 7 }
 0xcbe   :  { %v4706_v23 = vadd.f32 %v1712_v17, %v1708_v22 }
 0xcc0   :  { %v1726_v25 = vrot.slane %v4706_v23, 6  ;;  %3421 = vst.msk [vmem:[#allocation2 + $0x8] sm:$0xff] %vm152_vm0, %v4706_v23 }
 0xcc2   :  { %v1728_v26 = vsel %vm1727_vm5, %v1726_v25, %v1725_v24 }
 0xcc3   :  { %3946 = vmatmul.mubr.msk.f32.vlgmr.msra.gmra.mxu1 %vm152_vm0, %v1728_v26 }
 0xcc4   :  { %3961 = vmatprep.mubr.msk.f32.mxu1 %vm4339_vm1, %v4338_v6  ;;  %3960 = vmatpush3.xpose.msk.msra.mxu1 %vm237_vm2, %v4718_v31 }
 0xcc5   :  { %3964 = vmatprep.subr.mxu1 %v4338_v6 }
 0xd83   :  { %v1797_v40 = vpop.f32.mrf.mxu1 }
 0xd84   :  { %v1798_v44 = vadd.f32 %v1797_v40, %v1722_v42 }
 0xd85   :  { %v3947_v41 = vpop.f32.mrf.mxu1 }
 0xd86   :  { %v1900_v43 = vrot.slane %v1798_v44, %v1899_v39 }
 0xd88   :  { %v1901_v45 = vcombine.high %v1900_v43, %v1900_v43  ;;  %v1908_v46 = vrot.slane %v1900_v43, %v1899_v39 }
 0xd8a   :  { %3962 = vmatmul.mubr.msk.f32.vlgmr.msra.gmra.mxu1 %vm237_vm2, %v1908_v46  ;;  %v1915_v47 = vrot.slane %v1901_v45, %v1899_v39  ;;  %v4750_v0 = vrot.slane %v1908_v46, %v4657_v37 }
 0xd8b   :  { %3965 = vmatpush3.xpose.msk.msra.mxu1 %vm237_vm2, %v4716_v29  ;;  %3966 = vmatprep.mubr.msk.f32.mxu1 %vm4339_vm1, %v4338_v6 }
 0xd8c   :  { %3974 = vmatprep.subr.mxu1 %v4338_v6  ;;  %v4753_v1 = vrot.slane %v1915_v47, %v4657_v37 }
 0xd8e   :  { %3967 = vmatmul.mubr.msk.f32.vlgmr.msra.gmra.mxu1 %vm237_vm2, %v1915_v47 }
 0xd8f   :  { %3976 = vmatprep.mubr.msk.f32.mxu1 %vm4339_vm1, %v4338_v6 }
 0xe4a   :  { %v1987_v48 = vpop.f32.mrf.mxu1 }
 0xe4b   :  { %v2067_v49 = vsel %vm2066_vm6, %v1987_v48, -inf }
 0xe4c   :  { %2068 = vmax.xlane.f32.xlu0 %v2067_v49  ;;  %v3963_v50 = vpop.f32.mrf.mxu1 }
 0xe4e   :  { %v2062_v51 = vpop.f32.mrf.mxu1 }
 0xe4f   :  { %v2070_v52 = vsel %vm2066_vm6, %v2062_v51, -inf }
 0xe50   :  { %2071 = vmax.xlane.f32.xlu1 %v2070_v52  ;;  %v3968_v53 = vpop.f32.mrf.mxu1 }
 0xe61   :  { %2165 = vrot.lane.b32.xlu1 %v4716_v29, %s4340_s16 }
 0xe62   :  { %2089 = vrot.lane.b32.xlu0 %v4718_v31, %s4340_s16 }
 0xe65   :  { %2329 = vrot.lane.b32.xlu1 %v4716_v29, %s4343_s11 }
 0xe69   :  { %2247 = vrot.lane.b32.xlu1 %v4718_v31, %s4343_s11 }
 0xed5   :  { %v2069_v54 = vpop.xlane.xlu0 %2068 }
 0xed6   :  { %v2073_v55 = vsub.f32 %v1987_v48, %v2069_v54 }
 0xed8   :  { %v2075_v56 = vmul.f32 1.442695, %v2073_v55 }
 0xed9   :  { %v2090_v57 = vpop.permute.xlu0 %2089  ;;  %v2072_v5 = vpop.xlane.xlu1 %2071 }
 0xeda   :  { %4141 = vpow2.f32 %v2075_v56  ;;  %v2074_v58 = vsub.f32 %v2062_v51, %v2072_v5  ;;  %3970 = vmatpush3.msra.mxu0 %v2090_v57 }
 0xedb   :  { %3979 = vmatprep.subr.mxu0 %v4338_v6 }
 0xedc   :  { %v2077_v2 = vmul.f32 1.442695, %v2074_v58 }
 0xedd   :  { %v2166_v59 = vpop.permute.xlu1 %2165 }
 0xede   :  { %4143 = vpow2.f32 %v2077_v2  ;;  %3975 = vmatpush3.msra.mxu1 %v2166_v59 }
 0xedf   :  { %3984 = vmatprep.subr.mxu1 %v4338_v6 }
 0xee1   :  { %v2330_v10 = vpop.permute.xlu1 %2329 }
 0xee5   :  { %v2248_v3 = vpop.permute.xlu1 %2247 }
 0xee7   :  { %v4142_v60 = vpop.eup %4141 }
 0xee8   :  { %v2079_v61 = vsel %vm2066_vm6, %v4142_v60, 0.0 }
 0xee9   :  { %2080 = vadd.xlane.f32.xlu0 %v2079_v61 }
 0xeeb   :  { %v4144_v62 = vpop.eup %4143 }
 0xeec   :  { %v2082_v63 = vsel %vm2066_vm6, %v4144_v62, 0.0 }
 0xeed   :  { %2083 = vadd.xlane.f32.xlu1 %v2082_v63 }
 0xefe   :  { %2245 = vrot.lane.b32.xlu1 %v4750_v0, %s4343_s11 }
 0xeff   :  { %2327 = vrot.lane.b32.xlu0 %v4753_v1, %s4343_s11 }
 0xf72   :  { %v2081_v4 = vpop.xlane.xlu0 %2080 }
 0xf73   :  { %4145 = vrcp.f32 %v2081_v4 }
 0xf76   :  { %v2084_v7 = vpop.xlane.xlu1 %2083  ;;  %v2328_v16 = vpop.permute.xlu0 %2327 }
 0xf77   :  { %4147 = vrcp.f32 %v2084_v7 }
 0xf7a   :  { %v2246_v15 = vpop.permute.xlu1 %2245 }
 0xf80   :  { %v4146_v8 = vpop.eup %4145 }
 0xf81   :  { %v2087_v9 = vmul.f32 %v4146_v8, %v4142_v60 }
 0xf83   :  { %3972 = vmatmul.mubr.msk.f32.vlgmr.msra.gmra.mxu0 %vm237_vm2, %v2087_v9 }
 0xf84   :  { %v4148_v12 = vpop.eup %4147  ;;  %3980 = vmatpush3.xpose.msk.msra.mxu0 %vm237_vm2, %v2248_v3  ;;  %3981 = vmatprep.mubr.msk.f32.mxu0 %vm4339_vm1, %v4338_v6 }
 0xf85   :  { %v2088_v14 = vmul.f32 %v4148_v12, %v4144_v62  ;;  %3989 = vmatprep.subr.mxu0 %v4338_v6 }
 0xf87   :  { %3977 = vmatmul.mubr.msk.f32.vlgmr.msra.gmra.mxu1 %vm237_vm2, %v2088_v14  ;;  %3982 = vmatmul.mubr.msk.f32.vlgmr.msra.gmra.mxu0 %vm237_vm2, %v2246_v15 }
 0xf88   :  { %3985 = vmatpush3.xpose.msk.msra.mxu1 %vm237_vm2, %v2330_v10  ;;  %3986 = vmatprep.mubr.msk.f32.mxu1 %vm4339_vm1, %v4338_v6 }
 0xf89   :  { %3994 = vmatprep.subr.mxu1 %v4338_v6  ;;  %3991 = vmatprep.mubr.msk.f32.mxu0 %vm4339_vm1, %v4338_v6 }
 0xf8b   :  { %3987 = vmatmul.mubr.msk.f32.vlgmr.msra.gmra.mxu1 %vm237_vm2, %v2328_v16 }
 0xf8c   :  { %3996 = vmatprep.mubr.msk.f32.mxu1 %vm4339_vm1, %v4338_v6 }
0x1043   :  { %v4775_v11 = vpop.f32.mrf.mxu0 }
0x1045   :  { %v3973_v17 = vpop.f32.mrf.mxu0 }
0x1047   :  { %v4777_v18 = vpop.f32.mrf.mxu1  ;;  %v2319_v19 = vpop.f32.mrf.mxu0 }
0x1048   :  { %v2405_v20 = vsel %vm2066_vm6, %v2319_v19, -inf }
0x1049   :  { %2406 = vmax.xlane.f32.xlu1 %v2405_v20  ;;  %v3978_v22 = vpop.f32.mrf.mxu1  ;;  %v3983_v24 = vpop.f32.mrf.mxu0 }
0x104b   :  { %v2401_v25 = vpop.f32.mrf.mxu1 }
0x104c   :  { %v2408_v26 = vsel %vm2066_vm6, %v2401_v25, -inf }
0x104d   :  { %2409 = vmax.xlane.f32.xlu0 %v2408_v26  ;;  %v3988_v27 = vpop.f32.mrf.mxu1 }
0x105a   :  { %2503 = vrot.lane.b32.xlu1 %v4716_v29, %s4342_s17 }
0x105e   :  { %2659 = vrot.lane.b32.xlu1 %v4716_v29, %s4346_s0 }
0x1062   :  { %2581 = vrot.lane.b32.xlu1 %v4718_v31, %s4346_s0 }
0x1066   :  { %2579 = vrot.lane.b32.xlu1 %v4750_v0, %s4346_s0 }
0x10d2   :  { %v2407_v28 = vpop.xlane.xlu1 %2406 }
0x10d3   :  { %v2411_v30 = vsub.f32 %v2319_v19, %v2407_v28 }
0x10d5   :  { %v2413_v32 = vmul.f32 1.442695, %v2411_v30 }
0x10d6   :  { %v2504_v33 = vpop.permute.xlu1 %2503  ;;  %v2410_v34 = vpop.xlane.xlu0 %2409 }
0x10d7   :  { %4149 = vpow2.f32 %v2413_v32  ;;  %v2412_v35 = vsub.f32 %v2401_v25, %v2410_v34  ;;  %3995 = vmatpush3.msra.mxu1 %v2504_v33 }
0x10d8   :  { %4004 = vmatprep.subr.mxu1 %v4338_v6 }
0x10d9   :  { %v2415_v42 = vmul.f32 1.442695, %v2412_v35 }
0x10da   :  { %v2660_v46 = vpop.permute.xlu1 %2659 }
0x10db   :  { %4151 = vpow2.f32 %v2415_v42 }
0x10de   :  { %v2582_v49 = vpop.permute.xlu1 %2581 }
0x10e2   :  { %v2580_v53 = vpop.permute.xlu1 %2579 }
0x10e4   :  { %v4150_v39 = vpop.eup %4149 }
0x10e5   :  { %v2417_v40 = vsel %vm2066_vm6, %v4150_v39, 0.0 }
0x10e6   :  { %2418 = vadd.xlane.f32.xlu0 %v2417_v40 }
0x10e8   :  { %v4152_v44 = vpop.eup %4151 }
0x10e9   :  { %v2420_v41 = vsel %vm2066_vm6, %v4152_v44, 0.0 }
0x10ea   :  { %2421 = vadd.xlane.f32.xlu0 %v2420_v41 }
0x1100   :  { %2427 = vrot.lane.b32.xlu0 %v4718_v31, %s4342_s17 }
0x1104   :  { %2657 = vrot.lane.b32.xlu0 %v4753_v1, %s4346_s0 }
0x116f   :  { %v2419_v43 = vpop.xlane.xlu0 %2418 }
0x1170   :  { %4153 = vrcp.f32 %v2419_v43 }
0x1173   :  { %v2422_v45 = vpop.xlane.xlu0 %2421 }
0x1174   :  { %4155 = vrcp.f32 %v2422_v45 }
0x1177   :  { %v2428_v47 = vpop.permute.xlu0 %2427 }
0x1178   :  { %3990 = vmatpush3.msra.mxu0 %v2428_v47 }
0x1179   :  { %3999 = vmatprep.subr.mxu0 %v4338_v6 }
0x117b   :  { %v2658_v54 = vpop.permute.xlu0 %2657 }
0x117d   :  { %v4154_v48 = vpop.eup %4153 }
0x117e   :  { %v2425_v50 = vmul.f32 %v4154_v48, %v4150_v39 }
0x1180   :  { %3992 = vmatmul.mubr.msk.f32.vlgmr.msra.gmra.mxu0 %vm237_vm2, %v2425_v50 }
0x1181   :  { %v4156_v51 = vpop.eup %4155  ;;  %4000 = vmatpush3.xpose.msk.msra.mxu0 %vm237_vm2, %v2582_v49  ;;  %4001 = vmatprep.mubr.msk.f32.mxu0 %vm4339_vm1, %v4338_v6 }
0x1182   :  { %v2426_v52 = vmul.f32 %v4156_v51, %v4152_v44  ;;  %4009 = vmatprep.subr.mxu0 %v4338_v6 }
0x1184   :  { %3997 = vmatmul.mubr.msk.f32.vlgmr.msra.gmra.mxu1 %vm237_vm2, %v2426_v52  ;;  %4002 = vmatmul.mubr.msk.f32.vlgmr.msra.gmra.mxu0 %vm237_vm2, %v2580_v53 }
0x1185   :  { %4005 = vmatpush3.xpose.msk.msra.mxu1 %vm237_vm2, %v2660_v46  ;;  %4006 = vmatprep.mubr.msk.f32.mxu1 %vm4339_vm1, %v4338_v6 }
0x1186   :  { %4014 = vmatprep.subr.mxu1 %v4338_v6  ;;  %4011 = vmatprep.mubr.msk.f32.mxu0 %vm4339_vm1, %v4338_v6 }
0x1188   :  { %4007 = vmatmul.mubr.msk.f32.vlgmr.msra.gmra.mxu1 %vm237_vm2, %v2658_v54 }
0x1189   :  { %4016 = vmatprep.mubr.msk.f32.mxu1 %vm4339_vm1, %v4338_v6 }
0x1240   :  { %v4813_v55 = vpop.f32.mrf.mxu0 }
0x1242   :  { %v3993_v56 = vpop.f32.mrf.mxu0 }
0x1244   :  { %v4815_v57 = vpop.f32.mrf.mxu1  ;;  %v2653_v5 = vpop.f32.mrf.mxu0 }
0x1245   :  { %v2735_v58 = vsel %vm2066_vm6, %v2653_v5, -inf }
0x1246   :  { %2736 = vmax.xlane.f32.xlu1 %v2735_v58  ;;  %v3998_v2 = vpop.f32.mrf.mxu1  ;;  %v4003_v59 = vpop.f32.mrf.mxu0 }
0x1247   :  { %v3271_v59 = vld [vmem:[#allocation7 + $0x10] sm:$0xff] }
0x1248   :  { %v2731_v60 = vpop.f32.mrf.mxu1 }
0x1249   :  { %v2738_v61 = vsel %vm2066_vm6, %v2731_v60, -inf }
0x124a   :  { %2739 = vmax.xlane.f32.xlu0 %v2738_v61  ;;  %v4008_v62 = vpop.f32.mrf.mxu1  ;;  %v3269_v61 = vld [vmem:[#allocation7] sm:$0xff] }
0x1257   :  { %2833 = vrot.lane.b32.xlu1 %v4716_v29, %s4345_s19 }
0x125b   :  { %2989 = vrot.lane.b32.xlu1 %v4716_v29, %s4349_s22 }
0x125f   :  { %2911 = vrot.lane.b32.xlu1 %v4718_v31, %s4349_s22 }
0x1263   :  { %2909 = vrot.lane.b32.xlu1 %v4750_v0, %s4349_s22 }
0x12cf   :  { %v2737_v63 = vpop.xlane.xlu1 %2736 }
0x12d0   :  { %v2741_v10 = vsub.f32 %v2653_v5, %v2737_v63 }
0x12d2   :  { %v2743_v3 = vmul.f32 1.442695, %v2741_v10 }
0x12d3   :  { %v2834_v4 = vpop.permute.xlu1 %2833  ;;  %v2740_v7 = vpop.xlane.xlu0 %2739 }
0x12d4   :  { %4157 = vpow2.f32 %v2743_v3  ;;  %v2742_v8 = vsub.f32 %v2731_v60, %v2740_v7  ;;  %4015 = vmatpush3.msra.mxu1 %v2834_v4  ;;  %v3270_v60 = vld [vmem:[#allocation7 + $0x8] sm:$0xff] }
0x12d5   :  { %4024 = vmatprep.subr.mxu1 %v4338_v6 }
0x12d6   :  { %v2745_v9 = vmul.f32 1.442695, %v2742_v8 }
0x12d7   :  { %v2990_v19 = vpop.permute.xlu1 %2989 }
0x12d8   :  { %4159 = vpow2.f32 %v2745_v9 }
0x12db   :  { %v2912_v24 = vpop.permute.xlu1 %2911 }
0x12df   :  { %v2910_v27 = vpop.permute.xlu1 %2909 }
0x12e1   :  { %v4158_v12 = vpop.eup %4157 }
0x12e2   :  { %v2747_v14 = vsel %vm2066_vm6, %v4158_v12, 0.0 }
0x12e3   :  { %2748 = vadd.xlane.f32.xlu0 %v2747_v14 }
0x12e5   :  { %v4160_v15 = vpop.eup %4159 }
0x12e6   :  { %v2750_v16 = vsel %vm2066_vm6, %v4160_v15, 0.0 }
0x12e7   :  { %2751 = vadd.xlane.f32.xlu0 %v2750_v16 }
0x12fd   :  { %2757 = vrot.lane.b32.xlu0 %v4718_v31, %s4345_s19 }
0x1301   :  { %2987 = vrot.lane.b32.xlu0 %v4753_v1, %s4349_s22 }
0x136c   :  { %v2749_v0 = vpop.xlane.xlu0 %2748 }
0x136d   :  { %4161 = vrcp.f32 %v2749_v0 }
0x1370   :  { %v2752_v17 = vpop.xlane.xlu0 %2751 }
0x1371   :  { %4163 = vrcp.f32 %v2752_v17 }
0x1374   :  { %v2758_v20 = vpop.permute.xlu0 %2757 }
0x1375   :  { %4010 = vmatpush3.msra.mxu0 %v2758_v20 }
0x1376   :  { %4019 = vmatprep.subr.mxu0 %v4338_v6 }
0x1378   :  { %v2988_v28 = vpop.permute.xlu0 %2987 }
0x137a   :  { %v4162_v22 = vpop.eup %4161 }
0x137b   :  { %v2755_v25 = vmul.f32 %v4162_v22, %v4158_v12 }
0x137d   :  { %4012 = vmatmul.mubr.msk.f32.vlgmr.msra.gmra.mxu0 %vm237_vm2, %v2755_v25 }
0x137e   :  { %v4164_v26 = vpop.eup %4163  ;;  %4020 = vmatpush3.xpose.msk.msra.mxu0 %vm237_vm2, %v2912_v24  ;;  %4021 = vmatprep.mubr.msk.f32.mxu0 %vm4339_vm1, %v4338_v6 }
0x137f   :  { %v2756_v1 = vmul.f32 %v4164_v26, %v4160_v15  ;;  %4029 = vmatprep.subr.mxu0 %v4338_v6 }
0x1381   :  { %4017 = vmatmul.mubr.msk.f32.vlgmr.msra.gmra.mxu1 %vm237_vm2, %v2756_v1  ;;  %4022 = vmatmul.mubr.msk.f32.vlgmr.msra.gmra.mxu0 %vm237_vm2, %v2910_v27 }
0x1382   :  { %4025 = vmatpush3.xpose.msk.msra.mxu1 %vm237_vm2, %v2990_v19  ;;  %4026 = vmatprep.mubr.msk.f32.mxu1 %vm4339_vm1, %v4338_v6 }
0x1383   :  { %4034 = vmatprep.subr.mxu1 %v4338_v6  ;;  %4031 = vmatprep.mubr.msk.f32.mxu0 %vm4339_vm1, %v4338_v6 }
0x1385   :  { %4027 = vmatmul.mubr.msk.f32.vlgmr.msra.gmra.mxu1 %vm237_vm2, %v2988_v28 }
0x1386   :  { %4036 = vmatprep.mubr.msk.f32.mxu1 %vm4339_vm1, %v4338_v6 }
0x143d   :  { %v2829_v30 = vpop.f32.mrf.mxu0 }
0x143f   :  { %v4013_v32 = vpop.f32.mrf.mxu0 }
0x1441   :  { %v2905_v33 = vpop.f32.mrf.mxu1  ;;  %v2983_v34 = vpop.f32.mrf.mxu0 }
0x1442   :  { %v3065_v35 = vsel %vm2066_vm6, %v2983_v34, -inf }
0x1443   :  { %3066 = vmax.xlane.f32.xlu1 %v3065_v35  ;;  %v4018_v42 = vpop.f32.mrf.mxu1  ;;  %v4023_v39 = vpop.f32.mrf.mxu0 }
0x1445   :  { %v3061_v40 = vpop.f32.mrf.mxu1 }
0x1446   :  { %v3068_v44 = vsel %vm2066_vm6, %v3061_v40, -inf }
0x1447   :  { %3069 = vmax.xlane.f32.xlu0 %v3068_v44  ;;  %v4028_v41 = vpop.f32.mrf.mxu1 }
0x1454   :  { %3163 = vrot.lane.b32.xlu1 %v4716_v29, %s4348_s21 }
0x1458   :  { %3243 = vrot.lane.b32.xlu1 %v4815_v57, %s4332_s14 }
0x145c   :  { %3251 = vrot.lane.b32.xlu1 %v2905_v33, %s4351_s5 }
0x14cc   :  { %v3067_v43 = vpop.xlane.xlu1 %3066 }
0x14cd   :  { %v3071_v45 = vsub.f32 %v2983_v34, %v3067_v43 }
0x14cf   :  { %v3073_v46 = vmul.f32 1.442695, %v3071_v45 }
0x14d0   :  { %v3164_v47 = vpop.permute.xlu1 %3163  ;;  %v3070_v48 = vpop.xlane.xlu0 %3069 }
0x14d1   :  { %4165 = vpow2.f32 %v3073_v46  ;;  %v3072_v49 = vsub.f32 %v3061_v40, %v3070_v48  ;;  %4035 = vmatpush3.msra.mxu1 %v3164_v47  ;;  %v3429_v48 = vld [vmem:[#allocation8 + $0x18] sm:$0xff] }
0x14d2   :  { %4050 = vmatprep.subr.mxu1 %v3429_v48 }
0x14d3   :  { %v3075_v50 = vmul.f32 1.442695, %v3072_v49  ;;  %v3428_v49 = vld [vmem:[#allocation8 + $0x10] sm:$0xff] }
0x14d4   :  { %v3244_v4 = vpop.permute.xlu1 %3243 }
0x14d5   :  { %4167 = vpow2.f32 %v3075_v50  ;;  %v3264_v9 = vsel %vm237_vm2, %v4777_v18, %v3244_v4  ;;  %v3275_v18 = vsub.s32 4, %v4654_v36  ;;  %v3427_v50 = vld [vmem:[#allocation8 + $0x8] sm:$0xff] }
0x14d7   :  { %v3276_v24 = vrot.slane %v4659_v38, %v3275_v18 }
0x14d8   :  { %v3252_v8 = vpop.permute.xlu1 %3251 }
0x14d9   :  { %v3266_v12 = vsel %vm1579_vm4, %v3264_v9, %v3252_v8 }
0x14de   :  { %v4166_v51 = vpop.eup %4165 }
0x14df   :  { %v3077_v52 = vsel %vm2066_vm6, %v4166_v51, 0.0 }
0x14e0   :  { %3078 = vadd.xlane.f32.xlu0 %v3077_v52  ;;  %v3527_v52 = vld [vmem:[%s4948_s8 + $0x38] sm:$0xff] }
0x14e2   :  { %v4168_v29 = vpop.eup %4167 }
0x14e3   :  { %v3080_v53 = vsel %vm2066_vm6, %v4168_v29, 0.0 }
0x14e4   :  { %3081 = vadd.xlane.f32.xlu0 %v3080_v53  ;;  %v3525_v53 = vld [vmem:[%s4948_s8 + $0x28] sm:$0xff] }
0x14fa   :  { %3087 = vrot.lane.b32.xlu0 %v4718_v31, %s4348_s21 }
0x14fe   :  { %3241 = vrot.lane.b32.xlu0 %v4813_v55, %s4332_s14  ;;  %v3272_v55 = vld [vmem:[#allocation7 + $0x18] sm:$0xff] }
0x1502   :  { %3249 = vrot.lane.b32.xlu0 %v2829_v30, %s4351_s5 }
0x1569   :  { %v3079_v54 = vpop.xlane.xlu0 %3078 }
0x156a   :  { %4169 = vrcp.f32 %v3079_v54  ;;  %v3524_v54 = vld [vmem:[%s4948_s8 + $0x20] sm:$0xff] }
0x156d   :  { %v3082_v56 = vpop.xlane.xlu0 %3081 }
0x156e   :  { %4171 = vrcp.f32 %v3082_v56 }
0x1571   :  { %v3088_v57 = vpop.permute.xlu0 %3087 }
0x1572   :  { %4030 = vmatpush3.msra.mxu0 %v3088_v57 }
0x1573   :  { %4039 = vmatprep.subr.mxu0 %v4338_v6 }
0x1575   :  { %v3242_v7 = vpop.permute.xlu0 %3241 }
0x1576   :  { %v3263_v16 = vsel %vm237_vm2, %v4775_v11, %v3242_v7 }
0x1577   :  { %v4170_v5 = vpop.eup %4169 }
0x1578   :  { %v3085_v58 = vmul.f32 %v4170_v5, %v4166_v51  ;;  %v3426_v51 = vld [vmem:[#allocation8] sm:$0xff] }
0x157a   :  { %4032 = vmatmul.mubr.msk.f32.vlgmr.msra.gmra.mxu0 %vm237_vm2, %v3085_v58 }
0x157b   :  { %v4172_v2 = vpop.eup %4171  ;;  %4047 = vmatprep.mubr.msk.f32.mxu0 %vm4339_vm1, %v4338_v6  ;;  %4040 = vmatpush3.msra.mxu0 %v3272_v55  ;;  %v3410_v55 = vsub.s32 5, %v4654_v36 }
0x157c   :  { %v3086_v31 = vmul.f32 %v4172_v2, %v4168_v29  ;;  %4041 = vmatprep.subr.mxu0 %v4338_v6  ;;  %v3526_v29 = vld [vmem:[%s4948_s8 + $0x30] sm:$0xff] }
0x157d   :  { %4042 = vmatpush3.msra.mxu0 %v3271_v59  ;;  %v3416_v59 = vsub.s32 6, %v4654_v36 }
0x157e   :  { %4037 = vmatmul.mubr.msk.f32.vlgmr.msra.gmra.mxu1 %vm237_vm2, %v3086_v31  ;;  %4043 = vmatprep.subr.mxu0 %v4338_v6 }
0x157f   :  { %4044 = vmatpush3.msra.mxu0 %v3270_v60  ;;  %4051 = vmatpush3.msra.mxu1 %v3429_v48 }
0x1580   :  { %4045 = vmatprep.subr.mxu0 %v4338_v6  ;;  %v3250_v6 = vpop.permute.xlu0 %3249  ;;  %4052 = vmatprep.subr.mxu1 %v3428_v49 }
0x1581   :  { %4046 = vmatpush3.msra.mxu0 %v3269_v61  ;;  %v3265_v0 = vsel %vm1579_vm4, %v3263_v16, %v3250_v6  ;;  %4053 = vmatpush3.msra.mxu1 %v3428_v49  ;;  %v3411_v61 = vrot.slane %v4659_v38, %v3410_v55  ;;  %v3522_v16 = vld [vmem:[%s4948_s8 + $0x10] sm:$0xff] }
0x1582   :  { %4054 = vmatprep.subr.mxu1 %v3427_v50  ;;  %4061 = vmatprep.subr.mxu0 %v3527_v52 }
0x1583   :  { %4055 = vmatpush3.msra.mxu1 %v3427_v50 }
0x1584   :  { %4056 = vmatprep.subr.mxu1 %v3426_v51 }
0x1585   :  { %4057 = vmatpush3.msra.mxu1 %v3426_v51 }
0x163a   :  { %v3159_v62 = vpop.f32.mrf.mxu0 }
0x163c   :  { %v4033_v63 = vpop.f32.mrf.mxu0 }
0x163d   :  { %v3417_v63 = vrot.slane %v4659_v38, %v3416_v59 }
0x163e   :  { %v3235_v10 = vpop.f32.mrf.mxu1 }
0x163f   :  { %3259 = vrot.lane.b32.xlu1 %v3235_v10, %s4352_s30 }
0x1640   :  { %v4038_v3 = vpop.f32.mrf.mxu1 }
0x1643   :  { %3257 = vrot.lane.b32.xlu1 %v3159_v62, %s4352_s30 }
0x16b1   :  { %v3260_v14 = vpop.permute.xlu1 %3259 }
0x16b2   :  { %v3268_v15 = vsel %vm1582_vm3, %v3266_v12, %v3260_v14 }
0x16b3   :  { %v3279_v17 = vrot.slane %v3268_v15, 7  ;;  %v3523_v15 = vld [vmem:[%s4948_s8 + $0x18] sm:$0xff] }
0x16b5   :  { %v3258_v19 = vpop.permute.xlu1 %3257 }
0x16b6   :  { %v3267_v20 = vsel %vm1582_vm3, %v3265_v0, %v3258_v19  ;;  %v3521_v0 = vld [vmem:[%s4948_s8 + $0x8] sm:$0xff]  ;;  %v3722_v19 = vld [vmem:[#allocation11] ss:$0 sm:$0xff] }
0x16b7   :  { %v3280_v22 = vsel %vm1727_vm5, %v3279_v17, %v3267_v20  ;;  %v3520_v17 = vld [vmem:[%s4948_s8] sm:$0xff] }
0x16b8   :  { %4048 = vmatmul.mubr.msk.f32.vlgmr.msra.gmra.mxu0 %vm152_vm0, %v3280_v22 }
0x16b9   :  { %4062 = vmatpush3.msra.mxu0 %v3527_v52 }
0x16ba   :  { %4063 = vmatprep.subr.mxu0 %v3526_v29 }
0x16bb   :  { %4064 = vmatpush3.msra.mxu0 %v3526_v29  ;;  %v140_v29 = vld [vmem:[#allocation13 + $0x8] sm:$0x3] }
0x16bc   :  { %4065 = vmatprep.subr.mxu0 %v3525_v53 }
0x16bd   :  { %4066 = vmatpush3.msra.mxu0 %v3525_v53  ;;  %v3645_v53 = vrot.slane %v140_v29, %v4657_v37 }
0x16be   :  { %4067 = vmatprep.subr.mxu0 %v3524_v54 }
0x16bf   :  { %4068 = vmatpush3.msra.mxu0 %v3524_v54 }
0x16c0   :  { %4069 = vmatprep.subr.mxu0 %v3523_v15 }
0x16c1   :  { %4070 = vmatpush3.msra.mxu0 %v3523_v15 }
0x16c2   :  { %4071 = vmatprep.subr.mxu0 %v3522_v16 }
0x16c3   :  { %4072 = vmatpush3.msra.mxu0 %v3522_v16 }
0x16c4   :  { %4073 = vmatprep.subr.mxu0 %v3521_v0 }
0x16c5   :  { %4074 = vmatpush3.msra.mxu0 %v3521_v0 }
0x16c6   :  { %4075 = vmatprep.subr.mxu0 %v3520_v17 }
0x16c7   :  { %4076 = vmatpush3.msra.mxu0 %v3520_v17 }
0x1778   :  { %v3349_v25 = vpop.f32.mrf.mxu0 }
0x1779   :  { %v3350_v26 = vadd.f32 %v3349_v25, %v3276_v24 }
0x177a   :  { %v4049_v1 = vpop.f32.mrf.mxu0 }
0x177b   :  { %v3354_v27 = vrot.slane %v3350_v26, 1  ;;  %v3355_v28 = vrot.slane %v3350_v26, 2  ;;  %v3530_v1 = vsub.s32 7, %v4654_v36 }
0x177d   :  { %v3358_v11 = vadd.f32 %v3354_v27, %v4702_v21  ;;  %v3359_v30 = vadd.f32 %v3355_v28, %v4706_v23  ;;  %v3531_v27 = vrot.slane %v4659_v38, %v3530_v1 }
0x177f   :  { %v3366_v32 = vsel %vm3365_vm7, %v3358_v11, 0.0  ;;  %v3362_v33 = vrot.slane %v3359_v30, 7 }
0x1780   :  { %3367 = vadd.xlane.f32.xlu1 %v3366_v32 }
0x1781   :  { %v3370_v34 = vsel %vm3369_vm8, %v3362_v33, 0.0 }
0x1782   :  { %3371 = vadd.xlane.f32.xlu0 %v3370_v34 }
0x1809   :  { %v3368_v35 = vpop.xlane.xlu1 %3367 }
0x180a   :  { %v3373_v40 = vmul.f32 0.03125, %v3368_v35 }
0x180b   :  { %v3372_v42 = vpop.xlane.xlu0 %3371 }
0x180c   :  { %v3374_v39 = vmul.f32 0.03125, %v3372_v42  ;;  %v3380_v43 = vsub.f32 %v3358_v11, %v3373_v40 }
0x180e   :  { %v3377_v44 = vrot.slane %v3374_v39, 1  ;;  %v3382_v21 = vmul.f32 %v3380_v43, %v3380_v43 }
0x1810   :  { %v3381_v41 = vsub.f32 %v3359_v30, %v3377_v44  ;;  %v3389_v23 = vsel %vm3365_vm7, %v3382_v21, 0.0 }
0x1812   :  { %v3383_v45 = vmul.f32 %v3381_v41, %v3381_v41 }
0x1814   :  { %v3386_v46 = vrot.slane %v3383_v45, 7 }
0x1816   :  { %v3392_v47 = vsel %vm3369_vm8, %v3386_v46, 0.0 }
0x1817   :  { %3393 = vadd.xlane.f32.xlu0 %v3392_v47 }
0x181b   :  { %3390 = vadd.xlane.f32.xlu0 %v3389_v23 }
0x18a0   :  { %v3394_v56 = vpop.xlane.xlu0 %3393 }
0x18a1   :  { %v3396_v57 = vmul.f32 0.03125, %v3394_v56  ;;  %v3651_v56 = vrot.slane %v140_v29, %v1705_v13 }
0x18a3   :  { %v3398_v5 = vadd.f32 1e-05, %v3396_v57 }
0x18a4   :  { %v3391_v58 = vpop.xlane.xlu0 %3390 }
0x18a5   :  { %4173 = vrsqrt.f32 %v3398_v5  ;;  %v3395_v2 = vmul.f32 0.03125, %v3391_v58 }
0x18a7   :  { %v3397_v31 = vadd.f32 1e-05, %v3395_v2 }
0x18a9   :  { %4175 = vrsqrt.f32 %v3397_v31 }
0x18b2   :  { %v4174_v60 = vpop.eup %4173 }
0x18b3   :  { %v3403_v62 = vrot.slane %v4174_v60, 1 }
0x18b5   :  { %v3407_v10 = vmul.f32 %v3403_v62, %v3381_v41 }
0x18b6   :  { %v4176_v3 = vpop.eup %4175 }
0x18b7   :  { %v3413_v4 = vmul.f32 %v3411_v61, %v3407_v10  ;;  %v3406_v7 = vmul.f32 %v4176_v3, %v3380_v43 }
0x18b9   :  { %v3419_v8 = vadd.f32 %v3417_v63, %v3413_v4  ;;  %v3412_v9 = vmul.f32 %v3411_v61, %v3406_v7 }
0x18bb   :  { %3423 = vst.msk [vmem:[#allocation2 + $0x8] sm:$0x80] %vm3365_vm7, %v3419_v8  ;;  %v3418_v12 = vadd.f32 %v3417_v63, %v3412_v9 }
0x18bd   :  { %3422 = vst.msk [vmem:[#allocation2] sm:$0x80] %vm3365_vm7, %v3418_v12 }
0x18c2   :  { %v3425_v6 = vld [vmem:[#allocation2 + $0x8] sm:$0xff] }
0x18c4   :  { %v3424_v14 = vld [vmem:[#allocation2] sm:$0xff] }
0x18c5   :  { %4058 = vmatprep.mubr.msk.f32.mxu1 %vm152_vm0, %v3424_v14 }
0x18c6   :  { %4059 = vmatmul.mubr.msk.f32.vlgmr.msra.gmra.mxu1 %vm152_vm0, %v3425_v6 }
0x1986   :  { %v4060_v20 = vpop.f32.mrf.mxu1 }
0x1987   :  { %v3515_v22 = vadd.f32 %v4060_v20, %v3722_v19 }
0x1988   :  { %v3509_v18 = vpop.f32.mrf.mxu1 }
0x1989   :  { %v3510_v24 = vadd.f32 %v3722_v19, %v3509_v18  ;;  %v3519_v26 = vmax.f32 %v3515_v22, 0.0 }
0x198b   :  { %v3518_v25 = vmax.f32 %v3510_v24, 0.0 }
0x198d   :  { %4077 = vmatprep.mubr.msk.f32.mxu0 %vm3532_vm9, %v3518_v25 }
0x198e   :  { %4078 = vmatmul.mubr.msk.f32.vlgmr.msra.gmra.mxu0 %vm3532_vm9, %v3519_v26 }
0x1a4e   :  { %v4079_v28 = vpop.f32.mrf.mxu0 }
0x1a4f   :  { %v3611_v11 = vadd.f32 %v4079_v28, %v3531_v27 }
0x1a50   :  { %v3605_v30 = vpop.f32.mrf.mxu0 }
0x1a51   :  { %v3606_v32 = vadd.f32 %v3605_v30, %v3531_v27  ;;  %v3615_v33 = vadd.f32 %v3611_v11, %v3425_v6 }
0x1a53   :  { %v3614_v34 = vadd.f32 %v3606_v32, %v3424_v14  ;;  %v3619_v35 = vsel %vm152_vm0, %v3615_v33, 0.0 }
0x1a54   :  { %3620 = vadd.xlane.f32.xlu0 %v3619_v35 }
0x1a55   :  { %v3616_v42 = vsel %vm152_vm0, %v3614_v34, 0.0 }
0x1a56   :  { %3617 = vadd.xlane.f32.xlu1 %v3616_v42 }
0x1add   :  { %v3621_v39 = vpop.xlane.xlu0 %3620 }
0x1ade   :  { %v3623_v40 = vmul.f32 0.03125, %v3621_v39 }
0x1adf   :  { %v3618_v44 = vpop.xlane.xlu1 %3617 }
0x1ae0   :  { %v3625_v41 = vsub.f32 %v3615_v33, %v3623_v40  ;;  %v3622_v43 = vmul.f32 0.03125, %v3618_v44 }
0x1ae2   :  { %v3624_v45 = vsub.f32 %v3614_v34, %v3622_v43  ;;  %v3627_v46 = vmul.f32 %v3625_v41, %v3625_v41 }
0x1ae4   :  { %v3631_v38 = vsel %vm152_vm0, %v3627_v46, 0.0  ;;  %v3626_v47 = vmul.f32 %v3624_v45, %v3624_v45 }
0x1ae5   :  { %3632 = vadd.xlane.f32.xlu0 %v3631_v38 }
0x1ae6   :  { %v3628_v21 = vsel %vm152_vm0, %v3626_v47, 0.0 }
0x1ae7   :  { %3629 = vadd.xlane.f32.xlu1 %v3628_v21 }
0x1b6e   :  { %v3633_v23 = vpop.xlane.xlu0 %3632 }
0x1b6f   :  { %v3635_v48 = vmul.f32 0.03125, %v3633_v23 }
0x1b70   :  { %v3630_v49 = vpop.xlane.xlu1 %3629 }
0x1b71   :  { %v3637_v50 = vadd.f32 1e-05, %v3635_v48  ;;  %v3634_v51 = vmul.f32 0.03125, %v3630_v49 }
0x1b73   :  { %4177 = vrsqrt.f32 %v3637_v50  ;;  %v3636_v52 = vadd.f32 1e-05, %v3634_v51 }
0x1b75   :  { %4179 = vrsqrt.f32 %v3636_v52 }
0x1b80   :  { %v4178_v54 = vpop.eup %4177 }
0x1b81   :  { %v3641_v57 = vmul.f32 %v4178_v54, %v3625_v41 }
0x1b82   :  { %v4180_v5 = vpop.eup %4179 }
0x1b83   :  { %v3647_v58 = vmul.f32 %v3645_v53, %v3641_v57  ;;  %v3640_v2 = vmul.f32 %v4180_v5, %v3624_v45 }
0x1b85   :  { %v3653_v31 = vadd.f32 %v3651_v56, %v3647_v58  ;;  %v3646_v55 = vmul.f32 %v3645_v53, %v3640_v2 }
0x1b87   :  { %3655 = vst.msk [vmem:[%s4953_s13 + $0x8] sm:$0xff] %vm152_vm0, %v3653_v31  ;;  %v3652_v59 = vadd.f32 %v3651_v56, %v3646_v55 }
0x1b89   :  { %3654 = vst.msk [vmem:[%s4953_s13] sm:$0xff] %vm152_vm0, %v3652_v59 }
0x1b8a   :  { %3660 = vsyncpa [#allocation4], 1 }
0x1b8b   :  { %3661 = vsyncpa [#allocation6], 1 }
0x1b8c   :  { %3662 = vsyncpa [#allocation9], 1 }
0x1b8d   :  { %3663 = vsyncpa [#allocation12], 1 }

</bundles_post_ra>
